<compile_context>
chip_gen: v6e
topology: v6e:2x2x1
jax: 0.10.0
libtpu: 0.0.40
codegen_flags: <defaults>
</compile_context>

<pallas_src>
import functools

import jax
import jax.numpy as jnp
from jax.experimental import pallas as pl
from jax.experimental.pallas import tpu as pltpu


MXU_DTYPE = jnp.bfloat16            # MXU operand dtype; accumulation is f32
VMEM_LIMIT = 16 * 1024 * 1024       # ~8x the fused kernel's working set


def _round_up(x, m):
    return (x + m - 1) // m * m


# ------------------------------------------------------------------
# Pallas kernels
# ------------------------------------------------------------------
def _conv1_kernel(p_ref, w_ref, b_ref, o_ref):
    """Layer-1 conv for BOTH nets: shared patches, [main|prior] column-concat
    weights.  p (tm, K) bf16, w (K, 64) bf16, b (1, 64) f32 -> o (tm, 64) bf16.
    Single lane-dense store, no in-kernel column split."""
    y = jnp.dot(p_ref[...], w_ref[...], preferred_element_type=jnp.float32)
    o_ref[...] = jnp.maximum(y + b_ref[...], 0.0).astype(o_ref.dtype)


def _fused_conv23_heads_kernel(p2_ref, w2_ref, b2_ref, w3_ref, b3_ref,
                               hw1_ref, hb1_ref, hw2m_ref, hw2p_ref,
                               hb2m_ref, hb2p_ref, o_ref, *, beta):
    """conv2 + conv3 + K heads + K prior heads + beta-combine, fused.

    Both nets stay channel-concatenated ([main | prior]) so every matmul has
    a full 128-lane N.  Shapes (for the test config):
      p2   (n_pos*B, 1024) bf16   conv2 im2col patches, rows (position, batch)
      w2   (1024, 128)     bf16   block-diagonal over the two nets
      w3   (n_pos*128, 128) bf16  per-position block-diagonal conv3 weights
      hw1  (128, 2*K*512)  bf16   feat -> all heads' hidden (net block-diag)
      hw2m/hw2p (K*512, 128) bf16 per-head block-diag, cols padded to 128
      o    (B, 128) f32           q + beta*prior_q, cols [0, K*A) valid
    """
    batch = o_ref.shape[0]
    c_a2 = w2_ref.shape[-1]             # conv2 out channels (main|prior) = 128
    n_pos = w3_ref.shape[0] // c_a2     # conv2 output spatial positions (3*3)
    kh_cols = hw2m_ref.shape[0]         # K * hidden

    # ---- conv2: one (M2, K2) x (K2, 128) matmul ----
    a2 = jnp.dot(p2_ref[...], w2_ref[...], preferred_element_type=jnp.float32)
    a2 = jnp.maximum(a2 + b2_ref[...], 0.0)                        # f32 (M2, 128)

    # ---- conv3 (1x1 spatial output): sum over the n_pos input positions ----
    acc = jnp.zeros((batch, w3_ref.shape[-1]), jnp.float32)
    for p in range(n_pos):
        lhs = a2[p * batch:(p + 1) * batch, :].astype(MXU_DTYPE)   # (B, 128)
        rhs = w3_ref[p * c_a2:(p + 1) * c_a2, :]                   # (128, 128)
        acc = acc + jnp.dot(lhs, rhs, preferred_element_type=jnp.float32)
    feat = jnp.maximum(acc + b3_ref[...], 0.0).astype(MXU_DTYPE)   # (B, 128)

    # ---- head layer 1: all K heads x both nets in one matmul ----
    h = jnp.dot(feat, hw1_ref[...], preferred_element_type=jnp.float32)
    h = jnp.maximum(h + hb1_ref[...], 0.0).astype(MXU_DTYPE)       # (B, 2*K*H)

    # ---- head layer 2 + q + beta * prior_q (combined in f32) ----
    qm = jnp.dot(h[:, :kh_cols], hw2m_ref[...],
                 preferred_element_type=jnp.float32) + hb2m_ref[...]
    qp = jnp.dot(h[:, kh_cols:], hw2p_ref[...],
                 preferred_element_type=jnp.float32) + hb2p_ref[...]
    o_ref[...] = (qm + beta * qp).astype(o_ref.dtype)


# ------------------------------------------------------------------
# Pallas wrappers
# ------------------------------------------------------------------
def pallas_conv1(p, w, b, tm=512):
    """p (M, K) bf16, w (K, OC) bf16, b (OC,) f32 -> (M, OC) bf16."""
    M, K = p.shape
    OC = w.shape[-1]
    tm = min(tm, _round_up(M, 16))        # bf16 vregs pack (16, 128) sublanes
    M_pad = _round_up(M, tm)
    if M_pad != M:
        p = jnp.pad(p, ((0, M_pad - M), (0, 0)))
    out = pl.pallas_call(
        _conv1_kernel,
        grid=(M_pad // tm,),
        in_specs=[
            pl.BlockSpec((tm, K), lambda m: (m, 0)),
            pl.BlockSpec((K, OC), lambda m: (0, 0)),
            pl.BlockSpec((1, OC), lambda m: (0, 0)),
        ],
        out_specs=pl.BlockSpec((tm, OC), lambda m: (m, 0)),
        out_shape=jax.ShapeDtypeStruct((M_pad, OC), MXU_DTYPE),
        compiler_params=pltpu.CompilerParams(
            dimension_semantics=("parallel",),
            vmem_limit_bytes=VMEM_LIMIT),
    )(p, w, b.reshape(1, OC))
    return out[:M] if M_pad != M else out


def pallas_fused_tail(p2, prep, *, batch, prior_beta):
    """conv2 + conv3 + all heads in a single pallas_call (whole-array blocks,
    everything VMEM-resident: ~2 MiB of weights + activations)."""
    nq = prep["hw2m"].shape[-1]
    kernel = functools.partial(_fused_conv23_heads_kernel, beta=prior_beta)
    return pl.pallas_call(
        kernel,
        out_shape=jax.ShapeDtypeStruct((batch, nq), jnp.float32),
        compiler_params=pltpu.CompilerParams(vmem_limit_bytes=VMEM_LIMIT),
    )(p2, prep["w2"], prep["b2"], prep["w3"], prep["b3"],
      prep["hw1"], prep["hb1"], prep["hw2m"], prep["hw2p"],
      prep["hb2m"], prep["hb2p"])


# ------------------------------------------------------------------
# XLA glue: position-major im2col (tiny tensors between the two kernels)
# ------------------------------------------------------------------
def _im2col_pos_major(x, k, stride):
    """x (H, W, B, C) -> patches (OH*OW*B, k*k*C).
    Rows ordered (oh, ow, b); columns ordered (kh, kw, c) to match the
    flattened conv weights."""
    H, W = x.shape[0], x.shape[1]
    OH = (H - k) // stride + 1
    OW = (W - k) // stride + 1
    cols = [
        x[kh:kh + stride * (OH - 1) + 1:stride,
          kw:kw + stride * (OW - 1) + 1:stride]
        for kh in range(k) for kw in range(k)
    ]
    p = jnp.concatenate(cols, axis=-1)            # (OH, OW, B, k*k*C)
    return p.reshape(OH * OW * x.shape[2], -1), OH, OW


# ------------------------------------------------------------------
# One-time weight preparation (hoisted out of the jitted forward)
# ------------------------------------------------------------------
def _conv_w_to_mat(w):
    """PyTorch conv weight (OC, C, kh, kw) -> (kh*kw*C, OC), K-order (kh,kw,c)."""
    OC, C, kh, kw = w.shape
    return w.transpose(2, 3, 1, 0).reshape(kh * kw * C, OC)


def _blockdiag_conv_w(w_main, w_prior):
    """Two PyTorch conv weights (OC, C, kh, kw) -> one (kh*kw*2C, 2*OC)
    block-diagonal matmul weight: main input channels feed only main output
    channels, prior channels only prior outputs.  Row order (kh, kw, [m|p] c)."""
    OC, C, kh, kw = w_main.shape
    wm = w_main.transpose(2, 3, 1, 0)                       # (kh, kw, C, OC)
    wp = w_prior.transpose(2, 3, 1, 0)
    z = jnp.zeros((kh, kw, C, OC), w_main.dtype)
    top = jnp.concatenate([wm, z], axis=-1)                 # main c -> [main | 0]
    bot = jnp.concatenate([z, wp], axis=-1)                 # prior c -> [0 | prior]
    return jnp.concatenate([top, bot], axis=2).reshape(kh * kw * 2 * C, 2 * OC)


def prepare_bspdqn_params(params):
    """One-time preparation of fused / block-diagonal matmul weights."""
    conv, pconv = params["conv"], params["prior_conv"]
    heads, pheads = params["heads"], params["prior_heads"]
    K, F, Hh = heads["w1"].shape
    A = heads["w2"].shape[-1]
    C3 = conv["w3"].shape[0]
    # TODO(synk): the fused head kernel assumes the conv stack ends at 1x1
    # spatial (fc_size == conv3 channels); generalize the feature flatten /
    # CHW row permutation for larger frames (e.g. 84x84 -> 7x7x64).
    assert F == C3, "fused tail assumes a 1x1 spatial conv3 output"

    # conv1: shared input, output channels concatenated [main | prior].
    w1 = jnp.concatenate([_conv_w_to_mat(conv["w1"]),
                          _conv_w_to_mat(pconv["w1"])], axis=1)
    b1 = jnp.concatenate([conv["b1"], pconv["b1"]])
    # conv2 / conv3: block-diagonal over the two nets -> N = 128 lanes.
    w2 = _blockdiag_conv_w(conv["w2"], pconv["w2"])
    b2 = jnp.concatenate([conv["b2"], pconv["b2"]]).reshape(1, -1)
    w3 = _blockdiag_conv_w(conv["w3"], pconv["w3"])
    b3 = jnp.concatenate([conv["b3"], pconv["b3"]]).reshape(1, -1)

    # Head layer 1: block-diagonal over nets, all K heads fused column-wise.
    w1m = heads["w1"].transpose(1, 0, 2).reshape(F, K * Hh)
    w1p = pheads["w1"].transpose(1, 0, 2).reshape(F, K * Hh)
    hw1 = jnp.zeros((2 * F, 2 * K * Hh), jnp.float32)
    hw1 = hw1.at[:F, :K * Hh].set(w1m).at[F:, K * Hh:].set(w1p)
    hb1 = jnp.concatenate([heads["b1"].reshape(1, K * Hh),
                           pheads["b1"].reshape(1, K * Hh)], axis=1)

    # Head layer 2: per-head block-diagonal, output columns padded to a full
    # 128-lane group so the final store is lane-dense.
    nq = _round_up(max(K * A, 128), 128)

    def _head_l2(h):
        w = jnp.zeros((K * Hh, nq), jnp.float32)
        b = jnp.zeros((1, nq), jnp.float32)
        for i in range(K):
            w = w.at[i * Hh:(i + 1) * Hh, i * A:(i + 1) * A].set(h["w2"][i])
            b = b.at[:, i * A:(i + 1) * A].set(h["b2"][i].reshape(1, A))
        return w, b

    hw2m, hb2m = _head_l2(heads)
    hw2p, hb2p = _head_l2(pheads)

    return {
        "w1": w1.astype(MXU_DTYPE), "b1": b1.astype(jnp.float32),
        "w2": w2.astype(MXU_DTYPE), "b2": b2.astype(jnp.float32),
        "w3": w3.astype(MXU_DTYPE), "b3": b3.astype(jnp.float32),
        "hw1": hw1.astype(MXU_DTYPE), "hb1": hb1.astype(jnp.float32),
        "hw2m": hw2m.astype(MXU_DTYPE), "hb2m": hb2m.astype(jnp.float32),
        "hw2p": hw2p.astype(MXU_DTYPE), "hb2p": hb2p.astype(jnp.float32),
    }


# ------------------------------------------------------------------
# Parameter init (deterministic, synthetic)
# ------------------------------------------------------------------
def _init_conv_params(key, c_in):
    ks = jax.random.split(key, 6)

    def w(k, shape):
        fan_in = shape[1] * shape[2] * shape[3]
        return jax.random.normal(k, shape, jnp.float32) / jnp.sqrt(fan_in)

    return {
        "w1": w(ks[0], (32, c_in, 8, 8)), "b1": 0.01 * jax.random.normal(ks[1], (32,), jnp.float32),
        "w2": w(ks[2], (64, 32, 4, 4)),   "b2": 0.01 * jax.random.normal(ks[3], (64,), jnp.float32),
        "w3": w(ks[4], (64, 64, 3, 3)),   "b3": 0.01 * jax.random.normal(ks[5], (64,), jnp.float32),
    }


def _init_head_params(key, bsp_k, fc_size, hidden, num_actions):
    ks = jax.random.split(key, 4)
    w1 = jax.random.normal(ks[0], (bsp_k, fc_size, hidden), jnp.float32) / jnp.sqrt(fc_size)
    b1 = 0.01 * jax.random.normal(ks[1], (bsp_k, 1, hidden), jnp.float32)
    w2 = jax.random.normal(ks[2], (bsp_k, hidden, num_actions), jnp.float32) / jnp.sqrt(hidden)
    b2 = 0.01 * jax.random.normal(ks[3], (bsp_k, 1, num_actions), jnp.float32)
    return {"w1": w1, "b1": b1, "w2": w2, "b2": b2}


def init_bspdqn_params(key, c_in, fc_size, hidden, num_actions, bsp_k):
    kc, kpc, kh, kph = jax.random.split(key, 4)
    return {
        "conv": _init_conv_params(kc, c_in),
        "prior_conv": _init_conv_params(kpc, c_in),
        "heads": _init_head_params(kh, bsp_k, fc_size, hidden, num_actions),
        "prior_heads": _init_head_params(kph, bsp_k, fc_size, hidden, num_actions),
    }


# ------------------------------------------------------------------
# Forward pass (mirrors BSPDQN.forward: q + beta * prior_q, output (B, A, K))
# ------------------------------------------------------------------
@functools.partial(jax.jit, static_argnames=("bsp_k", "num_actions", "prior_beta"))
def bspdqn_forward(x, prep, *, bsp_k, num_actions, prior_beta):
    """x (B, C, H, W) f32 -> (B, num_actions, bsp_k) f32 = q + beta * prior_q."""
    B = x.shape[0]
    # NCHW -> (H, W, B, C) once: spatial-major so im2col rows come out
    # position-major / batch-minor, which is what the fused kernel expects.
    x_t = jnp.transpose(x, (2, 3, 0, 1)).astype(MXU_DTYPE)

    # ---- conv layer 1 (both nets, shared input) ----
    # TODO(synk): at realistic batch/frame sizes, build the layer-1 patches
    # in-kernel from a VMEM-resident frame block instead of this XLA im2col.
    p1, OH1, OW1 = _im2col_pos_major(x_t, k=8, stride=4)
    a1 = pallas_conv1(p1, prep["w1"], prep["b1"])             # (OH1*OW1*B, 64)

    # ---- conv2 + conv3 + heads + beta-combine, one fused kernel ----
    a1 = a1.reshape(OH1, OW1, B, a1.shape[-1])
    p2, OH2, OW2 = _im2col_pos_major(a1, k=4, stride=2)       # (OH2*OW2*B, 1024)
    assert OH2 == 3 and OW2 == 3, "fused tail assumes a 1x1 conv3 output"
    q = pallas_fused_tail(p2, prep, batch=B, prior_beta=prior_beta)  # (B, 128)

    # torch.stack(qs, dim=2) layout: (B, A, K); q columns are head-major.
    q = q[:, :bsp_k * num_actions].reshape(B, bsp_k, num_actions)
    return jnp.transpose(q, (0, 2, 1))


# TODO(synk): scale_gradients() / requires_grad=False on the prior nets are
# training-time concerns with no forward-pass Pallas equivalent.


# ------------------------------------------------------------------
# Pure-JAX reference (operands rounded to bf16 to mirror the kernels' MXU
# dtype; accumulation stays f32) for a tolerance-based correctness check.
# ------------------------------------------------------------------
def _bf16(a):
    return a.astype(jnp.bfloat16).astype(jnp.float32)


def _ref_conv_stack(x, p):
    def conv(x, w, b, s):
        y = jax.lax.conv_general_dilated(
            _bf16(x), _bf16(w), (s, s), "VALID",
            dimension_numbers=("NCHW", "OIHW", "NCHW"))
        return _bf16(jax.nn.relu(y + b.reshape(1, -1, 1, 1)))
    x = conv(x, p["w1"], p["b1"], 4)
    x = conv(x, p["w2"], p["b2"], 2)
    x = conv(x, p["w3"], p["b3"], 1)
    return x.reshape(x.shape[0], -1)        # PyTorch .view(-1, fc_size)


def bspdqn_reference(x, params, prior_beta):
    c = _ref_conv_stack(x, params["conv"])
    pc = _ref_conv_stack(x, params["prior_conv"])

    def head(feat, hp, i):
        h = _bf16(jax.nn.relu(feat @ _bf16(hp["w1"][i]) + hp["b1"][i]))
        return h @ _bf16(hp["w2"][i]) + hp["b2"][i]

    K = params["heads"]["w1"].shape[0]
    qs = jnp.stack([head(c, params["heads"], i) for i in range(K)], axis=2)
    pqs = jnp.stack([head(pc, params["prior_heads"], i) for i in range(K)], axis=2)
    return qs + prior_beta * pqs


if __name__ == "__main__":
    # Small config consistent with the module: 4 past frames, 36x36 frame.
    B, C_IN, H, W = 2, 4, 36, 36
    NUM_ACTIONS = 6
    BSP_K = 3
    PRIOR_BETA = 3.0
    HIDDEN = 512
    FC_SIZE = 64 * 1 * 1       # conv stack: 36 -> 8 -> 3 -> 1 spatial, 64 ch

    key = jax.random.PRNGKey(0)
    kx, kp = jax.random.split(key)
    x = jax.random.normal(kx, (B, C_IN, H, W), jnp.float32)
    params = init_bspdqn_params(kp, C_IN, FC_SIZE, HIDDEN, NUM_ACTIONS, BSP_K)

    # One-time weight preparation (hoisted out of the per-step forward).
    prep = prepare_bspdqn_params(params)

    out = bspdqn_forward(x, prep, bsp_k=BSP_K, num_actions=NUM_ACTIONS,
                         prior_beta=PRIOR_BETA)
    out = jax.block_until_ready(out)

    assert out.shape == (B, NUM_ACTIONS, BSP_K), out.shape
    assert bool(jnp.all(jnp.isfinite(out)))

    # Tolerance-based validation against a pure-JAX reference (bf16 operand
    # rounding matched, so differences are accumulation-order noise).
    ref = bspdqn_reference(x, params, PRIOR_BETA)
    err = float(jnp.max(jnp.abs(out - ref)))
    scale = float(jnp.max(jnp.abs(ref)))
    assert err <= 2e-2 * scale + 1e-3, (err, scale)

    print("KERNEL_OK")
</pallas_src>

<mosaic_0001>
module attributes {stable_mosaic.version = 11 : i64} {
  func.func @_conv1_kernel(%arg0: i32, %arg1: memref<128x256xbf16, #tpu.memory_space<vmem>>, %arg2: memref<256x64xbf16, #tpu.memory_space<vmem>>, %arg3: memref<1x64xf32, #tpu.memory_space<vmem>>, %arg4: memref<128x64xbf16, #tpu.memory_space<vmem>>) attributes {dimension_semantics = [#tpu.dimension_semantics<parallel>], iteration_bounds = array<i64: 1>, scalar_prefetch = 0 : i64, scratch_operands = 0 : i64, tpu.core_type = #tpu.core_type<tc>, window_params = [{transform_indices = @transform_0, window_bounds = array<i64: 128, 256>}, {pipeline_mode = #tpu.pipeline_mode<synchronous>, transform_indices = @transform_1, window_bounds = array<i64: 256, 64>}, {pipeline_mode = #tpu.pipeline_mode<synchronous>, transform_indices = @transform_2, window_bounds = array<i64: 1, 64>}, {transform_indices = @transform_3, window_bounds = array<i64: 128, 64>}]} {
    %c0 = arith.constant 0 : index
    %c0_0 = arith.constant 0 : index
    %0 = vector.load %arg1[%c0, %c0_0] : memref<128x256xbf16, #tpu.memory_space<vmem>>, vector<128x256xbf16>
    %c0_1 = arith.constant 0 : index
    %c0_2 = arith.constant 0 : index
    %1 = vector.load %arg2[%c0_1, %c0_2] : memref<256x64xbf16, #tpu.memory_space<vmem>>, vector<256x64xbf16>
    %cst = arith.constant dense<0.000000e+00> : vector<128x64xf32>
    %2 = tpu.matmul %0, %1, %cst {dimension_numbers = #tpu.dot_dimension_numbers<[1], [0], [0], [1], [0, 0, 1, 1], [], []>} : vector<128x256xbf16>, vector<256x64xbf16>, vector<128x64xf32> -> vector<128x64xf32>
    %c0_3 = arith.constant 0 : index
    %c0_4 = arith.constant 0 : index
    %3 = vector.load %arg3[%c0_3, %c0_4] : memref<1x64xf32, #tpu.memory_space<vmem>>, vector<1x64xf32>
    %4 = vector.broadcast %3 : vector<1x64xf32> to vector<128x64xf32>
    %5 = arith.addf %2, %4 : vector<128x64xf32>
    %cst_5 = arith.constant 0.000000e+00 : f32
    %6 = vector.broadcast %cst_5 : f32 to vector<128x64xf32>
    %7 = arith.maximumf %5, %6 : vector<128x64xf32>
    %8 = arith.truncf %7 : vector<128x64xf32> to vector<128x64xbf16>
    %c0_6 = arith.constant 0 : index
    %c0_7 = arith.constant 0 : index
    %9 = vector.load %arg4[%c0_6, %c0_7] : memref<128x64xbf16, #tpu.memory_space<vmem>>, vector<128x64xbf16>
    tpu.vector_store %arg4[%c0_6, %c0_7], %8 {strides = array<i32>} : memref<128x64xbf16, #tpu.memory_space<vmem>>, vector<128x64xbf16>,
    return
  }
  func.func @transform_0(%arg0: i32) -> (i32, i32) {
    %c0_i32 = arith.constant 0 : i32
    %c0_i32_0 = arith.constant 0 : i32
    return %arg0, %c0_i32 : i32, i32
  }
  func.func @transform_1(%arg0: i32) -> (i32, i32) {
    %c0_i32 = arith.constant 0 : i32
    %c0_i32_0 = arith.constant 0 : i32
    %c0_i32_1 = arith.constant 0 : i32
    return %c0_i32, %c0_i32_0 : i32, i32
  }
  func.func @transform_2(%arg0: i32) -> (i32, i32) {
    %c0_i32 = arith.constant 0 : i32
    %c0_i32_0 = arith.constant 0 : i32
    %c0_i32_1 = arith.constant 0 : i32
    return %c0_i32, %c0_i32_0 : i32, i32
  }
  func.func @transform_3(%arg0: i32) -> (i32, i32) {
    %c0_i32 = arith.constant 0 : i32
    %c0_i32_0 = arith.constant 0 : i32
    return %arg0, %c0_i32 : i32, i32
  }
}

module attributes {stable_mosaic.version = 11 : i64} {
  func.func @_fused_conv23_heads_kernel(%arg0: memref<18x1024xbf16, #tpu.memory_space<vmem>>, %arg1: memref<1024x128xbf16, #tpu.memory_space<vmem>>, %arg2: memref<1x128xf32, #tpu.memory_space<vmem>>, %arg3: memref<1152x128xbf16, #tpu.memory_space<vmem>>, %arg4: memref<1x128xf32, #tpu.memory_space<vmem>>, %arg5: memref<128x3072xbf16, #tpu.memory_space<vmem>>, %arg6: memref<1x3072xf32, #tpu.memory_space<vmem>>, %arg7: memref<1536x128xbf16, #tpu.memory_space<vmem>>, %arg8: memref<1536x128xbf16, #tpu.memory_space<vmem>>, %arg9: memref<1x128xf32, #tpu.memory_space<vmem>>, %arg10: memref<1x128xf32, #tpu.memory_space<vmem>>, %arg11: memref<2x128xf32, #tpu.memory_space<vmem>>) attributes {dimension_semantics = [], scalar_prefetch = 0 : i64, scratch_operands = 0 : i64, tpu.core_type = #tpu.core_type<tc>} {
    %c0 = arith.constant 0 : index
    %c0_0 = arith.constant 0 : index
    %0 = vector.load %arg0[%c0, %c0_0] : memref<18x1024xbf16, #tpu.memory_space<vmem>>, vector<18x1024xbf16>
    %c0_1 = arith.constant 0 : index
    %c0_2 = arith.constant 0 : index
    %1 = vector.load %arg1[%c0_1, %c0_2] : memref<1024x128xbf16, #tpu.memory_space<vmem>>, vector<1024x128xbf16>
    %cst = arith.constant dense<0.000000e+00> : vector<18x128xf32>
    %2 = tpu.matmul %0, %1, %cst {dimension_numbers = #tpu.dot_dimension_numbers<[1], [0], [0], [1], [0, 0, 1, 1], [], []>} : vector<18x1024xbf16>, vector<1024x128xbf16>, vector<18x128xf32> -> vector<18x128xf32>
    %c0_3 = arith.constant 0 : index
    %c0_4 = arith.constant 0 : index
    %3 = vector.load %arg2[%c0_3, %c0_4] : memref<1x128xf32, #tpu.memory_space<vmem>>, vector<1x128xf32>
    %4 = vector.broadcast %3 : vector<1x128xf32> to vector<18x128xf32>
    %5 = arith.addf %2, %4 : vector<18x128xf32>
    %cst_5 = arith.constant 0.000000e+00 : f32
    %6 = vector.broadcast %cst_5 : f32 to vector<18x128xf32>
    %7 = arith.maximumf %5, %6 : vector<18x128xf32>
    %cst_6 = arith.constant 0.000000e+00 : f32
    %8 = vector.broadcast %cst_6 : f32 to vector<2x128xf32>
    %9 = vector.extract_strided_slice %7 {offsets = [0, 0], sizes = [2, 128], strides = [1, 1]} : vector<18x128xf32> to vector<2x128xf32>
    %10 = arith.truncf %9 : vector<2x128xf32> to vector<2x128xbf16>
    %c0_7 = arith.constant 0 : index
    %c0_8 = arith.constant 0 : index
    %11 = vector.load %arg3[%c0_7, %c0_8] : memref<1152x128xbf16, #tpu.memory_space<vmem>>, vector<128x128xbf16>
    %cst_9 = arith.constant dense<0.000000e+00> : vector<2x128xf32>
    %12 = tpu.matmul %10, %11, %cst_9 {dimension_numbers = #tpu.dot_dimension_numbers<[1], [0], [0], [1], [0, 0, 1, 1], [], []>} : vector<2x128xbf16>, vector<128x128xbf16>, vector<2x128xf32> -> vector<2x128xf32>
    %13 = arith.addf %8, %12 : vector<2x128xf32>
    %14 = vector.extract_strided_slice %7 {offsets = [2, 0], sizes = [2, 128], strides = [1, 1]} : vector<18x128xf32> to vector<2x128xf32>
    %15 = arith.truncf %14 : vector<2x128xf32> to vector<2x128xbf16>
    %c128 = arith.constant 128 : index
    %c0_10 = arith.constant 0 : index
    %16 = vector.load %arg3[%c128, %c0_10] : memref<1152x128xbf16, #tpu.memory_space<vmem>>, vector<128x128xbf16>
    %cst_11 = arith.constant dense<0.000000e+00> : vector<2x128xf32>
    %17 = tpu.matmul %15, %16, %cst_11 {dimension_numbers = #tpu.dot_dimension_numbers<[1], [0], [0], [1], [0, 0, 1, 1], [], []>} : vector<2x128xbf16>, vector<128x128xbf16>, vector<2x128xf32> -> vector<2x128xf32>
    %18 = arith.addf %13, %17 : vector<2x128xf32>
    %19 = vector.extract_strided_slice %7 {offsets = [4, 0], sizes = [2, 128], strides = [1, 1]} : vector<18x128xf32> to vector<2x128xf32>
    %20 = arith.truncf %19 : vector<2x128xf32> to vector<2x128xbf16>
    %c256 = arith.constant 256 : index
    %c0_12 = arith.constant 0 : index
    %21 = vector.load %arg3[%c256, %c0_12] : memref<1152x128xbf16, #tpu.memory_space<vmem>>, vector<128x128xbf16>
    %cst_13 = arith.constant dense<0.000000e+00> : vector<2x128xf32>
    %22 = tpu.matmul %20, %21, %cst_13 {dimension_numbers = #tpu.dot_dimension_numbers<[1], [0], [0], [1], [0, 0, 1, 1], [], []>} : vector<2x128xbf16>, vector<128x128xbf16>, vector<2x128xf32> -> vector<2x128xf32>
    %23 = arith.addf %18, %22 : vector<2x128xf32>
    %24 = vector.extract_strided_slice %7 {offsets = [6, 0], sizes = [2, 128], strides = [1, 1]} : vector<18x128xf32> to vector<2x128xf32>
    %25 = arith.truncf %24 : vector<2x128xf32> to vector<2x128xbf16>
    %c384 = arith.constant 384 : index
    %c0_14 = arith.constant 0 : index
    %26 = vector.load %arg3[%c384, %c0_14] : memref<1152x128xbf16, #tpu.memory_space<vmem>>, vector<128x128xbf16>
    %cst_15 = arith.constant dense<0.000000e+00> : vector<2x128xf32>
    %27 = tpu.matmul %25, %26, %cst_15 {dimension_numbers = #tpu.dot_dimension_numbers<[1], [0], [0], [1], [0, 0, 1, 1], [], []>} : vector<2x128xbf16>, vector<128x128xbf16>, vector<2x128xf32> -> vector<2x128xf32>
    %28 = arith.addf %23, %27 : vector<2x128xf32>
    %29 = vector.extract_strided_slice %7 {offsets = [8, 0], sizes = [2, 128], strides = [1, 1]} : vector<18x128xf32> to vector<2x128xf32>
    %30 = arith.truncf %29 : vector<2x128xf32> to vector<2x128xbf16>
    %c512 = arith.constant 512 : index
    %c0_16 = arith.constant 0 : index
    %31 = vector.load %arg3[%c512, %c0_16] : memref<1152x128xbf16, #tpu.memory_space<vmem>>, vector<128x128xbf16>
    %cst_17 = arith.constant dense<0.000000e+00> : vector<2x128xf32>
    %32 = tpu.matmul %30, %31, %cst_17 {dimension_numbers = #tpu.dot_dimension_numbers<[1], [0], [0], [1], [0, 0, 1, 1], [], []>} : vector<2x128xbf16>, vector<128x128xbf16>, vector<2x128xf32> -> vector<2x128xf32>
    %33 = arith.addf %28, %32 : vector<2x128xf32>
    %34 = vector.extract_strided_slice %7 {offsets = [10, 0], sizes = [2, 128], strides = [1, 1]} : vector<18x128xf32> to vector<2x128xf32>
    %35 = arith.truncf %34 : vector<2x128xf32> to vector<2x128xbf16>
    %c640 = arith.constant 640 : index
    %c0_18 = arith.constant 0 : index
    %36 = vector.load %arg3[%c640, %c0_18] : memref<1152x128xbf16, #tpu.memory_space<vmem>>, vector<128x128xbf16>
    %cst_19 = arith.constant dense<0.000000e+00> : vector<2x128xf32>
    %37 = tpu.matmul %35, %36, %cst_19 {dimension_numbers = #tpu.dot_dimension_numbers<[1], [0], [0], [1], [0, 0, 1, 1], [], []>} : vector<2x128xbf16>, vector<128x128xbf16>, vector<2x128xf32> -> vector<2x128xf32>
    %38 = arith.addf %33, %37 : vector<2x128xf32>
    %39 = vector.extract_strided_slice %7 {offsets = [12, 0], sizes = [2, 128], strides = [1, 1]} : vector<18x128xf32> to vector<2x128xf32>
    %40 = arith.truncf %39 : vector<2x128xf32> to vector<2x128xbf16>
    %c768 = arith.constant 768 : index
    %c0_20 = arith.constant 0 : index
    %41 = vector.load %arg3[%c768, %c0_20] : memref<1152x128xbf16, #tpu.memory_space<vmem>>, vector<128x128xbf16>
    %cst_21 = arith.constant dense<0.000000e+00> : vector<2x128xf32>
    %42 = tpu.matmul %40, %41, %cst_21 {dimension_numbers = #tpu.dot_dimension_numbers<[1], [0], [0], [1], [0, 0, 1, 1], [], []>} : vector<2x128xbf16>, vector<128x128xbf16>, vector<2x128xf32> -> vector<2x128xf32>
    %43 = arith.addf %38, %42 : vector<2x128xf32>
    %44 = vector.extract_strided_slice %7 {offsets = [14, 0], sizes = [2, 128], strides = [1, 1]} : vector<18x128xf32> to vector<2x128xf32>
    %45 = arith.truncf %44 : vector<2x128xf32> to vector<2x128xbf16>
    %c896 = arith.constant 896 : index
    %c0_22 = arith.constant 0 : index
    %46 = vector.load %arg3[%c896, %c0_22] : memref<1152x128xbf16, #tpu.memory_space<vmem>>, vector<128x128xbf16>
    %cst_23 = arith.constant dense<0.000000e+00> : vector<2x128xf32>
    %47 = tpu.matmul %45, %46, %cst_23 {dimension_numbers = #tpu.dot_dimension_numbers<[1], [0], [0], [1], [0, 0, 1, 1], [], []>} : vector<2x128xbf16>, vector<128x128xbf16>, vector<2x128xf32> -> vector<2x128xf32>
    %48 = arith.addf %43, %47 : vector<2x128xf32>
    %49 = vector.extract_strided_slice %7 {offsets = [16, 0], sizes = [2, 128], strides = [1, 1]} : vector<18x128xf32> to vector<2x128xf32>
    %50 = arith.truncf %49 : vector<2x128xf32> to vector<2x128xbf16>
    %c1024 = arith.constant 1024 : index
    %c0_24 = arith.constant 0 : index
    %51 = vector.load %arg3[%c1024, %c0_24] : memref<1152x128xbf16, #tpu.memory_space<vmem>>, vector<128x128xbf16>
    %cst_25 = arith.constant dense<0.000000e+00> : vector<2x128xf32>
    %52 = tpu.matmul %50, %51, %cst_25 {dimension_numbers = #tpu.dot_dimension_numbers<[1], [0], [0], [1], [0, 0, 1, 1], [], []>} : vector<2x128xbf16>, vector<128x128xbf16>, vector<2x128xf32> -> vector<2x128xf32>
    %53 = arith.addf %48, %52 : vector<2x128xf32>
    %c0_26 = arith.constant 0 : index
    %c0_27 = arith.constant 0 : index
    %54 = vector.load %arg4[%c0_26, %c0_27] : memref<1x128xf32, #tpu.memory_space<vmem>>, vector<1x128xf32>
    %55 = vector.broadcast %54 : vector<1x128xf32> to vector<2x128xf32>
    %56 = arith.addf %53, %55 : vector<2x128xf32>
    %cst_28 = arith.constant 0.000000e+00 : f32
    %57 = vector.broadcast %cst_28 : f32 to vector<2x128xf32>
    %58 = arith.maximumf %56, %57 : vector<2x128xf32>
    %59 = arith.truncf %58 : vector<2x128xf32> to vector<2x128xbf16>
    %c0_29 = arith.constant 0 : index
    %c0_30 = arith.constant 0 : index
    %60 = vector.load %arg5[%c0_29, %c0_30] : memref<128x3072xbf16, #tpu.memory_space<vmem>>, vector<128x3072xbf16>
    %cst_31 = arith.constant dense<0.000000e+00> : vector<2x3072xf32>
    %61 = tpu.matmul %59, %60, %cst_31 {dimension_numbers = #tpu.dot_dimension_numbers<[1], [0], [0], [1], [0, 0, 1, 1], [], []>} : vector<2x128xbf16>, vector<128x3072xbf16>, vector<2x3072xf32> -> vector<2x3072xf32>
    %c0_32 = arith.constant 0 : index
    %c0_33 = arith.constant 0 : index
    %62 = vector.load %arg6[%c0_32, %c0_33] : memref<1x3072xf32, #tpu.memory_space<vmem>>, vector<1x3072xf32>
    %63 = vector.broadcast %62 : vector<1x3072xf32> to vector<2x3072xf32>
    %64 = arith.addf %61, %63 : vector<2x3072xf32>
    %cst_34 = arith.constant 0.000000e+00 : f32
    %65 = vector.broadcast %cst_34 : f32 to vector<2x3072xf32>
    %66 = arith.maximumf %64, %65 : vector<2x3072xf32>
    %67 = arith.truncf %66 : vector<2x3072xf32> to vector<2x3072xbf16>
    %68 = vector.extract_strided_slice %67 {offsets = [0, 0], sizes = [2, 1536], strides = [1, 1]} : vector<2x3072xbf16> to vector<2x1536xbf16>
    %c0_35 = arith.constant 0 : index
    %c0_36 = arith.constant 0 : index
    %69 = vector.load %arg7[%c0_35, %c0_36] : memref<1536x128xbf16, #tpu.memory_space<vmem>>, vector<1536x128xbf16>
    %cst_37 = arith.constant dense<0.000000e+00> : vector<2x128xf32>
    %70 = tpu.matmul %68, %69, %cst_37 {dimension_numbers = #tpu.dot_dimension_numbers<[1], [0], [0], [1], [0, 0, 1, 1], [], []>} : vector<2x1536xbf16>, vector<1536x128xbf16>, vector<2x128xf32> -> vector<2x128xf32>
    %c0_38 = arith.constant 0 : index
    %c0_39 = arith.constant 0 : index
    %71 = vector.load %arg9[%c0_38, %c0_39] : memref<1x128xf32, #tpu.memory_space<vmem>>, vector<1x128xf32>
    %72 = vector.broadcast %71 : vector<1x128xf32> to vector<2x128xf32>
    %73 = arith.addf %70, %72 : vector<2x128xf32>
    %74 = vector.extract_strided_slice %67 {offsets = [0, 1536], sizes = [2, 1536], strides = [1, 1]} : vector<2x3072xbf16> to vector<2x1536xbf16>
    %c0_40 = arith.constant 0 : index
    %c0_41 = arith.constant 0 : index
    %75 = vector.load %arg8[%c0_40, %c0_41] : memref<1536x128xbf16, #tpu.memory_space<vmem>>, vector<1536x128xbf16>
    %cst_42 = arith.constant dense<0.000000e+00> : vector<2x128xf32>
    %76 = tpu.matmul %74, %75, %cst_42 {dimension_numbers = #tpu.dot_dimension_numbers<[1], [0], [0], [1], [0, 0, 1, 1], [], []>} : vector<2x1536xbf16>, vector<1536x128xbf16>, vector<2x128xf32> -> vector<2x128xf32>
    %c0_43 = arith.constant 0 : index
    %c0_44 = arith.constant 0 : index
    %77 = vector.load %arg10[%c0_43, %c0_44] : memref<1x128xf32, #tpu.memory_space<vmem>>, vector<1x128xf32>
    %78 = vector.broadcast %77 : vector<1x128xf32> to vector<2x128xf32>
    %79 = arith.addf %76, %78 : vector<2x128xf32>
    %cst_45 = arith.constant 3.000000e+00 : f32
    %80 = vector.broadcast %cst_45 : f32 to vector<2x128xf32>
    %81 = arith.mulf %80, %79 : vector<2x128xf32>
    %82 = arith.addf %73, %81 : vector<2x128xf32>
    %c0_46 = arith.constant 0 : index
    %c0_47 = arith.constant 0 : index
    %83 = vector.load %arg11[%c0_46, %c0_47] : memref<2x128xf32, #tpu.memory_space<vmem>>, vector<2x128xf32>
    tpu.vector_store %arg11[%c0_46, %c0_47], %82 {strides = array<i32>} : memref<2x128xf32, #tpu.memory_space<vmem>>, vector<2x128xf32>,
    return
  }
}

</mosaic_0001>

<bundles_post_ra>
// kernel: bspdqn_forward.2
= control target key start
LH: loop header
LB: loop body
LE: loop exit
PB: predicated region body
PF: predicated region fallthrough
CT: control target
= control target key end

     0   :  { %vm423_vm0 = vcmask 519168   ;;  %s830_s1 = inlined_call_operand.vmem [shape: bf16[256,64], index: 1, kind: input, shape index: {}]   ;;  %s831_s0 = inlined_call_operand.vmem [shape: bf16[128,256], index: 0, kind: input, shape index: {}]   ;;  %s832_s2 = inlined_call_operand.vmem [shape: f32[1,64], index: 2, kind: input, shape index: {}]   ;;  %s833_s3 = inlined_call_operand.vmem [shape: bf16[128,64], index: 3, kind: output, shape index: {}]  }
   0x1   :  { %v589_v0 = vld [vmem:[%s830_s1 + $0x78] sm:$0xff]   ;;  %v591_v2 = vld [vmem:[%s830_s1 + $0x70] sm:$0xff]   ;;  %v593_v4 = vld [vmem:[%s830_s1 + $0x68] sm:$0xff]  }
   0x2   :  { %v590_v1 = vld [vmem:[%s830_s1 + $0x38] sm:$0xff]   ;;  %509 = vmatprep.subr.bf16.mxu0 %v589_v0  ;;  %573 = vmatprep.subr.bf16.mxu1 %v589_v0  ;;  %v592_v3 = vld [vmem:[%s830_s1 + $0x30] sm:$0xff]   ;;  %v594_v5 = vld [vmem:[%s830_s1 + $0x28] sm:$0xff]  }
   0x3   :  { %510 = vmatpush3.bf16.msra.mxu0 %v590_v1  ;;  %581 = vmatpush3.bf16.msra.mxu1 %v590_v1  ;;  %v595_v6 = vld [vmem:[%s830_s1 + $0x60] sm:$0xff]   ;;  %v597_v8 = vld [vmem:[%s830_s1 + $0x58] sm:$0xff]   ;;  %v599_v10 = vld [vmem:[%s830_s1 + $0x50] sm:$0xff]  }
   0x4   :  { %511 = vmatprep.subr.bf16.mxu0 %v591_v2  ;;  %574 = vmatprep.subr.bf16.mxu1 %v591_v2  ;;  %v596_v7 = vld [vmem:[%s830_s1 + $0x20] sm:$0xff]   ;;  %v598_v9 = vld [vmem:[%s830_s1 + $0x18] sm:$0xff]   ;;  %v600_v13 = vld [vmem:[%s830_s1 + $0x10] sm:$0xff]  }
   0x5   :  { %v607_v11 = vld [vmem:[%s831_s0 + $0x4] ss:$8 sps:$4 sm:$0xff]   ;;  %v605_v18 = vld [vmem:[%s831_s0] ss:$8 sps:$4 sm:$0xff]   ;;  %v611_v20 = vld [vmem:[%s831_s0 + $0x14] ss:$8 sps:$4 sm:$0xff]  }
   0x6   :  { %v610_v12 = vld [vmem:[%s831_s0 + $0x44] ss:$8 sps:$4 sm:$0xff]   ;;  %278 = vmatprep.mubr.bf16.mxu0 %v607_v11  ;;  %v608_v19 = vld [vmem:[%s831_s0 + $0x40] ss:$8 sps:$4 sm:$0xff]   ;;  %v613_v21 = vld [vmem:[%s831_s0 + $0x54] ss:$8 sps:$4 sm:$0xff]  }
   0x7   :  { %512 = vmatpush3.bf16.msra.mxu0 %v592_v3  ;;  %582 = vmatpush3.bf16.msra.mxu1 %v592_v3  ;;  %v601_v14 = vld [vmem:[%s830_s1 + $0x48] sm:$0xff]   ;;  %v603_v16 = vld [vmem:[%s830_s1 + $0x40] sm:$0xff]   ;;  %v615_v22 = vld [vmem:[%s831_s0 + $0x10] ss:$8 sps:$4 sm:$0xff]  }
   0x8   :  { %513 = vmatprep.subr.bf16.mxu0 %v593_v4  ;;  %575 = vmatprep.subr.bf16.mxu1 %v593_v4  ;;  %v602_v15 = vld [vmem:[%s830_s1 + $0x8] sm:$0xff]   ;;  %v604_v17 = vld [vmem:[%s830_s1] sm:$0xff]   ;;  %v616_v23 = vld [vmem:[%s831_s0 + $0x50] ss:$8 sps:$4 sm:$0xff]  }
   0x9   :  { %310 = vmatprep.mubr.bf16.mxu1 %v610_v12  ;;  %v617_v24 = vld [vmem:[%s831_s0 + $0x24] ss:$8 sps:$4 sm:$0xff]   ;;  %v621_v26 = vld [vmem:[%s831_s0 + $0x20] ss:$8 sps:$4 sm:$0xff]   ;;  %v623_v28 = vld [vmem:[%s831_s0 + $0x34] ss:$8 sps:$4 sm:$0xff]  }
   0xa   :  { %v619_v25 = vld [vmem:[%s831_s0 + $0x64] ss:$8 sps:$4 sm:$0xff]   ;;  %v622_v27 = vld [vmem:[%s831_s0 + $0x60] ss:$8 sps:$4 sm:$0xff]   ;;  %v625_v29 = vld [vmem:[%s831_s0 + $0x74] ss:$8 sps:$4 sm:$0xff]  }
   0xb   :  { %514 = vmatpush3.bf16.msra.mxu0 %v594_v5  ;;  %583 = vmatpush3.bf16.msra.mxu1 %v594_v5  ;;  %v627_v30 = vld [vmem:[%s831_s0 + $0x30] ss:$8 sps:$4 sm:$0xff]   ;;  %v748_v34 = vld [vmem:[%s832_s2] ss:$0 sm:$0xff] }
   0xc   :  { %515 = vmatprep.subr.bf16.mxu0 %v595_v6  ;;  %576 = vmatprep.subr.bf16.mxu1 %v595_v6  ;;  %v628_v31 = vld [vmem:[%s831_s0 + $0x70] ss:$8 sps:$4 sm:$0xff]  }
   0xf   :  { %516 = vmatpush3.bf16.msra.mxu0 %v596_v7  ;;  %584 = vmatpush3.bf16.msra.mxu1 %v596_v7 }
  0x10   :  { %517 = vmatprep.subr.bf16.mxu0 %v597_v8  ;;  %577 = vmatprep.subr.bf16.mxu1 %v597_v8 }
  0x13   :  { %518 = vmatpush3.bf16.msra.mxu0 %v598_v9  ;;  %585 = vmatpush3.bf16.msra.mxu1 %v598_v9 }
  0x14   :  { %519 = vmatprep.subr.bf16.mxu0 %v599_v10  ;;  %578 = vmatprep.subr.bf16.mxu1 %v599_v10 }
  0x17   :  { %520 = vmatpush3.bf16.msra.mxu0 %v600_v13  ;;  %586 = vmatpush3.bf16.msra.mxu1 %v600_v13 }
  0x18   :  { %521 = vmatprep.subr.bf16.mxu0 %v601_v14  ;;  %579 = vmatprep.subr.bf16.mxu1 %v601_v14 }
  0x1b   :  { %522 = vmatpush3.bf16.msra.mxu0 %v602_v15  ;;  %587 = vmatpush3.bf16.msra.mxu1 %v602_v15 }
  0x1c   :  { %523 = vmatprep.subr.bf16.mxu0 %v603_v16  ;;  %580 = vmatprep.subr.bf16.mxu1 %v603_v16 }
  0x1f   :  { %524 = vmatpush3.bf16.msra.mxu0 %v604_v17  ;;  %588 = vmatpush3.bf16.msra.mxu1 %v604_v17 }
  0x22   :  { %279 = vmatmul.mubr.bf16.vlgmr.msra.gmra.mxu0 %v605_v18  ;;  %311 = vmatmul.mubr.bf16.vlgmr.msra.gmra.mxu1 %v608_v19 }
  0x23   :  { %286 = vmatprep.mubr.bf16.mxu0 %v611_v20  ;;  %318 = vmatprep.mubr.bf16.mxu1 %v613_v21 }
  0x2a   :  { %287 = vmatmul.mubr.bf16.gmra.mxu0 %v615_v22  ;;  %319 = vmatmul.mubr.bf16.gmra.mxu1 %v616_v23 }
  0x2b   :  { %294 = vmatprep.mubr.bf16.mxu0 %v617_v24  ;;  %326 = vmatprep.mubr.bf16.mxu1 %v619_v25 }
  0x32   :  { %295 = vmatmul.mubr.bf16.gmra.mxu0 %v621_v26  ;;  %327 = vmatmul.mubr.bf16.gmra.mxu1 %v622_v27 }
  0x33   :  { %302 = vmatprep.mubr.bf16.mxu0 %v623_v28  ;;  %334 = vmatprep.mubr.bf16.mxu1 %v625_v29 }
  0x3a   :  { %303 = vmatmul.mubr.bf16.gmra.mxu0 %v627_v30  ;;  %335 = vmatmul.mubr.bf16.gmra.mxu1 %v628_v31 }
  0xe2   :  { %v525_v32 = vpop.f32.mrf.mxu0  ;;  %v549_v33 = vpop.f32.mrf.mxu1 }
  0xe4   :  { %v526_v35 = vpop.f32.mrf.mxu0  ;;  %v550_v36 = vpop.f32.mrf.mxu1 }
  0xe5   :  { %v527_v37 = vadd.f32 %v526_v35, %v525_v32  ;;  %v551_v38 = vadd.f32 %v550_v36, %v549_v33 }
  0xe6   :  { %v528_v39 = vpop.f32.mrf.mxu0  ;;  %v552_v40 = vpop.f32.mrf.mxu1 }
  0xe7   :  { %v281_v41 = vadd.f32 %v527_v37, %v748_v34  ;;  %v313_v42 = vadd.f32 %v551_v38, %v748_v34 }
  0xe8   :  { %v529_v43 = vpop.f32.mrf.mxu0  ;;  %v553_v44 = vpop.f32.mrf.mxu1 }
  0xe9   :  { %v343_v45 = vmax.f32 %v281_v41, 0.0  ;;  %v351_v46 = vmax.f32 %v313_v42, 0.0  ;;  %v530_v47 = vadd.f32 %v529_v43, %v528_v39  ;;  %v554_v48 = vadd.f32 %v553_v44, %v552_v40 }
  0xea   :  { %v531_v49 = vpop.f32.mrf.mxu0  ;;  %v555_v50 = vpop.f32.mrf.mxu1 }
  0xeb   :  { %v493_v51 = vpack.c.bf16 %v343_v45, %v343_v45  ;;  %v501_v52 = vpack.c.bf16 %v351_v46, %v351_v46  ;;  %v284_v53 = vadd.f32 %v530_v47, %v748_v34  ;;  %v316_v54 = vadd.f32 %v554_v48, %v748_v34 }
  0xec   :  { %v532_v55 = vpop.f32.mrf.mxu0  ;;  %v556_v56 = vpop.f32.mrf.mxu1 }
  0xed   :  { %424 = vst.msk [vmem:[%s833_s3] sm:$0xf] %vm423_vm0, %v493_v51  ;;  %432 = vst.msk [vmem:[%s833_s3 + $0x20] sm:$0xf] %vm423_vm0, %v501_v52  ;;  %v344_v57 = vmax.f32 %v284_v53, 0.0  ;;  %v352_v58 = vmax.f32 %v316_v54, 0.0  ;;  %v533_v59 = vadd.f32 %v532_v55, %v531_v49  ;;  %v557_v60 = vadd.f32 %v556_v56, %v555_v50 }
  0xee   :  { %v534_v61 = vpop.f32.mrf.mxu0  ;;  %v558_v62 = vpop.f32.mrf.mxu1 }
  0xef   :  { %v494_v63 = vpack.c.bf16 %v344_v57, %v344_v57  ;;  %v502_v0 = vpack.c.bf16 %v352_v58, %v352_v58  ;;  %v289_v1 = vadd.f32 %v533_v59, %v748_v34  ;;  %v321_v2 = vadd.f32 %v557_v60, %v748_v34 }
  0xf0   :  { %v535_v3 = vpop.f32.mrf.mxu0  ;;  %v559_v4 = vpop.f32.mrf.mxu1 }
  0xf1   :  { %425 = vst.msk [vmem:[%s833_s3 + $0x4] sm:$0xf] %vm423_vm0, %v494_v63  ;;  %433 = vst.msk [vmem:[%s833_s3 + $0x24] sm:$0xf] %vm423_vm0, %v502_v0  ;;  %v345_v5 = vmax.f32 %v289_v1, 0.0  ;;  %v353_v6 = vmax.f32 %v321_v2, 0.0  ;;  %v536_v7 = vadd.f32 %v535_v3, %v534_v61  ;;  %v560_v8 = vadd.f32 %v559_v4, %v558_v62 }
  0xf2   :  { %v537_v9 = vpop.f32.mrf.mxu0  ;;  %v561_v10 = vpop.f32.mrf.mxu1 }
  0xf3   :  { %v495_v11 = vpack.c.bf16 %v345_v5, %v345_v5  ;;  %v503_v12 = vpack.c.bf16 %v353_v6, %v353_v6  ;;  %v292_v13 = vadd.f32 %v536_v7, %v748_v34  ;;  %v324_v14 = vadd.f32 %v560_v8, %v748_v34 }
  0xf4   :  { %v538_v15 = vpop.f32.mrf.mxu0  ;;  %v562_v16 = vpop.f32.mrf.mxu1 }
  0xf5   :  { %426 = vst.msk [vmem:[%s833_s3 + $0x8] sm:$0xf] %vm423_vm0, %v495_v11  ;;  %434 = vst.msk [vmem:[%s833_s3 + $0x28] sm:$0xf] %vm423_vm0, %v503_v12  ;;  %v346_v17 = vmax.f32 %v292_v13, 0.0  ;;  %v354_v18 = vmax.f32 %v324_v14, 0.0  ;;  %v539_v19 = vadd.f32 %v538_v15, %v537_v9  ;;  %v563_v20 = vadd.f32 %v562_v16, %v561_v10 }
  0xf6   :  { %v540_v21 = vpop.f32.mrf.mxu0  ;;  %v564_v22 = vpop.f32.mrf.mxu1 }
  0xf7   :  { %v496_v23 = vpack.c.bf16 %v346_v17, %v346_v17  ;;  %v504_v24 = vpack.c.bf16 %v354_v18, %v354_v18  ;;  %v297_v25 = vadd.f32 %v539_v19, %v748_v34  ;;  %v329_v26 = vadd.f32 %v563_v20, %v748_v34 }
  0xf8   :  { %v541_v27 = vpop.f32.mrf.mxu0  ;;  %v565_v28 = vpop.f32.mrf.mxu1 }
  0xf9   :  { %427 = vst.msk [vmem:[%s833_s3 + $0xc] sm:$0xf] %vm423_vm0, %v496_v23  ;;  %435 = vst.msk [vmem:[%s833_s3 + $0x2c] sm:$0xf] %vm423_vm0, %v504_v24  ;;  %v347_v29 = vmax.f32 %v297_v25, 0.0  ;;  %v355_v30 = vmax.f32 %v329_v26, 0.0  ;;  %v542_v31 = vadd.f32 %v541_v27, %v540_v21  ;;  %v566_v32 = vadd.f32 %v565_v28, %v564_v22 }
  0xfa   :  { %v543_v33 = vpop.f32.mrf.mxu0  ;;  %v567_v35 = vpop.f32.mrf.mxu1 }
  0xfb   :  { %v497_v36 = vpack.c.bf16 %v347_v29, %v347_v29  ;;  %v505_v37 = vpack.c.bf16 %v355_v30, %v355_v30  ;;  %v300_v38 = vadd.f32 %v542_v31, %v748_v34  ;;  %v332_v39 = vadd.f32 %v566_v32, %v748_v34 }
  0xfc   :  { %v544_v40 = vpop.f32.mrf.mxu0  ;;  %v568_v41 = vpop.f32.mrf.mxu1 }
  0xfd   :  { %428 = vst.msk [vmem:[%s833_s3 + $0x10] sm:$0xf] %vm423_vm0, %v497_v36  ;;  %436 = vst.msk [vmem:[%s833_s3 + $0x30] sm:$0xf] %vm423_vm0, %v505_v37  ;;  %v348_v42 = vmax.f32 %v300_v38, 0.0  ;;  %v356_v43 = vmax.f32 %v332_v39, 0.0  ;;  %v545_v44 = vadd.f32 %v544_v40, %v543_v33  ;;  %v569_v45 = vadd.f32 %v568_v41, %v567_v35 }
  0xfe   :  { %v546_v46 = vpop.f32.mrf.mxu0  ;;  %v570_v47 = vpop.f32.mrf.mxu1 }
  0xff   :  { %v498_v48 = vpack.c.bf16 %v348_v42, %v348_v42  ;;  %v506_v49 = vpack.c.bf16 %v356_v43, %v356_v43  ;;  %v305_v50 = vadd.f32 %v545_v44, %v748_v34  ;;  %v337_v51 = vadd.f32 %v569_v45, %v748_v34 }
 0x100   :  { %v547_v52 = vpop.f32.mrf.mxu0  ;;  %v571_v53 = vpop.f32.mrf.mxu1 }
 0x101   :  { %429 = vst.msk [vmem:[%s833_s3 + $0x14] sm:$0xf] %vm423_vm0, %v498_v48  ;;  %437 = vst.msk [vmem:[%s833_s3 + $0x34] sm:$0xf] %vm423_vm0, %v506_v49  ;;  %v349_v54 = vmax.f32 %v305_v50, 0.0  ;;  %v357_v55 = vmax.f32 %v337_v51, 0.0  ;;  %v548_v56 = vadd.f32 %v547_v52, %v546_v46  ;;  %v572_v57 = vadd.f32 %v571_v53, %v570_v47 }
 0x103   :  { %v499_v58 = vpack.c.bf16 %v349_v54, %v349_v54  ;;  %v507_v59 = vpack.c.bf16 %v357_v55, %v357_v55  ;;  %v308_v60 = vadd.f32 %v548_v56, %v748_v34  ;;  %v340_v61 = vadd.f32 %v572_v57, %v748_v34 }
 0x105   :  { %430 = vst.msk [vmem:[%s833_s3 + $0x18] sm:$0xf] %vm423_vm0, %v499_v58  ;;  %438 = vst.msk [vmem:[%s833_s3 + $0x38] sm:$0xf] %vm423_vm0, %v507_v59  ;;  %v350_v62 = vmax.f32 %v308_v60, 0.0  ;;  %v358_v63 = vmax.f32 %v340_v61, 0.0 }
 0x107   :  { %v500_v0 = vpack.c.bf16 %v350_v62, %v350_v62  ;;  %v508_v1 = vpack.c.bf16 %v358_v63, %v358_v63 }
 0x109   :  { %431 = vst.msk [vmem:[%s833_s3 + $0x1c] sm:$0xf] %vm423_vm0, %v500_v0  ;;  %439 = vst.msk [vmem:[%s833_s3 + $0x3c] sm:$0xf] %vm423_vm0, %v508_v1 }

// kernel: bspdqn_forward.3
= control target key start
LH: loop header
LB: loop body
LE: loop exit
PB: predicated region body
PF: predicated region fallthrough
CT: control target
= control target key end

     0   :  { %vm7175_vm0 = vmmov 0   ;;  %s9095_s1 = inlined_call_operand.vmem [shape: bf16[1024,128], index: 1, kind: input, shape index: {}]   ;;  %s9096_s0 = inlined_call_operand.vmem [shape: bf16[18,1024], index: 0, kind: input, shape index: {}]   ;;  %s9097_s3 = inlined_call_operand.vmem [shape: bf16[1152,128], index: 3, kind: input, shape index: {}]   ;;  %s9098_s2 = inlined_call_operand.vmem [shape: f32[1,128], index: 2, kind: input, shape index: {}]   ;;  %s9099_s5 = inlined_call_operand.vmem [shape: bf16[128,3072], index: 5, kind: input, shape index: {}]   ;;  %s9100_s4 = inlined_call_operand.vmem [shape: f32[1,128], index: 4, kind: input, shape index: {}]   ;;  %s9101_s7 = inlined_call_operand.vmem [shape: bf16[1536,128], index: 7, kind: input, shape index: {}]   ;;  %s9102_s8 = inlined_call_operand.vmem [shape: bf16[1536,128], index: 8, kind: input, shape index: {}]   ;;  %s9103_s6 = inlined_call_operand.vmem [shape: f32[1,3072], index: 6, kind: input, shape index: {}]   ;;  %s9104_s9 = inlined_call_operand.vmem [shape: f32[1,128], index: 9, kind: input, shape index: {}]   ;;  %s9105_s10 = inlined_call_operand.vmem [shape: f32[1,128], index: 10, kind: input, shape index: {}]   ;;  %s9106_s11 = inlined_call_operand.vmem [shape: f32[2,128], index: 11, kind: output, shape index: {}]  }
   0x1   :  { %v6838_v0 = vld [vmem:[%s9095_s1 + $0x78] sm:$0xff]   ;;  %v6842_v4 = vld [vmem:[%s9095_s1 + $0x70] sm:$0xff]   ;;  %v6846_v8 = vld [vmem:[%s9095_s1 + $0x68] sm:$0xff]  }
   0x2   :  { %v6839_v1 = vld [vmem:[%s9095_s1 + $0xf8] sm:$0xff]   ;;  %6198 = vmatprep.subr.bf16.mxu0 %v6838_v0  ;;  %v6843_v5 = vld [vmem:[%s9095_s1 + $0xf0] sm:$0xff]   ;;  %v6847_v9 = vld [vmem:[%s9095_s1 + $0xe8] sm:$0xff]  }
   0x3   :  { %v6840_v2 = vld [vmem:[%s9095_s1 + $0x38] sm:$0xff]   ;;  %6226 = vmatprep.subr.bf16.mxu1 %v6839_v1  ;;  %v6844_v6 = vld [vmem:[%s9095_s1 + $0x30] sm:$0xff]   ;;  %v6848_v10 = vld [vmem:[%s9095_s1 + $0x28] sm:$0xff]  }
   0x4   :  { %v6841_v3 = vld [vmem:[%s9095_s1 + $0xb8] sm:$0xff]   ;;  %6199 = vmatpush3.bf16.msra.mxu0 %v6840_v2  ;;  %v6845_v7 = vld [vmem:[%s9095_s1 + $0xb0] sm:$0xff]   ;;  %v6849_v11 = vld [vmem:[%s9095_s1 + $0xa8] sm:$0xff]  }
   0x5   :  { %6227 = vmatpush3.bf16.msra.mxu1 %v6841_v3  ;;  %6200 = vmatprep.subr.bf16.mxu0 %v6842_v4  ;;  %v6850_v12 = vld [vmem:[%s9095_s1 + $0x60] sm:$0xff]   ;;  %v6854_v16 = vld [vmem:[%s9095_s1 + $0x58] sm:$0xff]   ;;  %v6858_v20 = vld [vmem:[%s9095_s1 + $0x50] sm:$0xff]  }
   0x6   :  { %6228 = vmatprep.subr.bf16.mxu1 %v6843_v5  ;;  %v6851_v13 = vld [vmem:[%s9095_s1 + $0xe0] sm:$0xff]   ;;  %v6855_v17 = vld [vmem:[%s9095_s1 + $0xd8] sm:$0xff]   ;;  %v6859_v21 = vld [vmem:[%s9095_s1 + $0xd0] sm:$0xff]  }
   0x7   :  { %v6852_v14 = vld [vmem:[%s9095_s1 + $0x20] sm:$0xff]   ;;  %v6856_v18 = vld [vmem:[%s9095_s1 + $0x18] sm:$0xff]   ;;  %v6860_v22 = vld [vmem:[%s9095_s1 + $0x10] sm:$0xff]  }
   0x8   :  { %6201 = vmatpush3.bf16.msra.mxu0 %v6844_v6  ;;  %v6853_v15 = vld [vmem:[%s9095_s1 + $0xa0] sm:$0xff]   ;;  %v6857_v19 = vld [vmem:[%s9095_s1 + $0x98] sm:$0xff]   ;;  %v6861_v23 = vld [vmem:[%s9095_s1 + $0x90] sm:$0xff]  }
   0x9   :  { %6229 = vmatpush3.bf16.msra.mxu1 %v6845_v7  ;;  %6202 = vmatprep.subr.bf16.mxu0 %v6846_v8  ;;  %v6862_v24 = vld [vmem:[%s9095_s1 + $0x48] sm:$0xff]   ;;  %v6866_v28 = vld [vmem:[%s9095_s1 + $0x40] sm:$0xff]   ;;  %v6870_v40 = vld [vmem:[%s9095_s1 + $0x178] sm:$0xff]  }
   0xa   :  { %6230 = vmatprep.subr.bf16.mxu1 %v6847_v9  ;;  %v6863_v25 = vld [vmem:[%s9095_s1 + $0xc8] sm:$0xff]   ;;  %v6867_v29 = vld [vmem:[%s9095_s1 + $0xc0] sm:$0xff]   ;;  %v6871_v41 = vld [vmem:[%s9095_s1 + $0x1f8] sm:$0xff]  }
   0xb   :  { %v6864_v26 = vld [vmem:[%s9095_s1 + $0x8] sm:$0xff]   ;;  %v6868_v30 = vld [vmem:[%s9095_s1] sm:$0xff]   ;;  %v6872_v42 = vld [vmem:[%s9095_s1 + $0x138] sm:$0xff]  }
   0xc   :  { %6203 = vmatpush3.bf16.msra.mxu0 %v6848_v10  ;;  %v6865_v27 = vld [vmem:[%s9095_s1 + $0x88] sm:$0xff]   ;;  %v6869_v31 = vld [vmem:[%s9095_s1 + $0x80] sm:$0xff]   ;;  %v6873_v43 = vld [vmem:[%s9095_s1 + $0x1b8] sm:$0xff]  }
   0xd   :  { %6231 = vmatpush3.bf16.msra.mxu1 %v6849_v11  ;;  %6204 = vmatprep.subr.bf16.mxu0 %v6850_v12  ;;  %v39_v32 = vld [vmem:[%s9096_s0] sm:$0xff]  ;;  %v40_v34 = vld [vmem:[%s9096_s0 + $0x8] sm:$0xff]  ;;  %v6874_v44 = vld [vmem:[%s9095_s1 + $0x170] sm:$0xff]  }
   0xe   :  { %6232 = vmatprep.subr.bf16.mxu1 %v6851_v13  ;;  %v43_v33 = vld [vmem:[%s9096_s0 + $0x20] sm:$0xff]  ;;  %v44_v37 = vld [vmem:[%s9096_s0 + $0x28] sm:$0xff]  ;;  %v6875_v45 = vld [vmem:[%s9095_s1 + $0x1f0] sm:$0xff]  }
   0xf   :  { %v5659_v35 = vcombine.low %v39_v32, %v43_v33  ;;  %v5660_v36 = vcombine.high %v39_v32, %v43_v33  ;;  %v5661_v38 = vcombine.low %v40_v34, %v44_v37  ;;  %v5662_v39 = vcombine.high %v40_v34, %v44_v37  ;;  %v6876_v46 = vld [vmem:[%s9095_s1 + $0x130] sm:$0xff]   ;;  %v6878_v48 = vld [vmem:[%s9095_s1 + $0x168] sm:$0xff]   ;;  %v6882_v52 = vld [vmem:[%s9095_s1 + $0x160] sm:$0xff]  }
  0x10   :  { %6205 = vmatpush3.bf16.msra.mxu0 %v6852_v14  ;;  %v6877_v47 = vld [vmem:[%s9095_s1 + $0x1b0] sm:$0xff]   ;;  %v6879_v49 = vld [vmem:[%s9095_s1 + $0x1e8] sm:$0xff]   ;;  %v6883_v53 = vld [vmem:[%s9095_s1 + $0x1e0] sm:$0xff]  }
  0x11   :  { %6233 = vmatpush3.bf16.msra.mxu1 %v6853_v15  ;;  %6206 = vmatprep.subr.bf16.mxu0 %v6854_v16  ;;  %v6880_v50 = vld [vmem:[%s9095_s1 + $0x128] sm:$0xff]   ;;  %v6884_v54 = vld [vmem:[%s9095_s1 + $0x120] sm:$0xff]   ;;  %v6886_v56 = vld [vmem:[%s9095_s1 + $0x158] sm:$0xff]  }
  0x12   :  { %6234 = vmatprep.subr.bf16.mxu1 %v6855_v17  ;;  %670 = vmatprep.mubr.bf16.mxu0 %v5660_v36  ;;  %v6881_v51 = vld [vmem:[%s9095_s1 + $0x1a8] sm:$0xff]   ;;  %v6885_v55 = vld [vmem:[%s9095_s1 + $0x1a0] sm:$0xff]   ;;  %v6887_v57 = vld [vmem:[%s9095_s1 + $0x1d8] sm:$0xff]  }
  0x13   :  { %718 = vmatprep.mubr.bf16.mxu1 %v5662_v39  ;;  %v47_v58 = vld [vmem:[%s9096_s0 + $0x40] sm:$0x11]  ;;  %v6889_v60 = vld [vmem:[%s9095_s1 + $0x118] sm:$0xff]   ;;  %v48_v63 = vld [vmem:[%s9096_s0 + $0x48] sm:$0x11] }
  0x14   :  { %6207 = vmatpush3.bf16.msra.mxu0 %v6856_v18  ;;  %v5668_v59 = vcombine.high %v47_v58, %v47_v58  ;;  %v5667_v61 = vcombine.low %v47_v58, %v47_v58  ;;  %v6890_v62 = vld [vmem:[%s9095_s1 + $0x198] sm:$0xff]   ;;  %v5670_v0 = vcombine.high %v48_v63, %v48_v63  ;;  %v5669_v1 = vcombine.low %v48_v63, %v48_v63  ;;  %v6894_v2 = vld [vmem:[%s9095_s1 + $0x150] sm:$0xff]   ;;  %v6898_v6 = vld [vmem:[%s9095_s1 + $0x148] sm:$0xff]  }
  0x15   :  { %6235 = vmatpush3.bf16.msra.mxu1 %v6857_v19  ;;  %6208 = vmatprep.subr.bf16.mxu0 %v6858_v20  ;;  %v6895_v3 = vld [vmem:[%s9095_s1 + $0x1d0] sm:$0xff]   ;;  %v6899_v7 = vld [vmem:[%s9095_s1 + $0x1c8] sm:$0xff]   ;;  %v6902_v10 = vld [vmem:[%s9095_s1 + $0x140] sm:$0xff]  }
  0x16   :  { %6236 = vmatprep.subr.bf16.mxu1 %v6859_v21  ;;  %v6896_v4 = vld [vmem:[%s9095_s1 + $0x110] sm:$0xff]   ;;  %v6900_v8 = vld [vmem:[%s9095_s1 + $0x108] sm:$0xff]   ;;  %v6903_v11 = vld [vmem:[%s9095_s1 + $0x1c0] sm:$0xff]  }
  0x17   :  { %v6897_v5 = vld [vmem:[%s9095_s1 + $0x190] sm:$0xff]   ;;  %v6901_v9 = vld [vmem:[%s9095_s1 + $0x188] sm:$0xff]   ;;  %v6904_v12 = vld [vmem:[%s9095_s1 + $0x100] sm:$0xff]  }
  0x18   :  { %6209 = vmatpush3.bf16.msra.mxu0 %v6860_v22  ;;  %v6905_v13 = vld [vmem:[%s9095_s1 + $0x180] sm:$0xff]   ;;  %v41_v14 = vld [vmem:[%s9096_s0 + $0x10] sm:$0xff]  ;;  %v42_v16 = vld [vmem:[%s9096_s0 + $0x18] sm:$0xff] }
  0x19   :  { %6237 = vmatpush3.bf16.msra.mxu1 %v6861_v23  ;;  %6210 = vmatprep.subr.bf16.mxu0 %v6862_v24  ;;  %v45_v15 = vld [vmem:[%s9096_s0 + $0x30] sm:$0xff]  ;;  %v46_v19 = vld [vmem:[%s9096_s0 + $0x38] sm:$0xff]  ;;  %v6914_v33 = vld [vmem:[%s9097_s3 + $0x28] sm:$0xff]  }
  0x1a   :  { %6238 = vmatprep.subr.bf16.mxu1 %v6863_v25  ;;  %v5663_v17 = vcombine.low %v41_v14, %v45_v15  ;;  %v5664_v18 = vcombine.high %v41_v14, %v45_v15  ;;  %v49_v20 = vld [vmem:[%s9096_s0 + $0x50] sm:$0x11]  ;;  %v50_v21 = vld [vmem:[%s9096_s0 + $0x58] sm:$0x11]  ;;  %v5665_v22 = vcombine.low %v42_v16, %v46_v19  ;;  %v5666_v23 = vcombine.high %v42_v16, %v46_v19  ;;  %v6915_v34 = vld [vmem:[%s9097_s3 + $0x68] sm:$0xff]  }
  0x1b   :  { %v5672_v24 = vcombine.high %v49_v20, %v49_v20  ;;  %v5674_v25 = vcombine.high %v50_v21, %v50_v21  ;;  %v6913_v32 = vld [vmem:[%s9097_s3 + $0x70] sm:$0xff]   ;;  %v6917_v36 = vld [vmem:[%s9097_s3 + $0x60] sm:$0xff]   ;;  %v6918_v37 = vld [vmem:[%s9097_s3 + $0x18] sm:$0xff]  }
  0x1c   :  { %6211 = vmatpush3.bf16.msra.mxu0 %v6864_v26  ;;  %v5671_v26 = vcombine.low %v49_v20, %v49_v20  ;;  %v6920_v39 = vld [vmem:[%s9097_s3 + $0x10] sm:$0xff]  }
  0x1d   :  { %6239 = vmatpush3.bf16.msra.mxu1 %v6865_v27  ;;  %6212 = vmatprep.subr.bf16.mxu0 %v6866_v28  ;;  %v5673_v27 = vcombine.low %v50_v21, %v50_v21  ;;  %v7174_v28 = vmov 0.0  }
  0x1e   :  { %6240 = vmatprep.subr.bf16.mxu1 %v6867_v29  ;;  %v6910_v29 = vld [vmem:[%s9097_s3 + $0x38] sm:$0xff]  }
  0x20   :  { %6213 = vmatpush3.bf16.msra.mxu0 %v6868_v30  ;;  %v6911_v30 = vld [vmem:[%s9097_s3 + $0x78] sm:$0xff]  }
  0x21   :  { %6241 = vmatpush3.bf16.msra.mxu1 %v6869_v31  ;;  %6254 = vmatprep.subr.bf16.mxu0 %v6870_v40  ;;  %v6912_v31 = vld [vmem:[%s9097_s3 + $0x30] sm:$0xff]  }
  0x22   :  { %6282 = vmatprep.subr.bf16.mxu1 %v6871_v41  ;;  %v6921_v40 = vld [vmem:[%s9097_s3 + $0x50] sm:$0xff]   ;;  %v6922_v41 = vld [vmem:[%s9097_s3 + $0x8] sm:$0xff]  }
  0x23   :  { %671 = vmatmul.mubr.bf16.vlgmr.msra.gmra.mxu0 %v5659_v35  ;;  %v6916_v35 = vld [vmem:[%s9097_s3 + $0x20] sm:$0xff]  }
  0x24   :  { %719 = vmatmul.mubr.bf16.vlgmr.msra.gmra.mxu1 %v5661_v38  ;;  %6255 = vmatpush3.bf16.msra.mxu0 %v6872_v42  ;;  %v6919_v38 = vld [vmem:[%s9097_s3 + $0x58] sm:$0xff]   ;;  %v6923_v42 = vld [vmem:[%s9097_s3 + $0x48] sm:$0xff]  }
  0x25   :  { %6283 = vmatpush3.bf16.msra.mxu1 %v6873_v43  ;;  %6256 = vmatprep.subr.bf16.mxu0 %v6874_v44  ;;  %v6924_v43 = vld [vmem:[%s9097_s3] sm:$0xff]  }
  0x26   :  { %6284 = vmatprep.subr.bf16.mxu1 %v6875_v45  ;;  %678 = vmatprep.mubr.bf16.mxu0 %v5668_v59  ;;  %v6925_v44 = vld [vmem:[%s9097_s3 + $0x40] sm:$0xff]  }
  0x27   :  { %726 = vmatprep.mubr.bf16.mxu1 %v5670_v0 }
  0x28   :  { %6257 = vmatpush3.bf16.msra.mxu0 %v6876_v46 }
  0x29   :  { %6285 = vmatpush3.bf16.msra.mxu1 %v6877_v47  ;;  %6258 = vmatprep.subr.bf16.mxu0 %v6878_v48 }
  0x2a   :  { %6286 = vmatprep.subr.bf16.mxu1 %v6879_v49 }
  0x2b   :  { %679 = vmatmul.mubr.bf16.gmra.mxu0 %v5667_v61 }
  0x2c   :  { %6259 = vmatpush3.bf16.msra.mxu0 %v6880_v50  ;;  %727 = vmatmul.mubr.bf16.gmra.mxu1 %v5669_v1 }
  0x2d   :  { %6287 = vmatpush3.bf16.msra.mxu1 %v6881_v51  ;;  %6260 = vmatprep.subr.bf16.mxu0 %v6882_v52 }
  0x2e   :  { %6288 = vmatprep.subr.bf16.mxu1 %v6883_v53  ;;  %766 = vmatprep.mubr.bf16.mxu0 %v5664_v18 }
  0x2f   :  { %814 = vmatprep.mubr.bf16.mxu1 %v5666_v23 }
  0x30   :  { %6261 = vmatpush3.bf16.msra.mxu0 %v6884_v54  ;;  %v5658_v54 = vld [vmem:[%s9098_s2] ss:$0 sm:$0xff] }
  0x31   :  { %6289 = vmatpush3.bf16.msra.mxu1 %v6885_v55  ;;  %6262 = vmatprep.subr.bf16.mxu0 %v6886_v56 }
  0x32   :  { %6290 = vmatprep.subr.bf16.mxu1 %v6887_v57 }
  0x34   :  { %6263 = vmatpush3.bf16.msra.mxu0 %v6889_v60 }
  0x35   :  { %6291 = vmatpush3.bf16.msra.mxu1 %v6890_v62  ;;  %6264 = vmatprep.subr.bf16.mxu0 %v6894_v2 }
  0x36   :  { %6292 = vmatprep.subr.bf16.mxu1 %v6895_v3 }
  0x38   :  { %6265 = vmatpush3.bf16.msra.mxu0 %v6896_v4 }
  0x39   :  { %6293 = vmatpush3.bf16.msra.mxu1 %v6897_v5  ;;  %6266 = vmatprep.subr.bf16.mxu0 %v6898_v6 }
  0x3a   :  { %6294 = vmatprep.subr.bf16.mxu1 %v6899_v7 }
  0x3c   :  { %6267 = vmatpush3.bf16.msra.mxu0 %v6900_v8 }
  0x3d   :  { %6295 = vmatpush3.bf16.msra.mxu1 %v6901_v9  ;;  %6268 = vmatprep.subr.bf16.mxu0 %v6902_v10 }
  0x3e   :  { %6296 = vmatprep.subr.bf16.mxu1 %v6903_v11 }
  0x40   :  { %6269 = vmatpush3.bf16.msra.mxu0 %v6904_v12 }
  0x41   :  { %6297 = vmatpush3.bf16.msra.mxu1 %v6905_v13  ;;  %6655 = vmatprep.subr.bf16.mxu0 %v7174_v28 }
  0x42   :  { %6675 = vmatprep.subr.bf16.mxu1 %v7174_v28 }
  0x43   :  { %767 = vmatmul.mubr.bf16.vlgmr.msra.gmra.mxu0 %v5663_v17 }
  0x44   :  { %815 = vmatmul.mubr.bf16.vlgmr.msra.gmra.mxu1 %v5665_v22  ;;  %774 = vmatprep.mubr.bf16.mxu0 %v5672_v24 }
  0x45   :  { %822 = vmatprep.mubr.bf16.mxu1 %v5674_v25  ;;  %6676 = vmatpush3.bf16.msra.mxu1 %v6910_v29 }
  0x46   :  { %6656 = vmatpush3.bf16.msra.mxu0 %v6911_v30  ;;  %6677 = vmatprep.subr.bf16.mxu1 %v7174_v28 }
  0x47   :  { %6657 = vmatprep.subr.bf16.mxu0 %v7174_v28 }
  0x49   :  { %6678 = vmatpush3.bf16.msra.mxu1 %v6912_v31 }
  0x4a   :  { %6679 = vmatprep.subr.bf16.mxu1 %v7174_v28  ;;  %6658 = vmatpush3.bf16.msra.mxu0 %v6913_v32  ;;  %v6927_v32 = vld [vmem:[%s9097_s3 + $0xb8] sm:$0xff]  }
  0x4b   :  { %775 = vmatmul.mubr.bf16.gmra.mxu0 %v5671_v26  ;;  %6659 = vmatprep.subr.bf16.mxu0 %v7174_v28  ;;  %v6926_v26 = vld [vmem:[%s9097_s3 + $0xf8] sm:$0xff]  }
  0x4c   :  { %823 = vmatmul.mubr.bf16.gmra.mxu1 %v5673_v27  ;;  %6671 = vmatprep.mubr.msk.bf16.mxu0 %vm7175_vm0, %v7174_v28 }
  0x4d   :  { %6680 = vmatpush3.bf16.msra.mxu1 %v6914_v33  ;;  %6691 = vmatprep.mubr.msk.bf16.mxu1 %vm7175_vm0, %v7174_v28 }
  0x4e   :  { %6681 = vmatprep.subr.bf16.mxu1 %v7174_v28  ;;  %6660 = vmatpush3.bf16.msra.mxu0 %v6915_v34 }
  0x4f   :  { %6661 = vmatprep.subr.bf16.mxu0 %v7174_v28 }
  0x51   :  { %6682 = vmatpush3.bf16.msra.mxu1 %v6916_v35 }
  0x52   :  { %6683 = vmatprep.subr.bf16.mxu1 %v7174_v28  ;;  %6662 = vmatpush3.bf16.msra.mxu0 %v6917_v36 }
  0x53   :  { %6663 = vmatprep.subr.bf16.mxu0 %v7174_v28 }
  0x55   :  { %6684 = vmatpush3.bf16.msra.mxu1 %v6918_v37  ;;  %v6928_v37 = vld [vmem:[%s9097_s3 + $0xf0] sm:$0xff]  }
  0x56   :  { %6685 = vmatprep.subr.bf16.mxu1 %v7174_v28  ;;  %6664 = vmatpush3.bf16.msra.mxu0 %v6919_v38 }
  0x57   :  { %6665 = vmatprep.subr.bf16.mxu0 %v7174_v28 }
  0x59   :  { %6686 = vmatpush3.bf16.msra.mxu1 %v6920_v39 }
  0x5a   :  { %6687 = vmatprep.subr.bf16.mxu1 %v7174_v28  ;;  %6666 = vmatpush3.bf16.msra.mxu0 %v6921_v40 }
  0x5b   :  { %6667 = vmatprep.subr.bf16.mxu0 %v7174_v28 }
  0x5d   :  { %6688 = vmatpush3.bf16.msra.mxu1 %v6922_v41  ;;  %v6929_v41 = vld [vmem:[%s9097_s3 + $0xb0] sm:$0xff]  }
  0x5e   :  { %6689 = vmatprep.subr.bf16.mxu1 %v7174_v28  ;;  %6668 = vmatpush3.bf16.msra.mxu0 %v6923_v42  ;;  %v6930_v42 = vld [vmem:[%s9097_s3 + $0xe8] sm:$0xff]  }
  0x5f   :  { %6669 = vmatprep.subr.bf16.mxu0 %v7174_v28 }
  0x61   :  { %6690 = vmatpush3.bf16.msra.mxu1 %v6924_v43  ;;  %v6931_v43 = vld [vmem:[%s9097_s3 + $0xa8] sm:$0xff]  }
  0x62   :  { %6715 = vmatprep.subr.bf16.mxu1 %v7174_v28  ;;  %6670 = vmatpush3.bf16.msra.mxu0 %v6925_v44  ;;  %v6932_v44 = vld [vmem:[%s9097_s3 + $0xe0] sm:$0xff]  }
  0x63   :  { %6695 = vmatprep.subr.bf16.mxu0 %v7174_v28 }
  0xe3   :  { %v6214_v45 = vpop.f32.mrf.mxu0 }
  0xe4   :  { %v6242_v46 = vpop.f32.mrf.mxu1 }
  0xe5   :  { %v6215_v47 = vpop.f32.mrf.mxu0 }
  0xe6   :  { %v6243_v48 = vpop.f32.mrf.mxu1  ;;  %v6216_v6 = vadd.f32 %v6215_v47, %v6214_v45  ;;  %v6933_v45 = vld [vmem:[%s9097_s3 + $0xa0] sm:$0xff]   ;;  %v6935_v47 = vld [vmem:[%s9097_s3 + $0x98] sm:$0xff]  }
  0xe7   :  { %v6217_v49 = vpop.f32.mrf.mxu0  ;;  %v6244_v8 = vadd.f32 %v6243_v48, %v6242_v46  ;;  %v6934_v46 = vld [vmem:[%s9097_s3 + $0xd8] sm:$0xff]   ;;  %v6936_v48 = vld [vmem:[%s9097_s3 + $0xd0] sm:$0xff]  }
  0xe8   :  { %v6245_v50 = vpop.f32.mrf.mxu1  ;;  %v673_v7 = vadd.f32 %v6216_v6, %v5658_v54  ;;  %v6952_v6 = vld [vmem:[%s9097_s3 + $0x150] sm:$0xff]  }
  0xe9   :  { %v6218_v51 = vpop.f32.mrf.mxu0 }
  0xea   :  { %v6219_v52 = vadd.f32 %v6218_v51, %v6217_v49  ;;  %v6246_v53 = vpop.f32.mrf.mxu1  ;;  %v721_v12 = vadd.f32 %v6244_v8, %v673_v7  ;;  %v6937_v49 = vld [vmem:[%s9097_s3 + $0x90] sm:$0xff]   ;;  %v6939_v51 = vld [vmem:[%s9097_s3 + $0x88] sm:$0xff]  }
  0xeb   :  { %v6247_v55 = vadd.f32 %v6246_v53, %v6245_v50  ;;  %v6220_v58 = vpop.f32.mrf.mxu0  ;;  %v6938_v50 = vld [vmem:[%s9097_s3 + $0xc8] sm:$0xff]   ;;  %v6941_v53 = vld [vmem:[%s9097_s3 + $0x80] sm:$0xff]  }
  0xec   :  { %v676_v56 = vadd.f32 %v6219_v52, %v5658_v54  ;;  %v6248_v60 = vpop.f32.mrf.mxu1  ;;  %v6940_v52 = vld [vmem:[%s9097_s3 + $0xc0] sm:$0xff]   ;;  %v6954_v8 = vld [vmem:[%s9097_s3 + $0x148] sm:$0xff]  }
  0xed   :  { %v6221_v59 = vpop.f32.mrf.mxu0 }
  0xee   :  { %v7538_v57 = vadd.f32 %v6247_v55, %v676_v56  ;;  %v6222_v61 = vadd.f32 %v6221_v59, %v6220_v58  ;;  %v6249_v63 = vpop.f32.mrf.mxu1  ;;  %v6943_v56 = vld [vmem:[%s9097_s3 + $0x138] sm:$0xff]   ;;  %v6944_v59 = vld [vmem:[%s9097_s3 + $0x170] sm:$0xff]  }
  0xef   :  { %v6223_v62 = vpop.f32.mrf.mxu0  ;;  %v6250_v1 = vadd.f32 %v6249_v63, %v6248_v60  ;;  %v6945_v60 = vld [vmem:[%s9097_s3 + $0x130] sm:$0xff]   ;;  %v6948_v63 = vld [vmem:[%s9097_s3 + $0x160] sm:$0xff]  }
  0xf0   :  { %v681_v0 = vadd.f32 %v6222_v61, %v5658_v54  ;;  %v6251_v3 = vpop.f32.mrf.mxu1  ;;  %v6942_v54 = vld [vmem:[%s9097_s3 + $0x178] sm:$0xff]   ;;  %v6946_v61 = vld [vmem:[%s9097_s3 + $0x168] sm:$0xff]  }
  0xf1   :  { %v6224_v2 = vpop.f32.mrf.mxu0  ;;  %v6947_v62 = vld [vmem:[%s9097_s3 + $0x128] sm:$0xff]  }
  0xf2   :  { %v729_v4 = vadd.f32 %v6250_v1, %v681_v0  ;;  %v6252_v5 = vpop.f32.mrf.mxu1  ;;  %v6949_v1 = vld [vmem:[%s9097_s3 + $0x120] sm:$0xff]   ;;  %v6950_v2 = vld [vmem:[%s9097_s3 + $0x158] sm:$0xff]  }
 0x103   :  { %v6270_v9 = vpop.f32.mrf.mxu0 }
 0x104   :  { %v6298_v10 = vpop.f32.mrf.mxu1 }
 0x105   :  { %v6271_v11 = vpop.f32.mrf.mxu0 }
 0x106   :  { %v6272_v13 = vadd.f32 %v6271_v11, %v6270_v9  ;;  %v6299_v14 = vpop.f32.mrf.mxu1  ;;  %v6956_v11 = vld [vmem:[%s9097_s3 + $0x140] sm:$0xff]  }
 0x107   :  { %v7540_v15 = vpop.f32.mrf.mxu0  ;;  %v6300_v17 = vadd.f32 %v6299_v14, %v6298_v10  ;;  %v6955_v10 = vld [vmem:[%s9097_s3 + $0x108] sm:$0xff]   ;;  %v6958_v14 = vld [vmem:[%s9097_s3 + $0x1f8] sm:$0xff]  }
 0x108   :  { %v769_v16 = vadd.f32 %v6272_v13, %v721_v12  ;;  %v7542_v18 = vpop.f32.mrf.mxu1  ;;  %v6957_v13 = vld [vmem:[%s9097_s3 + $0x100] sm:$0xff]  }
 0x109   :  { %v7544_v19 = vpop.f32.mrf.mxu0 }
 0x10a   :  { %v817_v20 = vadd.f32 %v6300_v17, %v769_v16  ;;  %v7546_v21 = vpop.f32.mrf.mxu1  ;;  %v6275_v0 = vadd.f32 %v7544_v19, %v7540_v15  ;;  %v6959_v16 = vld [vmem:[%s9097_s3 + $0x1b8] sm:$0xff]   ;;  %v6960_v17 = vld [vmem:[%s9097_s3 + $0x1f0] sm:$0xff]   ;;  %v6962_v19 = vld [vmem:[%s9097_s3 + $0x1e8] sm:$0xff]  }
 0x10b   :  { %v6276_v22 = vpop.f32.mrf.mxu0  ;;  %v6303_v5 = vadd.f32 %v7546_v21, %v7542_v18  ;;  %v6961_v18 = vld [vmem:[%s9097_s3 + $0x1b0] sm:$0xff]   ;;  %v6964_v21 = vld [vmem:[%s9097_s3 + $0x1e0] sm:$0xff]  }
 0x10c   :  { %v830_v23 = vmax.f32 %v817_v20, 0.0  ;;  %v6304_v24 = vpop.f32.mrf.mxu1  ;;  %v772_v3 = vadd.f32 %v6275_v0, %v7538_v57  ;;  %v6953_v57 = vld [vmem:[%s9097_s3 + $0x110] sm:$0xff]   ;;  %v6963_v20 = vld [vmem:[%s9097_s3 + $0x1a8] sm:$0xff]  }
 0x10d   :  { %v6277_v25 = vpop.f32.mrf.mxu0 }
 0x10e   :  { %v7551_v27 = vpack.c.bf16 %v830_v23, %v830_v23  ;;  %v6278_v29 = vadd.f32 %v6277_v25, %v6276_v22  ;;  %v6305_v30 = vpop.f32.mrf.mxu1  ;;  %v820_v7 = vadd.f32 %v6303_v5, %v772_v3  ;;  %v6965_v22 = vld [vmem:[%s9097_s3 + $0x1a0] sm:$0xff]   ;;  %v6966_v23 = vld [vmem:[%s9097_s3 + $0x1d8] sm:$0xff]   ;;  %v6968_v25 = vld [vmem:[%s9097_s3 + $0x1d0] sm:$0xff]  }
 0x10f   :  { %v6306_v31 = vadd.f32 %v6305_v30, %v6304_v24  ;;  %v6279_v33 = vpop.f32.mrf.mxu0  ;;  %v6967_v24 = vld [vmem:[%s9097_s3 + $0x198] sm:$0xff]   ;;  %v6972_v30 = vld [vmem:[%s9097_s3 + $0x1c0] sm:$0xff]   ;;  %v1912_v5 = vld [vmem:[%s9099_s5 + $0x368] sm:$0xff] }
 0x110   :  { %v867_v34 = vrot.slane %v7551_v27, 1  ;;  %v777_v35 = vadd.f32 %v6278_v29, %v729_v4  ;;  %6692 = vmatmul.mubr.bf16.vlgmr.msra.gmra.mxu1 %v7551_v27  ;;  %v6307_v36 = vpop.f32.mrf.mxu1  ;;  %v1168_v55 = vrot.slane %v7551_v27, 3  ;;  %v1061_v58 = vrot.slane %v7551_v27, 2  ;;  %v6951_v4 = vld [vmem:[%s9097_s3 + $0x118] sm:$0xff]   ;;  %v6970_v27 = vld [vmem:[%s9097_s3 + $0x1c8] sm:$0xff]   ;;  %v1911_v3 = vld [vmem:[%s9099_s5 + $0x360] sm:$0xff] }
 0x111   :  { %6716 = vmatpush3.bf16.msra.mxu1 %v6926_v26  ;;  %6731 = vmatprep.mubr.msk.bf16.mxu1 %vm7175_vm0, %v7174_v28  ;;  %v6280_v38 = vpop.f32.mrf.mxu0  ;;  %v831_v9 = vmax.f32 %v820_v7, 0.0  ;;  %v6969_v26 = vld [vmem:[%s9097_s3 + $0x190] sm:$0xff]   ;;  %v6971_v29 = vld [vmem:[%s9097_s3 + $0x188] sm:$0xff]   ;;  %v6974_v33 = vld [vmem:[%s9097_s3 + $0x238] sm:$0xff]  }
 0x112   :  { %v7563_v39 = vadd.f32 %v6306_v31, %v777_v35  ;;  %6672 = vmatmul.mubr.bf16.vlgmr.msra.gmra.mxu0 %v867_v34  ;;  %6717 = vmatprep.subr.bf16.mxu1 %v7174_v28  ;;  %v6308_v40 = vpop.f32.mrf.mxu1  ;;  %v6973_v31 = vld [vmem:[%s9097_s3 + $0x180] sm:$0xff]   ;;  %v6975_v35 = vld [vmem:[%s9097_s3 + $0x230] sm:$0xff]   ;;  %v6976_v36 = vld [vmem:[%s9097_s3 + $0x228] sm:$0xff]  }
 0x113   :  { %6696 = vmatpush3.bf16.msra.mxu0 %v6927_v32  ;;  %6711 = vmatprep.mubr.msk.bf16.mxu0 %vm7175_vm0, %v7174_v28  ;;  %v7690_v12 = vpack.c.bf16 %v831_v9, %v831_v9  ;;  %v6978_v38 = vld [vmem:[%s9097_s3 + $0x218] sm:$0xff]   ;;  %v6979_v40 = vld [vmem:[%s9097_s3 + $0x210] sm:$0xff]   ;;  %v1875_v9 = vld [vmem:[%s9099_s5 + $0x240] sm:$0xff] }
 0x114   :  { %6697 = vmatprep.subr.bf16.mxu0 %v7174_v28 }
 0x115   :  { %6718 = vmatpush3.bf16.msra.mxu1 %v6928_v37  ;;  %v1382_v15 = vrot.slane %v7690_v12, 1  ;;  %v1596_v32 = vrot.slane %v7690_v12, 3  ;;  %v1489_v34 = vrot.slane %v7690_v12, 2  ;;  %v6977_v37 = vld [vmem:[%s9097_s3 + $0x220] sm:$0xff]  }
 0x116   :  { %6719 = vmatprep.subr.bf16.mxu1 %v7174_v28 }
 0x117   :  { %6698 = vmatpush3.bf16.msra.mxu0 %v6929_v41  ;;  %v6980_v41 = vld [vmem:[%s9097_s3 + $0x208] sm:$0xff]  }
 0x118   :  { %6699 = vmatprep.subr.bf16.mxu0 %v7174_v28 }
 0x119   :  { %6720 = vmatpush3.bf16.msra.mxu1 %v6930_v42  ;;  %v6981_v42 = vld [vmem:[%s9097_s3 + $0x200] sm:$0xff]  }
 0x11a   :  { %6721 = vmatprep.subr.bf16.mxu1 %v7174_v28 }
 0x11b   :  { %6700 = vmatpush3.bf16.msra.mxu0 %v6931_v43  ;;  %v832_v43 = vmax.f32 %v7563_v39, 0.0  ;;  %v1947_v39 = vld [vmem:[%s9099_s5 + $0x480] sm:$0xff] }
 0x11c   :  { %6701 = vmatprep.subr.bf16.mxu0 %v7174_v28 }
 0x11d   :  { %6722 = vmatpush3.bf16.msra.mxu1 %v6932_v44  ;;  %v1687_v44 = vpack.c.bf16 %v832_v43, %v832_v43 }
 0x11e   :  { %6723 = vmatprep.subr.bf16.mxu1 %v7174_v28 }
 0x11f   :  { %6702 = vmatpush3.bf16.msra.mxu0 %v6933_v45  ;;  %v1971_v45 = vld [vmem:[%s9099_s5 + $0x540] sm:$0xff] }
 0x120   :  { %6703 = vmatprep.subr.bf16.mxu0 %v7174_v28 }
 0x121   :  { %6724 = vmatpush3.bf16.msra.mxu1 %v6934_v46  ;;  %v1983_v46 = vld [vmem:[%s9099_s5 + $0x5a0] sm:$0xff] }
 0x122   :  { %6725 = vmatprep.subr.bf16.mxu1 %v7174_v28 }
 0x123   :  { %6704 = vmatpush3.bf16.msra.mxu0 %v6935_v47  ;;  %v1972_v47 = vld [vmem:[%s9099_s5 + $0x548] sm:$0xff] }
 0x124   :  { %6705 = vmatprep.subr.bf16.mxu0 %v7174_v28 }
 0x125   :  { %6726 = vmatpush3.bf16.msra.mxu1 %v6936_v48  ;;  %v5980_v48 = vcombine.low %v1971_v45, %v1983_v46 }
 0x126   :  { %6727 = vmatprep.subr.bf16.mxu1 %v7174_v28 }
 0x127   :  { %6706 = vmatpush3.bf16.msra.mxu0 %v6937_v49  ;;  %v5981_v49 = vcombine.high %v1971_v45, %v1983_v46  ;;  %v1804_v46 = vld [vmem:[%s9099_s5 + $0x8] sm:$0xff] }
 0x128   :  { %6707 = vmatprep.subr.bf16.mxu0 %v7174_v28 }
 0x129   :  { %6728 = vmatpush3.bf16.msra.mxu1 %v6938_v50  ;;  %v1959_v50 = vld [vmem:[%s9099_s5 + $0x4e0] sm:$0xff] }
 0x12a   :  { %6729 = vmatprep.subr.bf16.mxu1 %v7174_v28 }
 0x12b   :  { %6708 = vmatpush3.bf16.msra.mxu0 %v6939_v51 }
 0x12c   :  { %6709 = vmatprep.subr.bf16.mxu0 %v7174_v28 }
 0x12d   :  { %6730 = vmatpush3.bf16.msra.mxu1 %v6940_v52 }
 0x12e   :  { %6755 = vmatprep.subr.bf16.mxu1 %v7174_v28 }
 0x12f   :  { %6710 = vmatpush3.bf16.msra.mxu0 %v6941_v53  ;;  %v5957_v53 = vcombine.high %v1947_v39, %v1959_v50 }
 0x130   :  { %6732 = vmatmul.mubr.bf16.vlgmr.msra.gmra.mxu1 %v1168_v55  ;;  %6735 = vmatprep.subr.bf16.mxu0 %v7174_v28  ;;  %v1960_v55 = vld [vmem:[%s9099_s5 + $0x4e8] sm:$0xff] }
 0x131   :  { %6756 = vmatpush3.bf16.msra.mxu1 %v6942_v54  ;;  %6771 = vmatprep.mubr.msk.bf16.mxu1 %vm7175_vm0, %v7174_v28  ;;  %v1948_v54 = vld [vmem:[%s9099_s5 + $0x488] sm:$0xff] }
 0x132   :  { %6712 = vmatmul.mubr.bf16.vlgmr.msra.gmra.mxu0 %v1061_v58  ;;  %6757 = vmatprep.subr.bf16.mxu1 %v7174_v28  ;;  %v5959_v58 = vcombine.high %v1948_v54, %v1960_v55 }
 0x133   :  { %6736 = vmatpush3.bf16.msra.mxu0 %v6943_v56  ;;  %6751 = vmatprep.mubr.msk.bf16.mxu0 %vm7175_vm0, %v7174_v28  ;;  %v1923_v56 = vld [vmem:[%s9099_s5 + $0x3c0] sm:$0xff] }
 0x134   :  { %6737 = vmatprep.subr.bf16.mxu0 %v7174_v28 }
 0x135   :  { %6758 = vmatpush3.bf16.msra.mxu1 %v6944_v59  ;;  %v1935_v59 = vld [vmem:[%s9099_s5 + $0x420] sm:$0xff] }
 0x136   :  { %6759 = vmatprep.subr.bf16.mxu1 %v7174_v28  ;;  %v5933_v0 = vcombine.high %v1923_v56, %v1935_v59 }
 0x137   :  { %6738 = vmatpush3.bf16.msra.mxu0 %v6945_v60  ;;  %v1924_v60 = vld [vmem:[%s9099_s5 + $0x3c8] sm:$0xff] }
 0x138   :  { %6739 = vmatprep.subr.bf16.mxu0 %v7174_v28 }
 0x139   :  { %6760 = vmatpush3.bf16.msra.mxu1 %v6946_v61  ;;  %v1936_v61 = vld [vmem:[%s9099_s5 + $0x428] sm:$0xff] }
 0x13a   :  { %6761 = vmatprep.subr.bf16.mxu1 %v7174_v28  ;;  %v5934_v7 = vcombine.low %v1924_v60, %v1936_v61 }
 0x13b   :  { %6740 = vmatpush3.bf16.msra.mxu0 %v6947_v62  ;;  %v5956_v62 = vcombine.low %v1947_v39, %v1959_v50 }
 0x13c   :  { %6741 = vmatprep.subr.bf16.mxu0 %v7174_v28 }
 0x13d   :  { %6762 = vmatpush3.bf16.msra.mxu1 %v6948_v63  ;;  %v5958_v63 = vcombine.low %v1948_v54, %v1960_v55 }
 0x13e   :  { %6763 = vmatprep.subr.bf16.mxu1 %v7174_v28 }
 0x13f   :  { %6742 = vmatpush3.bf16.msra.mxu0 %v6949_v1  ;;  %v5935_v1 = vcombine.high %v1924_v60, %v1936_v61  ;;  %v7176_v61 = vmov 0  }
 0x140   :  { %6743 = vmatprep.subr.bf16.mxu0 %v7174_v28 }
 0x141   :  { %6764 = vmatpush3.bf16.msra.mxu1 %v6950_v2  ;;  %v1899_v2 = vld [vmem:[%s9099_s5 + $0x300] sm:$0xff] }
 0x142   :  { %6765 = vmatprep.subr.bf16.mxu1 %v7174_v28 }
 0x143   :  { %6744 = vmatpush3.bf16.msra.mxu0 %v6951_v4  ;;  %v1900_v4 = vld [vmem:[%s9099_s5 + $0x308] sm:$0xff] }
 0x144   :  { %6745 = vmatprep.subr.bf16.mxu0 %v7174_v28 }
 0x145   :  { %6766 = vmatpush3.bf16.msra.mxu1 %v6952_v6  ;;  %v5932_v6 = vcombine.low %v1923_v56, %v1935_v59  ;;  %v1986_v56 = vld [vmem:[%s9099_s5 + $0x5b8] sm:$0xff] }
 0x146   :  { %6767 = vmatprep.subr.bf16.mxu1 %v7174_v28 }
 0x147   :  { %6746 = vmatpush3.bf16.msra.mxu0 %v6953_v57  ;;  %v5909_v57 = vcombine.high %v1899_v2, %v1911_v3 }
 0x148   :  { %6747 = vmatprep.subr.bf16.mxu0 %v7174_v28 }
 0x149   :  { %6768 = vmatpush3.bf16.msra.mxu1 %v6954_v8  ;;  %v5911_v8 = vcombine.high %v1900_v4, %v1912_v5 }
 0x14a   :  { %6769 = vmatprep.subr.bf16.mxu1 %v7174_v28 }
 0x14b   :  { %6748 = vmatpush3.bf16.msra.mxu0 %v6955_v10  ;;  %v1887_v10 = vld [vmem:[%s9099_s5 + $0x2a0] sm:$0xff] }
 0x14c   :  { %6749 = vmatprep.subr.bf16.mxu0 %v7174_v28 }
 0x14d   :  { %6770 = vmatpush3.bf16.msra.mxu1 %v6956_v11  ;;  %v1876_v11 = vld [vmem:[%s9099_s5 + $0x248] sm:$0xff] }
 0x14e   :  { %6795 = vmatprep.subr.bf16.mxu1 %v7174_v28 }
 0x14f   :  { %6750 = vmatpush3.bf16.msra.mxu0 %v6957_v13  ;;  %v5908_v13 = vcombine.low %v1899_v2, %v1911_v3 }
 0x150   :  { %6772 = vmatmul.mubr.bf16.vlgmr.msra.gmra.mxu1 %v1382_v15  ;;  %6775 = vmatprep.subr.bf16.mxu0 %v7174_v28  ;;  %v5885_v15 = vcombine.high %v1875_v9, %v1887_v10 }
 0x151   :  { %6796 = vmatpush3.bf16.msra.mxu1 %v6958_v14  ;;  %6811 = vmatprep.mubr.msk.bf16.mxu1 %vm7175_vm0, %v7174_v28  ;;  %v5910_v14 = vcombine.low %v1900_v4, %v1912_v5 }
 0x152   :  { %6752 = vmatmul.mubr.bf16.vlgmr.msra.gmra.mxu0 %v7690_v12  ;;  %6797 = vmatprep.subr.bf16.mxu1 %v7174_v28  ;;  %v1888_v12 = vld [vmem:[%s9099_s5 + $0x2a8] sm:$0xff] }
 0x153   :  { %6776 = vmatpush3.bf16.msra.mxu0 %v6959_v16  ;;  %6791 = vmatprep.mubr.msk.bf16.mxu0 %vm7175_vm0, %v7174_v28  ;;  %v5887_v16 = vcombine.high %v1876_v11, %v1888_v12 }
 0x154   :  { %6777 = vmatprep.subr.bf16.mxu0 %v7174_v28 }
 0x155   :  { %6798 = vmatpush3.bf16.msra.mxu1 %v6960_v17  ;;  %v1851_v17 = vld [vmem:[%s9099_s5 + $0x180] sm:$0xff] }
 0x156   :  { %6799 = vmatprep.subr.bf16.mxu1 %v7174_v28 }
 0x157   :  { %6778 = vmatpush3.bf16.msra.mxu0 %v6961_v18  ;;  %v1863_v18 = vld [vmem:[%s9099_s5 + $0x1e0] sm:$0xff] }
 0x158   :  { %6779 = vmatprep.subr.bf16.mxu0 %v7174_v28 }
 0x159   :  { %6800 = vmatpush3.bf16.msra.mxu1 %v6962_v19  ;;  %v1852_v19 = vld [vmem:[%s9099_s5 + $0x188] sm:$0xff] }
 0x15a   :  { %6801 = vmatprep.subr.bf16.mxu1 %v7174_v28 }
 0x15b   :  { %6780 = vmatpush3.bf16.msra.mxu0 %v6963_v20  ;;  %v1864_v20 = vld [vmem:[%s9099_s5 + $0x1e8] sm:$0xff] }
 0x15c   :  { %6781 = vmatprep.subr.bf16.mxu0 %v7174_v28 }
 0x15d   :  { %6802 = vmatpush3.bf16.msra.mxu1 %v6964_v21  ;;  %v5884_v21 = vcombine.low %v1875_v9, %v1887_v10 }
 0x15e   :  { %6803 = vmatprep.subr.bf16.mxu1 %v7174_v28 }
 0x15f   :  { %6782 = vmatpush3.bf16.msra.mxu0 %v6965_v22  ;;  %v5886_v22 = vcombine.low %v1876_v11, %v1888_v12 }
 0x160   :  { %6783 = vmatprep.subr.bf16.mxu0 %v7174_v28 }
 0x161   :  { %6804 = vmatpush3.bf16.msra.mxu1 %v6966_v23  ;;  %v5861_v23 = vcombine.high %v1851_v17, %v1863_v18 }
 0x162   :  { %6805 = vmatprep.subr.bf16.mxu1 %v7174_v28 }
 0x163   :  { %6784 = vmatpush3.bf16.msra.mxu0 %v6967_v24  ;;  %v5863_v24 = vcombine.high %v1852_v19, %v1864_v20 }
 0x164   :  { %6785 = vmatprep.subr.bf16.mxu0 %v7174_v28 }
 0x165   :  { %6806 = vmatpush3.bf16.msra.mxu1 %v6968_v25  ;;  %v5860_v25 = vcombine.low %v1851_v17, %v1863_v18 }
 0x166   :  { %6807 = vmatprep.subr.bf16.mxu1 %v7174_v28 }
 0x167   :  { %6786 = vmatpush3.bf16.msra.mxu0 %v6969_v26  ;;  %v5862_v26 = vcombine.low %v1852_v19, %v1864_v20 }
 0x168   :  { %6787 = vmatprep.subr.bf16.mxu0 %v7174_v28 }
 0x169   :  { %6808 = vmatpush3.bf16.msra.mxu1 %v6970_v27  ;;  %v1827_v27 = vld [vmem:[%s9099_s5 + $0xc0] sm:$0xff] }
 0x16a   :  { %6809 = vmatprep.subr.bf16.mxu1 %v7174_v28 }
 0x16b   :  { %6788 = vmatpush3.bf16.msra.mxu0 %v6971_v29  ;;  %v1839_v29 = vld [vmem:[%s9099_s5 + $0x120] sm:$0xff] }
 0x16c   :  { %6789 = vmatprep.subr.bf16.mxu0 %v7174_v28 }
 0x16d   :  { %6810 = vmatpush3.bf16.msra.mxu1 %v6972_v30  ;;  %v1828_v30 = vld [vmem:[%s9099_s5 + $0xc8] sm:$0xff] }
 0x16e   :  { %3081 = vmatprep.subr.bf16.mxu1 %v5981_v49 }
 0x16f   :  { %6790 = vmatpush3.bf16.msra.mxu0 %v6973_v31 }
 0x170   :  { %6812 = vmatmul.mubr.bf16.vlgmr.msra.gmra.mxu1 %v1596_v32  ;;  %6815 = vmatprep.subr.bf16.mxu0 %v7174_v28  ;;  %v5837_v32 = vcombine.high %v1827_v27, %v1839_v29 }
 0x171   :  { %3082 = vmatpush1.bf16.msra.mxu1 %v5980_v48  ;;  %3113 = vmatprep.mubr.bf16.mxu1 %v7176_v61 }
 0x172   :  { %6792 = vmatmul.mubr.bf16.vlgmr.msra.gmra.mxu0 %v1489_v34  ;;  %3083 = vmatprep.subr.bf16.mxu1 %v5957_v53  ;;  %v5836_v34 = vcombine.low %v1827_v27, %v1839_v29  ;;  %v7913_v53 = vld [vmem:[%s9099_s5 + $0x558] sm:$0xff]  ;;  %v5811_v29 = vld [vmem:[%s9100_s4] ss:$0 sm:$0xff] }
 0x173   :  { %6816 = vmatpush3.bf16.msra.mxu0 %v6974_v33  ;;  %6831 = vmatprep.mubr.msk.bf16.mxu0 %vm7175_vm0, %v7174_v28  ;;  %v1840_v33 = vld [vmem:[%s9099_s5 + $0x128] sm:$0xff]  ;;  %v5986_v59 = vcombine.low %v7913_v53, %v1986_v56  ;;  %v5987_v60 = vcombine.high %v7913_v53, %v1986_v56  ;;  %v1914_v53 = vld [vmem:[%s9099_s5 + $0x378] sm:$0xff] }
 0x174   :  { %6817 = vmatprep.subr.bf16.mxu0 %v7174_v28 }
 0x175   :  { %3084 = vmatpush1.bf16.msra.mxu1 %v5956_v62 }
 0x176   :  { %3085 = vmatprep.subr.bf16.mxu1 %v5933_v0 }
 0x177   :  { %6818 = vmatpush3.bf16.msra.mxu0 %v6975_v35  ;;  %v5838_v35 = vcombine.low %v1828_v30, %v1840_v33 }
 0x178   :  { %6819 = vmatprep.subr.bf16.mxu0 %v7174_v28 }
 0x179   :  { %3086 = vmatpush1.bf16.msra.mxu1 %v5932_v6 }
 0x17a   :  { %3087 = vmatprep.subr.bf16.mxu1 %v5909_v57 }
 0x17b   :  { %6820 = vmatpush3.bf16.msra.mxu0 %v6976_v36  ;;  %v5839_v36 = vcombine.high %v1828_v30, %v1840_v33  ;;  %v1949_v33 = vld [vmem:[%s9099_s5 + $0x490] sm:$0xff] }
 0x17c   :  { %6821 = vmatprep.subr.bf16.mxu0 %v7174_v28 }
 0x17d   :  { %3088 = vmatpush1.bf16.msra.mxu1 %v5908_v13 }
 0x17e   :  { %3089 = vmatprep.subr.bf16.mxu1 %v5885_v15 }
 0x17f   :  { %6822 = vmatpush3.bf16.msra.mxu0 %v6977_v37 }
 0x180   :  { %6823 = vmatprep.subr.bf16.mxu0 %v7174_v28 }
 0x181   :  { %3090 = vmatpush1.bf16.msra.mxu1 %v5884_v21 }
 0x182   :  { %3091 = vmatprep.subr.bf16.mxu1 %v5861_v23 }
 0x183   :  { %6824 = vmatpush3.bf16.msra.mxu0 %v6978_v38 }
 0x184   :  { %6825 = vmatprep.subr.bf16.mxu0 %v7174_v28 }
 0x185   :  { %3092 = vmatpush1.bf16.msra.mxu1 %v5860_v25 }
 0x186   :  { %3093 = vmatprep.subr.bf16.mxu1 %v5837_v32 }
 0x187   :  { %6826 = vmatpush3.bf16.msra.mxu0 %v6979_v40 }
 0x188   :  { %6827 = vmatprep.subr.bf16.mxu0 %v7174_v28 }
 0x189   :  { %3094 = vmatpush1.bf16.msra.mxu1 %v5836_v34 }
 0x18b   :  { %6828 = vmatpush3.bf16.msra.mxu0 %v6980_v41  ;;  %v1803_v41 = vld [vmem:[%s9099_s5] sm:$0xff] }
 0x18c   :  { %6829 = vmatprep.subr.bf16.mxu0 %v7174_v28  ;;  %v1984_v28 = vld [vmem:[%s9099_s5 + $0x5a8] sm:$0xff] }
 0x18d   :  { %v5982_v51 = vcombine.low %v1972_v47, %v1984_v28  ;;  %v5983_v52 = vcombine.high %v1972_v47, %v1984_v28  ;;  %v1816_v47 = vld [vmem:[%s9099_s5 + $0x68] sm:$0xff] }
 0x18e   :  { %v5814_v49 = vcombine.low %v1804_v46, %v1816_v47  ;;  %v5815_v28 = vcombine.high %v1804_v46, %v1816_v47  ;;  %v1926_v46 = vld [vmem:[%s9099_s5 + $0x3d8] sm:$0xff] }
 0x18f   :  { %6830 = vmatpush3.bf16.msra.mxu0 %v6981_v42  ;;  %v1815_v42 = vld [vmem:[%s9099_s5 + $0x60] sm:$0xff]  ;;  %v1938_v47 = vld [vmem:[%s9099_s5 + $0x438] sm:$0xff] }
 0x190   :  { %3122 = vmatprep.subr.bf16.mxu0 %v5983_v52  ;;  %v5813_v45 = vcombine.high %v1803_v41, %v1815_v42  ;;  %v5812_v48 = vcombine.low %v1803_v41, %v1815_v42  ;;  %v7908_v52 = vld [vmem:[%s9099_s5 + $0x5b0] sm:$0xff] }
 0x192   :  { %6832 = vmatmul.mubr.bf16.vlgmr.msra.gmra.mxu0 %v1687_v44  ;;  %3095 = vmatprep.subr.bf16.mxu1 %v5813_v45  ;;  %v1937_v45 = vld [vmem:[%s9099_s5 + $0x430] sm:$0xff] }
 0x193   :  { %3123 = vmatpush1.bf16.msra.mxu0 %v5982_v51  ;;  %3096 = vmatpush1.bf16.msra.mxu1 %v5812_v48  ;;  %v7903_v51 = vld [vmem:[%s9099_s5 + $0x550] sm:$0xff] }
 0x194   :  { %3124 = vmatprep.subr.bf16.mxu0 %v5959_v58  ;;  %v5985_v55 = vcombine.high %v7903_v51, %v7908_v52  ;;  %v5984_v58 = vcombine.low %v7903_v51, %v7908_v52  ;;  %3154 = vmatprep.mubr.bf16.mxu0 %v7176_v61  ;;  %v1913_v51 = vld [vmem:[%s9099_s5 + $0x370] sm:$0xff]  ;;  %v1902_v52 = vld [vmem:[%s9099_s5 + $0x318] sm:$0xff] }
 0x196   :  { %3163 = vmatprep.subr.bf16.mxu1 %v5985_v55  ;;  %v5938_v55 = vcombine.low %v1926_v46, %v1938_v47 }
 0x197   :  { %3125 = vmatpush1.bf16.msra.mxu0 %v5958_v63 }
 0x198   :  { %3126 = vmatprep.subr.bf16.mxu0 %v5935_v1 }
 0x19b   :  { %3127 = vmatpush1.bf16.msra.mxu0 %v5934_v7 }
 0x19c   :  { %3128 = vmatprep.subr.bf16.mxu0 %v5911_v8 }
 0x19f   :  { %3129 = vmatpush1.bf16.msra.mxu0 %v5910_v14 }
 0x1a0   :  { %3130 = vmatprep.subr.bf16.mxu0 %v5887_v16 }
 0x1a3   :  { %3131 = vmatpush1.bf16.msra.mxu0 %v5886_v22 }
 0x1a4   :  { %3132 = vmatprep.subr.bf16.mxu0 %v5863_v24 }
 0x1a7   :  { %3133 = vmatpush1.bf16.msra.mxu0 %v5862_v26 }
 0x1a8   :  { %3134 = vmatprep.subr.bf16.mxu0 %v5839_v36  ;;  %v1950_v36 = vld [vmem:[%s9099_s5 + $0x498] sm:$0xff] }
 0x1ab   :  { %3135 = vmatpush1.bf16.msra.mxu0 %v5838_v35  ;;  %v1961_v35 = vld [vmem:[%s9099_s5 + $0x4f0] sm:$0xff] }
 0x1ac   :  { %3136 = vmatprep.subr.bf16.mxu0 %v5815_v28  ;;  %v5961_v42 = vcombine.high %v1949_v33, %v1961_v35  ;;  %v5960_v48 = vcombine.low %v1949_v33, %v1961_v35 }
 0x1af   :  { %3137 = vmatpush1.bf16.msra.mxu0 %v5814_v49 }
 0x1b0   :  { %3204 = vmatprep.subr.bf16.mxu0 %v5987_v60  ;;  %v1889_v60 = vld [vmem:[%s9099_s5 + $0x2b0] sm:$0xff] }
 0x1d0   :  { %v1039_v31 = vpop.f32.mrf.mxu1 }
 0x1d2   :  { %v951_v37 = vpop.f32.mrf.mxu0  ;;  %v6693_v38 = vpop.f32.mrf.mxu1 }
 0x1d3   :  { %v1040_v40 = vadd.f32 %v1039_v31, %v951_v37  ;;  %v1962_v37 = vld [vmem:[%s9099_s5 + $0x4f8] sm:$0xff] }
 0x1d4   :  { %v6673_v43 = vpop.f32.mrf.mxu0  ;;  %v1042_v44 = vpop.f32.mrf.mxu1  ;;  %v5962_v49 = vcombine.low %v1950_v36, %v1962_v37 }
 0x1d5   :  { %v5963_v43 = vcombine.high %v1950_v36, %v1962_v37  ;;  %v1925_v44 = vld [vmem:[%s9099_s5 + $0x3d0] sm:$0xff]  ;;  %v1951_v36 = vld [vmem:[%s9099_s5 + $0x4a0] sm:$0xff] }
 0x1d6   :  { %v954_v39 = vpop.f32.mrf.mxu0  ;;  %v6694_v50 = vpop.f32.mrf.mxu1  ;;  %v5937_v28 = vcombine.high %v1925_v44, %v1937_v45  ;;  %v1963_v37 = vld [vmem:[%s9099_s5 + $0x500] sm:$0xff] }
 0x1d7   :  { %v5939_v39 = vcombine.high %v1926_v46, %v1938_v47  ;;  %v1901_v50 = vld [vmem:[%s9099_s5 + $0x310] sm:$0xff]  ;;  %v1927_v46 = vld [vmem:[%s9099_s5 + $0x3e0] sm:$0xff] }
 0x1d8   :  { %v6674_v54 = vpop.f32.mrf.mxu0  ;;  %v5913_v56 = vcombine.high %v1901_v50, %v1913_v51  ;;  %v1939_v47 = vld [vmem:[%s9099_s5 + $0x440] sm:$0xff] }
 0x1d9   :  { %v5936_v54 = vcombine.low %v1925_v44, %v1937_v45  ;;  %v5965_v44 = vcombine.high %v1951_v36, %v1963_v37 }
 0x1f0   :  { %v1252_v62 = vpop.f32.mrf.mxu1 }
 0x1f2   :  { %v1145_v63 = vpop.f32.mrf.mxu0  ;;  %v6733_v0 = vpop.f32.mrf.mxu1 }
 0x1f3   :  { %v1151_v1 = vadd.f32 %v1145_v63, %v1040_v40  ;;  %v1890_v63 = vld [vmem:[%s9099_s5 + $0x2b8] sm:$0xff]  ;;  %v5912_v0 = vcombine.low %v1901_v50, %v1913_v51  ;;  %v1903_v50 = vld [vmem:[%s9099_s5 + $0x320] sm:$0xff] }
 0x1f4   :  { %v6713_v2 = vpop.f32.mrf.mxu0  ;;  %v1255_v3 = vpop.f32.mrf.mxu1  ;;  %v1915_v51 = vld [vmem:[%s9099_s5 + $0x380] sm:$0xff] }
 0x1f5   :  { %v1258_v4 = vadd.f32 %v1252_v62, %v1151_v1  ;;  %v1878_v62 = vld [vmem:[%s9099_s5 + $0x258] sm:$0xff]  ;;  %v5914_v1 = vcombine.low %v1902_v52, %v1914_v53 }
 0x1f6   :  { %v1148_v5 = vpop.f32.mrf.mxu0  ;;  %v6734_v6 = vpop.f32.mrf.mxu1  ;;  %v5891_v3 = vcombine.high %v1878_v62, %v1890_v63 }
 0x1f7   :  { %v1865_v5 = vld [vmem:[%s9099_s5 + $0x1f0] sm:$0xff]  ;;  %v1854_v6 = vld [vmem:[%s9099_s5 + $0x198] sm:$0xff] }
 0x1f8   :  { %v6714_v7 = vpop.f32.mrf.mxu0 }
 0x1f9   :  { %v1866_v7 = vld [vmem:[%s9099_s5 + $0x1f8] sm:$0xff] }
 0x210   :  { %v1466_v57 = vpop.f32.mrf.mxu1 }
 0x212   :  { %v1358_v8 = vpop.f32.mrf.mxu0  ;;  %v6773_v9 = vpop.f32.mrf.mxu1 }
 0x213   :  { %v1364_v23 = vadd.f32 %v1358_v8, %v1258_v4  ;;  %v1853_v4 = vld [vmem:[%s9099_s5 + $0x190] sm:$0xff]  ;;  %v5890_v8 = vcombine.low %v1878_v62, %v1890_v63  ;;  %v5917_v62 = vcombine.high %v1903_v50, %v1915_v51 }
 0x214   :  { %v6753_v10 = vpop.f32.mrf.mxu0  ;;  %v1469_v11 = vpop.f32.mrf.mxu1  ;;  %v5865_v9 = vcombine.high %v1853_v4, %v1865_v5 }
 0x215   :  { %v1472_v24 = vadd.f32 %v1466_v57, %v1364_v23  ;;  %v5867_v10 = vcombine.high %v1854_v6, %v1866_v7  ;;  %v1829_v11 = vld [vmem:[%s9099_s5 + $0xd0] sm:$0xff] }
 0x216   :  { %v1361_v12 = vpop.f32.mrf.mxu0  ;;  %v6774_v13 = vpop.f32.mrf.mxu1 }
 0x217   :  { %v1841_v12 = vld [vmem:[%s9099_s5 + $0x130] sm:$0xff]  ;;  %v1830_v13 = vld [vmem:[%s9099_s5 + $0xd8] sm:$0xff] }
 0x218   :  { %v6754_v14 = vpop.f32.mrf.mxu0  ;;  %v5840_v23 = vcombine.low %v1829_v11, %v1841_v12 }
 0x219   :  { %v1842_v14 = vld [vmem:[%s9099_s5 + $0x138] sm:$0xff] }
 0x230   :  { %v1680_v15 = vpop.f32.mrf.mxu1 }
 0x232   :  { %v1573_v16 = vpop.f32.mrf.mxu0  ;;  %v6813_v17 = vpop.f32.mrf.mxu1 }
 0x233   :  { %v1579_v25 = vadd.f32 %v1573_v16, %v1472_v24  ;;  %v5866_v16 = vcombine.low %v1854_v6, %v1866_v7  ;;  %v5841_v17 = vcombine.high %v1829_v11, %v1841_v12  ;;  %v5842_v24 = vcombine.low %v1830_v13, %v1842_v14  ;;  %v1831_v11 = vld [vmem:[%s9099_s5 + $0xe0] sm:$0xff] }
 0x234   :  { %v6793_v18 = vpop.f32.mrf.mxu0  ;;  %v1683_v19 = vpop.f32.mrf.mxu1  ;;  %v1843_v12 = vld [vmem:[%s9099_s5 + $0x140] sm:$0xff] }
 0x235   :  { %v1686_v26 = vadd.f32 %v1680_v15, %v1579_v25  ;;  %v5864_v15 = vcombine.low %v1853_v4, %v1865_v5  ;;  %v5843_v18 = vcombine.high %v1830_v13, %v1842_v14  ;;  %v1805_v19 = vld [vmem:[%s9099_s5 + $0x10] sm:$0xff]  ;;  %v1855_v4 = vld [vmem:[%s9099_s5 + $0x1a0] sm:$0xff] }
 0x236   :  { %v1576_v20 = vpop.f32.mrf.mxu0  ;;  %v6814_v21 = vpop.f32.mrf.mxu1  ;;  %v1867_v5 = vld [vmem:[%s9099_s5 + $0x200] sm:$0xff] }
 0x237   :  { %v1817_v20 = vld [vmem:[%s9099_s5 + $0x70] sm:$0xff]  ;;  %v1806_v21 = vld [vmem:[%s9099_s5 + $0x18] sm:$0xff]  ;;  %v5869_v13 = vcombine.high %v1855_v4, %v1867_v5 }
 0x238   :  { %v6794_v22 = vpop.f32.mrf.mxu0  ;;  %v5817_v25 = vcombine.high %v1805_v19, %v1817_v20 }
 0x239   :  { %v1818_v22 = vld [vmem:[%s9099_s5 + $0x78] sm:$0xff] }
 0x23a   :  { %v5818_v33 = vcombine.low %v1806_v21, %v1818_v22 }
 0x252   :  { %v1786_v27 = vpop.f32.mrf.mxu0 }
 0x253   :  { %v1792_v30 = vadd.f32 %v1786_v27, %v1686_v26  ;;  %v5819_v26 = vcombine.high %v1806_v21, %v1818_v22  ;;  %v1975_v27 = vld [vmem:[%s9099_s5 + $0x560] sm:$0xff]  ;;  %v5845_v21 = vcombine.high %v1831_v11, %v1843_v12 }
 0x254   :  { %v6833_v31 = vpop.f32.mrf.mxu0 }
 0x255   :  { %v1800_v32 = vadd.f32 %v5811_v29, %v1792_v30  ;;  %v1987_v29 = vld [vmem:[%s9099_s5 + $0x5c0] sm:$0xff]  ;;  %v1976_v30 = vld [vmem:[%s9099_s5 + $0x568] sm:$0xff] }
 0x256   :  { %v1789_v34 = vpop.f32.mrf.mxu0  ;;  %v1988_v31 = vld [vmem:[%s9099_s5 + $0x5c8] sm:$0xff] }
 0x257   :  { %v1801_v38 = vmax.f32 %v1800_v32, 0.0  ;;  %v5816_v32 = vcombine.low %v1805_v19, %v1817_v20  ;;  %v5989_v34 = vcombine.high %v1975_v27, %v1987_v29  ;;  %v5991_v35 = vcombine.high %v1976_v30, %v1988_v31  ;;  %v1807_v19 = vld [vmem:[%s9099_s5 + $0x20] sm:$0xff] }
 0x258   :  { %v6834_v40 = vpop.f32.mrf.mxu0  ;;  %v1819_v20 = vld [vmem:[%s9099_s5 + $0x80] sm:$0xff] }
 0x259   :  { %v7941_v41 = vpack.c.bf16 %v1801_v38, %v1801_v38  ;;  %v1952_v38 = vld [vmem:[%s9099_s5 + $0x4a8] sm:$0xff] }
 0x25a   :  { %v1964_v40 = vld [vmem:[%s9099_s5 + $0x508] sm:$0xff] }
 0x25b   :  { %3114 = vmatmul.mubr.bf16.vlgmr.msra.gmra.mxu1 %v7941_v41  ;;  %3155 = vmatmul.mubr.bf16.vlgmr.msra.gmra.mxu0 %v7941_v41  ;;  %v5967_v45 = vcombine.high %v1952_v38, %v1964_v40 }
 0x25c   :  { %3164 = vmatpush1.bf16.msra.mxu1 %v5984_v58  ;;  %3205 = vmatpush1.bf16.msra.mxu0 %v5986_v59  ;;  %v5915_v58 = vcombine.high %v1902_v52, %v1914_v53  ;;  %v1877_v59 = vld [vmem:[%s9099_s5 + $0x250] sm:$0xff]  ;;  %v5941_v52 = vcombine.high %v1927_v46, %v1939_v47 }
 0x25d   :  { %3165 = vmatprep.subr.bf16.mxu1 %v5961_v42  ;;  %3206 = vmatprep.subr.bf16.mxu0 %v5963_v43  ;;  %v5889_v2 = vcombine.high %v1877_v59, %v1889_v60  ;;  %v5888_v57 = vcombine.low %v1877_v59, %v1889_v60  ;;  %v5988_v42 = vcombine.low %v1975_v27, %v1987_v29  ;;  %v1879_v59 = vld [vmem:[%s9099_s5 + $0x260] sm:$0xff]  ;;  %v1977_v27 = vld [vmem:[%s9099_s5 + $0x570] sm:$0xff] }
 0x25e   :  { %3195 = vmatprep.mubr.bf16.mxu1 %v7176_v61  ;;  %3236 = vmatprep.mubr.bf16.mxu0 %v7176_v61  ;;  %v5990_v43 = vcombine.low %v1976_v30, %v1988_v31  ;;  %v1891_v60 = vld [vmem:[%s9099_s5 + $0x2c0] sm:$0xff]  ;;  %v1989_v29 = vld [vmem:[%s9099_s5 + $0x5d0] sm:$0xff]  ;;  %v5821_v30 = vcombine.high %v1807_v19, %v1819_v20 }
 0x25f   :  { %v5893_v6 = vcombine.high %v1879_v59, %v1891_v60 }
 0x260   :  { %3166 = vmatpush1.bf16.msra.mxu1 %v5960_v48  ;;  %3207 = vmatpush1.bf16.msra.mxu0 %v5962_v49  ;;  %v1928_v48 = vld [vmem:[%s9099_s5 + $0x3e8] sm:$0xff] }
 0x261   :  { %3167 = vmatprep.subr.bf16.mxu1 %v5937_v28  ;;  %3208 = vmatprep.subr.bf16.mxu0 %v5939_v39  ;;  %v1940_v49 = vld [vmem:[%s9099_s5 + $0x448] sm:$0xff]  ;;  %v5964_v28 = vcombine.low %v1951_v36, %v1963_v37  ;;  %v5966_v39 = vcombine.low %v1952_v38, %v1964_v40  ;;  %v1953_v36 = vld [vmem:[%s9099_s5 + $0x4b0] sm:$0xff]  ;;  %v1954_v38 = vld [vmem:[%s9099_s5 + $0x4b8] sm:$0xff] }
 0x262   :  { %v5943_v53 = vcombine.high %v1928_v48, %v1940_v49  ;;  %v1965_v37 = vld [vmem:[%s9099_s5 + $0x510] sm:$0xff]  ;;  %v1966_v40 = vld [vmem:[%s9099_s5 + $0x518] sm:$0xff] }
 0x264   :  { %3168 = vmatpush1.bf16.msra.mxu1 %v5936_v54  ;;  %3209 = vmatpush1.bf16.msra.mxu0 %v5938_v55  ;;  %v1904_v54 = vld [vmem:[%s9099_s5 + $0x328] sm:$0xff] }
 0x265   :  { %3169 = vmatprep.subr.bf16.mxu1 %v5913_v56  ;;  %3210 = vmatprep.subr.bf16.mxu0 %v5915_v58  ;;  %v1916_v55 = vld [vmem:[%s9099_s5 + $0x388] sm:$0xff]  ;;  %v5940_v56 = vcombine.low %v1927_v46, %v1939_v47  ;;  %v5942_v58 = vcombine.low %v1928_v48, %v1940_v49  ;;  %v1929_v46 = vld [vmem:[%s9099_s5 + $0x3f0] sm:$0xff]  ;;  %v1930_v48 = vld [vmem:[%s9099_s5 + $0x3f8] sm:$0xff]  ;;  %v5969_v49 = vcombine.high %v1953_v36, %v1965_v37 }
 0x266   :  { %v5919_v63 = vcombine.high %v1904_v54, %v1916_v55  ;;  %v1941_v47 = vld [vmem:[%s9099_s5 + $0x450] sm:$0xff] }
 0x268   :  { %3170 = vmatpush1.bf16.msra.mxu1 %v5912_v0  ;;  %3211 = vmatpush1.bf16.msra.mxu0 %v5914_v1  ;;  %v1880_v0 = vld [vmem:[%s9099_s5 + $0x268] sm:$0xff] }
 0x269   :  { %3171 = vmatprep.subr.bf16.mxu1 %v5889_v2  ;;  %3212 = vmatprep.subr.bf16.mxu0 %v5891_v3  ;;  %v1892_v1 = vld [vmem:[%s9099_s5 + $0x2c8] sm:$0xff]  ;;  %v5916_v2 = vcombine.low %v1903_v50, %v1915_v51  ;;  %v5918_v3 = vcombine.low %v1904_v54, %v1916_v55  ;;  %v5968_v50 = vcombine.low %v1953_v36, %v1965_v37  ;;  %v1906_v54 = vld [vmem:[%s9099_s5 + $0x338] sm:$0xff] }
 0x26a   :  { %v5895_v7 = vcombine.high %v1880_v0, %v1892_v1  ;;  %v5970_v51 = vcombine.low %v1954_v38, %v1966_v40  ;;  %v1918_v55 = vld [vmem:[%s9099_s5 + $0x398] sm:$0xff] }
 0x26c   :  { %3172 = vmatpush1.bf16.msra.mxu1 %v5888_v57  ;;  %3213 = vmatpush1.bf16.msra.mxu0 %v5890_v8  ;;  %v1856_v57 = vld [vmem:[%s9099_s5 + $0x1a8] sm:$0xff] }
 0x26d   :  { %3173 = vmatprep.subr.bf16.mxu1 %v5865_v9  ;;  %3214 = vmatprep.subr.bf16.mxu0 %v5867_v10  ;;  %v1868_v8 = vld [vmem:[%s9099_s5 + $0x208] sm:$0xff]  ;;  %v5892_v9 = vcombine.low %v1879_v59, %v1891_v60  ;;  %v5894_v10 = vcombine.low %v1880_v0, %v1892_v1  ;;  %v5944_v59 = vcombine.low %v1929_v46, %v1941_v47  ;;  %v1882_v0 = vld [vmem:[%s9099_s5 + $0x278] sm:$0xff] }
 0x26e   :  { %v5871_v14 = vcombine.high %v1856_v57, %v1868_v8  ;;  %v1894_v1 = vld [vmem:[%s9099_s5 + $0x2d8] sm:$0xff] }
 0x270   :  { %3174 = vmatpush1.bf16.msra.mxu1 %v5864_v15  ;;  %3215 = vmatpush1.bf16.msra.mxu0 %v5866_v16  ;;  %v1832_v15 = vld [vmem:[%s9099_s5 + $0xe8] sm:$0xff] }
 0x271   :  { %3175 = vmatprep.subr.bf16.mxu1 %v5841_v17  ;;  %3216 = vmatprep.subr.bf16.mxu0 %v5843_v18  ;;  %v1844_v16 = vld [vmem:[%s9099_s5 + $0x148] sm:$0xff]  ;;  %v5868_v17 = vcombine.low %v1855_v4, %v1867_v5  ;;  %v5870_v18 = vcombine.low %v1856_v57, %v1868_v8  ;;  %v5922_v5 = vcombine.low %v1906_v54, %v1918_v55  ;;  %v1858_v57 = vld [vmem:[%s9099_s5 + $0x1b8] sm:$0xff] }
 0x272   :  { %v5847_v22 = vcombine.high %v1832_v15, %v1844_v16 }
 0x274   :  { %3176 = vmatpush1.bf16.msra.mxu1 %v5840_v23  ;;  %3217 = vmatpush1.bf16.msra.mxu0 %v5842_v24  ;;  %v1808_v23 = vld [vmem:[%s9099_s5 + $0x28] sm:$0xff] }
 0x275   :  { %3177 = vmatprep.subr.bf16.mxu1 %v5817_v25  ;;  %3218 = vmatprep.subr.bf16.mxu0 %v5819_v26  ;;  %v1820_v24 = vld [vmem:[%s9099_s5 + $0x88] sm:$0xff]  ;;  %v5844_v25 = vcombine.low %v1831_v11, %v1843_v12  ;;  %v5846_v26 = vcombine.low %v1832_v15, %v1844_v16  ;;  %v5898_v12 = vcombine.low %v1882_v0, %v1894_v1  ;;  %v1834_v15 = vld [vmem:[%s9099_s5 + $0xf8] sm:$0xff] }
 0x276   :  { %v5823_v31 = vcombine.high %v1808_v23, %v1820_v24 }
 0x278   :  { %3178 = vmatpush1.bf16.msra.mxu1 %v5816_v32  ;;  %3219 = vmatpush1.bf16.msra.mxu0 %v5818_v33  ;;  %v1978_v32 = vld [vmem:[%s9099_s5 + $0x578] sm:$0xff] }
 0x279   :  { %3245 = vmatprep.subr.bf16.mxu1 %v5989_v34  ;;  %3286 = vmatprep.subr.bf16.mxu0 %v5991_v35  ;;  %v1990_v33 = vld [vmem:[%s9099_s5 + $0x5d8] sm:$0xff]  ;;  %v5820_v34 = vcombine.low %v1807_v19, %v1819_v20  ;;  %v5822_v35 = vcombine.low %v1808_v23, %v1820_v24 }
 0x27a   :  { %v1810_v23 = vld [vmem:[%s9099_s5 + $0x38] sm:$0xff] }
 0x27b   :  { %3196 = vmatmul.mubr.bf16.vlgmr.msra.gmra.mxu1 %v7941_v41  ;;  %3237 = vmatmul.mubr.bf16.vlgmr.msra.gmra.mxu0 %v7941_v41 }
 0x27c   :  { %3246 = vmatpush1.bf16.msra.mxu1 %v5988_v42  ;;  %3287 = vmatpush1.bf16.msra.mxu0 %v5990_v43  ;;  %v5993_v42 = vcombine.high %v1977_v27, %v1989_v29  ;;  %v5995_v43 = vcombine.high %v1978_v32, %v1990_v33 }
 0x27d   :  { %3247 = vmatprep.subr.bf16.mxu1 %v5965_v44  ;;  %3288 = vmatprep.subr.bf16.mxu0 %v5967_v45  ;;  %v5992_v44 = vcombine.low %v1977_v27, %v1989_v29  ;;  %v5994_v45 = vcombine.low %v1978_v32, %v1990_v33  ;;  %v1980_v32 = vld [vmem:[%s9099_s5 + $0x588] sm:$0xff] }
 0x27e   :  { %3277 = vmatprep.mubr.bf16.mxu1 %v7176_v61  ;;  %3318 = vmatprep.mubr.bf16.mxu0 %v7176_v61 }
 0x280   :  { %3248 = vmatpush1.bf16.msra.mxu1 %v5964_v28  ;;  %3289 = vmatpush1.bf16.msra.mxu0 %v5966_v39  ;;  %v5971_v28 = vcombine.high %v1954_v38, %v1966_v40  ;;  %v1942_v39 = vld [vmem:[%s9099_s5 + $0x458] sm:$0xff]  ;;  %v1955_v38 = vld [vmem:[%s9099_s5 + $0x4c0] sm:$0xff] }
 0x281   :  { %3249 = vmatprep.subr.bf16.mxu1 %v5941_v52  ;;  %3290 = vmatprep.subr.bf16.mxu0 %v5943_v53  ;;  %v1905_v52 = vld [vmem:[%s9099_s5 + $0x330] sm:$0xff]  ;;  %v5946_v60 = vcombine.low %v1930_v48, %v1942_v39  ;;  %v1967_v40 = vld [vmem:[%s9099_s5 + $0x520] sm:$0xff] }
 0x282   :  { %v1917_v53 = vld [vmem:[%s9099_s5 + $0x390] sm:$0xff] }
 0x283   :  { %v5920_v4 = vcombine.low %v1905_v52, %v1917_v53 }
 0x284   :  { %3250 = vmatpush1.bf16.msra.mxu1 %v5940_v56  ;;  %3291 = vmatpush1.bf16.msra.mxu0 %v5942_v58  ;;  %v5945_v56 = vcombine.high %v1929_v46, %v1941_v47  ;;  %v5947_v58 = vcombine.high %v1930_v48, %v1942_v39  ;;  %v1931_v48 = vld [vmem:[%s9099_s5 + $0x400] sm:$0xff]  ;;  %v5973_v39 = vcombine.high %v1955_v38, %v1967_v40 }
 0x285   :  { %3251 = vmatprep.subr.bf16.mxu1 %v5917_v62  ;;  %3292 = vmatprep.subr.bf16.mxu0 %v5919_v63  ;;  %v1881_v62 = vld [vmem:[%s9099_s5 + $0x270] sm:$0xff] }
 0x286   :  { %v1893_v63 = vld [vmem:[%s9099_s5 + $0x2d0] sm:$0xff] }
 0x287   :  { %v5897_v8 = vcombine.high %v1881_v62, %v1893_v63  ;;  %v5896_v11 = vcombine.low %v1881_v62, %v1893_v63 }
 0x288   :  { %3252 = vmatpush1.bf16.msra.mxu1 %v5916_v2  ;;  %3293 = vmatpush1.bf16.msra.mxu0 %v5918_v3  ;;  %v5921_v2 = vcombine.high %v1905_v52, %v1917_v53  ;;  %v5923_v3 = vcombine.high %v1906_v54, %v1918_v55  ;;  %v5972_v52 = vcombine.low %v1955_v38, %v1967_v40  ;;  %v1907_v54 = vld [vmem:[%s9099_s5 + $0x340] sm:$0xff] }
 0x289   :  { %3253 = vmatprep.subr.bf16.mxu1 %v5893_v6  ;;  %3294 = vmatprep.subr.bf16.mxu0 %v5895_v7  ;;  %v1857_v6 = vld [vmem:[%s9099_s5 + $0x1b0] sm:$0xff]  ;;  %v1919_v55 = vld [vmem:[%s9099_s5 + $0x3a0] sm:$0xff] }
 0x28a   :  { %v1869_v7 = vld [vmem:[%s9099_s5 + $0x210] sm:$0xff] }
 0x28b   :  { %v5873_v16 = vcombine.high %v1857_v6, %v1869_v7  ;;  %v5872_v19 = vcombine.low %v1857_v6, %v1869_v7  ;;  %v5924_v6 = vcombine.low %v1907_v54, %v1919_v55 }
 0x28c   :  { %3254 = vmatpush1.bf16.msra.mxu1 %v5892_v9  ;;  %3295 = vmatpush1.bf16.msra.mxu0 %v5894_v10  ;;  %v5899_v9 = vcombine.high %v1882_v0, %v1894_v1  ;;  %v1870_v10 = vld [vmem:[%s9099_s5 + $0x218] sm:$0xff]  ;;  %v1883_v0 = vld [vmem:[%s9099_s5 + $0x280] sm:$0xff] }
 0x28d   :  { %3255 = vmatprep.subr.bf16.mxu1 %v5869_v13  ;;  %3296 = vmatprep.subr.bf16.mxu0 %v5871_v14  ;;  %v1833_v13 = vld [vmem:[%s9099_s5 + $0xf0] sm:$0xff]  ;;  %v5874_v20 = vcombine.low %v1858_v57, %v1870_v10  ;;  %v1895_v1 = vld [vmem:[%s9099_s5 + $0x2e0] sm:$0xff] }
 0x28e   :  { %v1845_v14 = vld [vmem:[%s9099_s5 + $0x150] sm:$0xff] }
 0x28f   :  { %v5849_v24 = vcombine.high %v1833_v13, %v1845_v14  ;;  %v5848_v27 = vcombine.low %v1833_v13, %v1845_v14  ;;  %v5900_v13 = vcombine.low %v1883_v0, %v1895_v1 }
 0x290   :  { %3256 = vmatpush1.bf16.msra.mxu1 %v5868_v17  ;;  %3297 = vmatpush1.bf16.msra.mxu0 %v5870_v18  ;;  %v5875_v17 = vcombine.high %v1858_v57, %v1870_v10  ;;  %v1846_v18 = vld [vmem:[%s9099_s5 + $0x158] sm:$0xff]  ;;  %v1859_v57 = vld [vmem:[%s9099_s5 + $0x1c0] sm:$0xff]  ;;  %v5901_v10 = vcombine.high %v1883_v0, %v1895_v1 }
 0x291   :  { %3257 = vmatprep.subr.bf16.mxu1 %v5845_v21  ;;  %3298 = vmatprep.subr.bf16.mxu0 %v5847_v22  ;;  %v1809_v21 = vld [vmem:[%s9099_s5 + $0x30] sm:$0xff]  ;;  %v5850_v29 = vcombine.low %v1834_v15, %v1846_v18 }
 0x292   :  { %v1821_v22 = vld [vmem:[%s9099_s5 + $0x90] sm:$0xff] }
 0x293   :  { %v5825_v33 = vcombine.high %v1809_v21, %v1821_v22  ;;  %v5824_v36 = vcombine.low %v1809_v21, %v1821_v22 }
 0x294   :  { %3258 = vmatpush1.bf16.msra.mxu1 %v5844_v25  ;;  %3299 = vmatpush1.bf16.msra.mxu0 %v5846_v26  ;;  %v5851_v25 = vcombine.high %v1834_v15, %v1846_v18  ;;  %v1822_v26 = vld [vmem:[%s9099_s5 + $0x98] sm:$0xff]  ;;  %v1835_v15 = vld [vmem:[%s9099_s5 + $0x100] sm:$0xff] }
 0x295   :  { %3259 = vmatprep.subr.bf16.mxu1 %v5821_v30  ;;  %3300 = vmatprep.subr.bf16.mxu0 %v5823_v31  ;;  %v1979_v30 = vld [vmem:[%s9099_s5 + $0x580] sm:$0xff]  ;;  %v5826_v37 = vcombine.low %v1810_v23, %v1822_v26 }
 0x296   :  { %v1991_v31 = vld [vmem:[%s9099_s5 + $0x5e0] sm:$0xff] }
 0x297   :  { %v5996_v46 = vcombine.low %v1979_v30, %v1991_v31 }
 0x298   :  { %3260 = vmatpush1.bf16.msra.mxu1 %v5820_v34  ;;  %3301 = vmatpush1.bf16.msra.mxu0 %v5822_v35  ;;  %v5827_v34 = vcombine.high %v1810_v23, %v1822_v26  ;;  %v1992_v35 = vld [vmem:[%s9099_s5 + $0x5e8] sm:$0xff]  ;;  %v1811_v23 = vld [vmem:[%s9099_s5 + $0x40] sm:$0xff] }
 0x299   :  { %3327 = vmatprep.subr.bf16.mxu1 %v5993_v42  ;;  %3368 = vmatprep.subr.bf16.mxu0 %v5995_v43  ;;  %v1956_v42 = vld [vmem:[%s9099_s5 + $0x4c8] sm:$0xff]  ;;  %v5997_v43 = vcombine.high %v1979_v30, %v1991_v31  ;;  %v5998_v47 = vcombine.low %v1980_v32, %v1992_v35 }
 0x29b   :  { %3278 = vmatmul.mubr.bf16.vlgmr.msra.gmra.mxu1 %v7941_v41  ;;  %3319 = vmatmul.mubr.bf16.vlgmr.msra.gmra.mxu0 %v7941_v41 }
 0x29c   :  { %3328 = vmatpush1.bf16.msra.mxu1 %v5992_v44  ;;  %3369 = vmatpush1.bf16.msra.mxu0 %v5994_v45  ;;  %v5999_v44 = vcombine.high %v1980_v32, %v1992_v35  ;;  %v1968_v45 = vld [vmem:[%s9099_s5 + $0x528] sm:$0xff]  ;;  %v1981_v32 = vld [vmem:[%s9099_s5 + $0x590] sm:$0xff] }
 0x29d   :  { %3329 = vmatprep.subr.bf16.mxu1 %v5969_v49  ;;  %3370 = vmatprep.subr.bf16.mxu0 %v5971_v28  ;;  %v1943_v49 = vld [vmem:[%s9099_s5 + $0x460] sm:$0xff]  ;;  %v1932_v28 = vld [vmem:[%s9099_s5 + $0x408] sm:$0xff]  ;;  %v5974_v53 = vcombine.low %v1956_v42, %v1968_v45 }
 0x29e   :  { %3359 = vmatprep.mubr.bf16.mxu1 %v7176_v61  ;;  %3400 = vmatprep.mubr.bf16.mxu0 %v7176_v61  ;;  %v5948_v62 = vcombine.low %v1931_v48, %v1943_v49 }
 0x2a0   :  { %3330 = vmatpush1.bf16.msra.mxu1 %v5968_v50  ;;  %3371 = vmatpush1.bf16.msra.mxu0 %v5970_v51  ;;  %v5975_v50 = vcombine.high %v1956_v42, %v1968_v45  ;;  %v1944_v51 = vld [vmem:[%s9099_s5 + $0x468] sm:$0xff]  ;;  %v1957_v42 = vld [vmem:[%s9099_s5 + $0x4d0] sm:$0xff] }
 0x2a1   :  { %3331 = vmatprep.subr.bf16.mxu1 %v5945_v56  ;;  %3372 = vmatprep.subr.bf16.mxu0 %v5947_v58  ;;  %v1908_v56 = vld [vmem:[%s9099_s5 + $0x348] sm:$0xff]  ;;  %v5950_v63 = vcombine.low %v1932_v28, %v1944_v51 }
 0x2a2   :  { %v1920_v58 = vld [vmem:[%s9099_s5 + $0x3a8] sm:$0xff] }
 0x2a3   :  { %v5926_v7 = vcombine.low %v1908_v56, %v1920_v58 }
 0x2a4   :  { %3332 = vmatpush1.bf16.msra.mxu1 %v5944_v59  ;;  %3373 = vmatpush1.bf16.msra.mxu0 %v5946_v60  ;;  %v5949_v59 = vcombine.high %v1931_v48, %v1943_v49  ;;  %v5951_v60 = vcombine.high %v1932_v28, %v1944_v51  ;;  %v1933_v28 = vld [vmem:[%s9099_s5 + $0x410] sm:$0xff] }
 0x2a5   :  { %3333 = vmatprep.subr.bf16.mxu1 %v5921_v2  ;;  %3374 = vmatprep.subr.bf16.mxu0 %v5923_v3  ;;  %v1884_v2 = vld [vmem:[%s9099_s5 + $0x288] sm:$0xff] }
 0x2a6   :  { %v1896_v3 = vld [vmem:[%s9099_s5 + $0x2e8] sm:$0xff] }
 0x2a7   :  { %v5902_v14 = vcombine.low %v1884_v2, %v1896_v3 }
 0x2a8   :  { %3334 = vmatpush1.bf16.msra.mxu1 %v5920_v4  ;;  %3375 = vmatpush1.bf16.msra.mxu0 %v5922_v5  ;;  %v5925_v4 = vcombine.high %v1907_v54, %v1919_v55  ;;  %v5927_v5 = vcombine.high %v1908_v56, %v1920_v58 }
 0x2a9   :  { %3335 = vmatprep.subr.bf16.mxu1 %v5897_v8  ;;  %3376 = vmatprep.subr.bf16.mxu0 %v5899_v9  ;;  %v1871_v8 = vld [vmem:[%s9099_s5 + $0x220] sm:$0xff]  ;;  %v1860_v9 = vld [vmem:[%s9099_s5 + $0x1c8] sm:$0xff] }
 0x2aa   :  { %v5877_v18 = vcombine.high %v1859_v57, %v1871_v8  ;;  %v5876_v21 = vcombine.low %v1859_v57, %v1871_v8  ;;  %v1861_v8 = vld [vmem:[%s9099_s5 + $0x1d0] sm:$0xff] }
 0x2ac   :  { %3336 = vmatpush1.bf16.msra.mxu1 %v5896_v11  ;;  %3377 = vmatpush1.bf16.msra.mxu0 %v5898_v12  ;;  %v5903_v11 = vcombine.high %v1884_v2, %v1896_v3  ;;  %v1872_v12 = vld [vmem:[%s9099_s5 + $0x228] sm:$0xff] }
 0x2ad   :  { %3337 = vmatprep.subr.bf16.mxu1 %v5873_v16  ;;  %3378 = vmatprep.subr.bf16.mxu0 %v5875_v17  ;;  %v1847_v16 = vld [vmem:[%s9099_s5 + $0x160] sm:$0xff]  ;;  %v1836_v17 = vld [vmem:[%s9099_s5 + $0x108] sm:$0xff]  ;;  %v5878_v22 = vcombine.low %v1860_v9, %v1872_v12 }
 0x2ae   :  { %v5853_v26 = vcombine.high %v1835_v15, %v1847_v16  ;;  %v5852_v30 = vcombine.low %v1835_v15, %v1847_v16  ;;  %v1837_v16 = vld [vmem:[%s9099_s5 + $0x110] sm:$0xff] }
 0x2b0   :  { %3338 = vmatpush1.bf16.msra.mxu1 %v5872_v19  ;;  %3379 = vmatpush1.bf16.msra.mxu0 %v5874_v20  ;;  %v5879_v19 = vcombine.high %v1860_v9, %v1872_v12  ;;  %v1848_v20 = vld [vmem:[%s9099_s5 + $0x168] sm:$0xff]  ;;  %v1873_v9 = vld [vmem:[%s9099_s5 + $0x230] sm:$0xff]  ;;  %v1862_v12 = vld [vmem:[%s9099_s5 + $0x1d8] sm:$0xff] }
 0x2b1   :  { %3339 = vmatprep.subr.bf16.mxu1 %v5849_v24  ;;  %3380 = vmatprep.subr.bf16.mxu0 %v5851_v25  ;;  %v1823_v24 = vld [vmem:[%s9099_s5 + $0xa0] sm:$0xff]  ;;  %v1812_v25 = vld [vmem:[%s9099_s5 + $0x48] sm:$0xff]  ;;  %v5854_v31 = vcombine.low %v1836_v17, %v1848_v20 }
 0x2b2   :  { %v5829_v35 = vcombine.high %v1811_v23, %v1823_v24  ;;  %v5828_v38 = vcombine.low %v1811_v23, %v1823_v24  ;;  %v1813_v24 = vld [vmem:[%s9099_s5 + $0x50] sm:$0xff] }
 0x2b4   :  { %3340 = vmatpush1.bf16.msra.mxu1 %v5848_v27  ;;  %3381 = vmatpush1.bf16.msra.mxu0 %v5850_v29  ;;  %v5855_v27 = vcombine.high %v1836_v17, %v1848_v20  ;;  %v1824_v29 = vld [vmem:[%s9099_s5 + $0xa8] sm:$0xff]  ;;  %v1849_v17 = vld [vmem:[%s9099_s5 + $0x170] sm:$0xff]  ;;  %v1838_v20 = vld [vmem:[%s9099_s5 + $0x118] sm:$0xff] }
 0x2b5   :  { %3341 = vmatprep.subr.bf16.mxu1 %v5825_v33  ;;  %3382 = vmatprep.subr.bf16.mxu0 %v5827_v34  ;;  %v1993_v33 = vld [vmem:[%s9099_s5 + $0x5f0] sm:$0xff]  ;;  %v1982_v34 = vld [vmem:[%s9099_s5 + $0x598] sm:$0xff]  ;;  %v5830_v40 = vcombine.low %v1812_v25, %v1824_v29 }
 0x2b6   :  { %v6001_v45 = vcombine.high %v1981_v32, %v1993_v33  ;;  %v6000_v48 = vcombine.low %v1981_v32, %v1993_v33 }
 0x2b8   :  { %3342 = vmatpush1.bf16.msra.mxu1 %v5824_v36  ;;  %3383 = vmatpush1.bf16.msra.mxu0 %v5826_v37  ;;  %v5831_v36 = vcombine.high %v1812_v25, %v1824_v29  ;;  %v1994_v37 = vld [vmem:[%s9099_s5 + $0x5f8] sm:$0xff]  ;;  %v1825_v25 = vld [vmem:[%s9099_s5 + $0xb0] sm:$0xff] }
 0x2b9   :  { %3409 = vmatprep.subr.bf16.mxu1 %v5997_v43  ;;  %3450 = vmatprep.subr.bf16.mxu0 %v5999_v44  ;;  %v1969_v43 = vld [vmem:[%s9099_s5 + $0x530] sm:$0xff]  ;;  %v1958_v44 = vld [vmem:[%s9099_s5 + $0x4d8] sm:$0xff]  ;;  %v6002_v49 = vcombine.low %v1982_v34, %v1994_v37  ;;  %v5833_v33 = vcombine.high %v1813_v24, %v1825_v25 }
 0x2ba   :  { %v5977_v51 = vcombine.high %v1957_v42, %v1969_v43  ;;  %v5976_v54 = vcombine.low %v1957_v42, %v1969_v43  ;;  %v1814_v29 = vld [vmem:[%s9099_s5 + $0x58] sm:$0xff]  ;;  %v6986_v43 = vld [vmem:[%s9101_s7 + $0x70] sm:$0xff]  }
 0x2bb   :  { %3360 = vmatmul.mubr.bf16.vlgmr.msra.gmra.mxu1 %v7941_v41  ;;  %3401 = vmatmul.mubr.bf16.vlgmr.msra.gmra.mxu0 %v7941_v41  ;;  %v6985_v42 = vld [vmem:[%s9101_s7 + $0xb8] sm:$0xff]  }
 0x2bc   :  { %3410 = vmatpush1.bf16.msra.mxu1 %v5996_v46  ;;  %3451 = vmatpush1.bf16.msra.mxu0 %v5998_v47  ;;  %v6003_v46 = vcombine.high %v1982_v34, %v1994_v37  ;;  %v1970_v47 = vld [vmem:[%s9099_s5 + $0x538] sm:$0xff] }
 0x2bd   :  { %3411 = vmatprep.subr.bf16.mxu1 %v5973_v39  ;;  %3452 = vmatprep.subr.bf16.mxu0 %v5975_v50  ;;  %v1945_v39 = vld [vmem:[%s9099_s5 + $0x470] sm:$0xff]  ;;  %v1934_v50 = vld [vmem:[%s9099_s5 + $0x418] sm:$0xff]  ;;  %v5978_v55 = vcombine.low %v1958_v44, %v1970_v47 }
 0x2be   :  { %3441 = vmatprep.mubr.bf16.mxu1 %v7176_v61  ;;  %3482 = vmatprep.mubr.bf16.mxu0 %v7176_v61  ;;  %v5953_v56 = vcombine.high %v1933_v28, %v1945_v39  ;;  %v5952_v0 = vcombine.low %v1933_v28, %v1945_v39  ;;  %v6982_v37 = vld [vmem:[%s9101_s7 + $0x78] sm:$0xff]   ;;  %v6994_v28 = vld [vmem:[%s9101_s7 + $0x60] sm:$0xff]  }
 0x2bf   :  { %v6995_v39 = vld [vmem:[%s9101_s7 + $0xe0] sm:$0xff]  }
 0x2c0   :  { %3412 = vmatpush1.bf16.msra.mxu1 %v5972_v52  ;;  %3453 = vmatpush1.bf16.msra.mxu0 %v5974_v53  ;;  %v5979_v52 = vcombine.high %v1958_v44, %v1970_v47  ;;  %v1946_v53 = vld [vmem:[%s9099_s5 + $0x478] sm:$0xff]  ;;  %v6987_v44 = vld [vmem:[%s9101_s7 + $0xf0] sm:$0xff]   ;;  %v6990_v47 = vld [vmem:[%s9101_s7 + $0x68] sm:$0xff]  }
 0x2c1   :  { %3413 = vmatprep.subr.bf16.mxu1 %v5949_v59  ;;  %3454 = vmatprep.subr.bf16.mxu0 %v5951_v60  ;;  %v5955_v58 = vcombine.high %v1934_v50, %v1946_v53  ;;  %v1909_v59 = vld [vmem:[%s9099_s5 + $0x350] sm:$0xff]  ;;  %v5954_v1 = vcombine.low %v1934_v50, %v1946_v53  ;;  %v6996_v50 = vld [vmem:[%s9101_s7 + $0x20] sm:$0xff]   ;;  %v6999_v53 = vld [vmem:[%s9101_s7 + $0xd8] sm:$0xff]  }
 0x2c2   :  { %v1921_v60 = vld [vmem:[%s9099_s5 + $0x3b0] sm:$0xff] }
 0x2c3   :  { %v5929_v2 = vcombine.high %v1909_v59, %v1921_v60 }
 0x2c4   :  { %3414 = vmatpush1.bf16.msra.mxu1 %v5948_v62  ;;  %3455 = vmatpush1.bf16.msra.mxu0 %v5950_v63  ;;  %v1910_v62 = vld [vmem:[%s9099_s5 + $0x358] sm:$0xff] }
 0x2c5   :  { %3415 = vmatprep.subr.bf16.mxu1 %v5925_v4  ;;  %3456 = vmatprep.subr.bf16.mxu0 %v5927_v5  ;;  %v1922_v63 = vld [vmem:[%s9099_s5 + $0x3b8] sm:$0xff]  ;;  %v1885_v4 = vld [vmem:[%s9099_s5 + $0x290] sm:$0xff] }
 0x2c6   :  { %v5931_v3 = vcombine.high %v1910_v62, %v1922_v63  ;;  %v1897_v5 = vld [vmem:[%s9099_s5 + $0x2f0] sm:$0xff]  ;;  %v5930_v57 = vcombine.low %v1910_v62, %v1922_v63  ;;  %v2001_v62 = vlaneseq  ;;  %v7006_v63 = vld [vmem:[%s9101_s7 + $0x48] sm:$0xff]  }
 0x2c8   :  { %3416 = vmatpush1.bf16.msra.mxu1 %v5924_v6  ;;  %3457 = vmatpush1.bf16.msra.mxu0 %v5926_v7  ;;  %v1898_v6 = vld [vmem:[%s9099_s5 + $0x2f8] sm:$0xff]  ;;  %v5928_v7 = vcombine.low %v1909_v59, %v1921_v60  ;;  %v7004_v59 = vld [vmem:[%s9101_s7 + $0x10] sm:$0xff]  }
 0x2c9   :  { %3417 = vmatprep.subr.bf16.mxu1 %v5901_v10  ;;  %3458 = vmatprep.subr.bf16.mxu0 %v5903_v11  ;;  %v5905_v10 = vcombine.high %v1885_v4, %v1897_v5  ;;  %v7005_v60 = vld [vmem:[%s9101_s7 + $0x90] sm:$0xff]  }
 0x2cc   :  { %3418 = vmatpush1.bf16.msra.mxu1 %v5900_v13  ;;  %3459 = vmatpush1.bf16.msra.mxu0 %v5902_v14  ;;  %v1874_v13 = vld [vmem:[%s9099_s5 + $0x238] sm:$0xff]  ;;  %v5904_v14 = vcombine.low %v1885_v4, %v1897_v5  ;;  %v7010_v4 = vld [vmem:[%s9101_s7 + $0x40] sm:$0xff]  }
 0x2cd   :  { %3419 = vmatprep.subr.bf16.mxu1 %v5877_v18  ;;  %3460 = vmatprep.subr.bf16.mxu0 %v5879_v19  ;;  %v5881_v18 = vcombine.high %v1861_v8, %v1873_v9  ;;  %v5883_v19 = vcombine.high %v1862_v12, %v1874_v13  ;;  %v5882_v23 = vcombine.low %v1862_v12, %v1874_v13  ;;  %v7011_v5 = vld [vmem:[%s9101_s7 + $0xc0] sm:$0xff]  }
 0x2d0   :  { %3420 = vmatpush1.bf16.msra.mxu1 %v5876_v21  ;;  %3461 = vmatpush1.bf16.msra.mxu0 %v5878_v22  ;;  %v1850_v21 = vld [vmem:[%s9099_s5 + $0x178] sm:$0xff]  ;;  %v5880_v22 = vcombine.low %v1861_v8, %v1873_v9 }
 0x2d1   :  { %3421 = vmatprep.subr.bf16.mxu1 %v5853_v26  ;;  %3462 = vmatprep.subr.bf16.mxu0 %v5855_v27  ;;  %v5857_v26 = vcombine.high %v1837_v16, %v1849_v17  ;;  %v5859_v27 = vcombine.high %v1838_v20, %v1850_v21  ;;  %v5858_v32 = vcombine.low %v1838_v20, %v1850_v21  ;;  %v7014_v9 = vld [vmem:[%s9101_s7 + $0x178] sm:$0xff]  }
 0x2d4   :  { %3422 = vmatpush1.bf16.msra.mxu1 %v5852_v30  ;;  %3463 = vmatpush1.bf16.msra.mxu0 %v5854_v31  ;;  %v1826_v30 = vld [vmem:[%s9099_s5 + $0xb8] sm:$0xff]  ;;  %v5856_v31 = vcombine.low %v1837_v16, %v1849_v17 }
 0x2d5   :  { %3423 = vmatprep.subr.bf16.mxu1 %v5829_v35  ;;  %3464 = vmatprep.subr.bf16.mxu0 %v5831_v36  ;;  %v5835_v34 = vcombine.high %v1814_v29, %v1826_v30  ;;  %v5832_v35 = vcombine.low %v1813_v24, %v1825_v25  ;;  %v5834_v36 = vcombine.low %v1814_v29, %v1826_v30 }
 0x2d8   :  { %3424 = vmatpush1.bf16.msra.mxu1 %v5828_v38  ;;  %3465 = vmatpush1.bf16.msra.mxu0 %v5830_v40  ;;  %v6983_v38 = vld [vmem:[%s9101_s7 + $0xf8] sm:$0xff]  }
 0x2d9   :  { %3491 = vmatprep.subr.bf16.mxu1 %v6001_v45  ;;  %3532 = vmatprep.subr.bf16.mxu0 %v6003_v46  ;;  %v6984_v40 = vld [vmem:[%s9101_s7 + $0x38] sm:$0xff]   ;;  %v6988_v45 = vld [vmem:[%s9101_s7 + $0x30] sm:$0xff]  }
 0x2da   :  { %v6989_v46 = vld [vmem:[%s9101_s7 + $0xb0] sm:$0xff]  }
 0x2db   :  { %3442 = vmatmul.mubr.bf16.vlgmr.msra.gmra.mxu1 %v7941_v41  ;;  %3483 = vmatmul.mubr.bf16.vlgmr.msra.gmra.mxu0 %v7941_v41 }
 0x2dc   :  { %3492 = vmatpush1.bf16.msra.mxu1 %v6000_v48  ;;  %3533 = vmatpush1.bf16.msra.mxu0 %v6002_v49  ;;  %v6991_v48 = vld [vmem:[%s9101_s7 + $0xe8] sm:$0xff]  }
 0x2dd   :  { %3493 = vmatprep.subr.bf16.mxu1 %v5977_v51  ;;  %3534 = vmatprep.subr.bf16.mxu0 %v5979_v52  ;;  %v6993_v49 = vld [vmem:[%s9101_s7 + $0xa8] sm:$0xff]   ;;  %v6997_v51 = vld [vmem:[%s9101_s7 + $0xa0] sm:$0xff]   ;;  %v6998_v52 = vld [vmem:[%s9101_s7 + $0x58] sm:$0xff]  }
 0x2de   :  { %3523 = vmatprep.mubr.bf16.mxu1 %v7176_v61  ;;  %3564 = vmatprep.mubr.bf16.mxu0 %v7176_v61  ;;  %v1886_v61 = vld [vmem:[%s9099_s5 + $0x298] sm:$0xff] }
 0x2df   :  { %v5907_v11 = vcombine.high %v1886_v61, %v1898_v6  ;;  %v5906_v15 = vcombine.low %v1886_v61, %v1898_v6  ;;  %v7012_v61 = vld [vmem:[%s9101_s7] sm:$0xff]  }
 0x2e0   :  { %3494 = vmatpush1.bf16.msra.mxu1 %v5976_v54  ;;  %3535 = vmatpush1.bf16.msra.mxu0 %v5978_v55  ;;  %v7000_v54 = vld [vmem:[%s9101_s7 + $0x18] sm:$0xff]   ;;  %v8519_v6 = vld [vmem:[%s9103_s6] sm:$0xff] }
 0x2e1   :  { %3495 = vmatprep.subr.bf16.mxu1 %v5953_v56  ;;  %3536 = vmatprep.subr.bf16.mxu0 %v5955_v58  ;;  %v7001_v55 = vld [vmem:[%s9101_s7 + $0x98] sm:$0xff]   ;;  %v7002_v56 = vld [vmem:[%s9101_s7 + $0x50] sm:$0xff]  }
 0x2e2   :  { %v7003_v58 = vld [vmem:[%s9101_s7 + $0xd0] sm:$0xff]  }
 0x2e4   :  { %3496 = vmatpush1.bf16.msra.mxu1 %v5952_v0  ;;  %3537 = vmatpush1.bf16.msra.mxu0 %v5954_v1  ;;  %v7007_v0 = vld [vmem:[%s9101_s7 + $0xc8] sm:$0xff]  }
 0x2e5   :  { %3497 = vmatprep.subr.bf16.mxu1 %v5929_v2  ;;  %3538 = vmatprep.subr.bf16.mxu0 %v5931_v3  ;;  %v7008_v1 = vld [vmem:[%s9101_s7 + $0x8] sm:$0xff]   ;;  %v8502_v2 = vshrl.u32 %v2001_v62, 7  ;;  %v7037_v62 = vld [vmem:[%s9101_s7 + $0x190] sm:$0xff]  }
 0x2e6   :  { %v7009_v3 = vld [vmem:[%s9101_s7 + $0x88] sm:$0xff]  }
 0x2e7   :  { %v8528_v8 = vsub.s32 2, %v8502_v2  ;;  %v8540_v12 = vsub.s32 3, %v8502_v2 }
 0x2e8   :  { %3498 = vmatpush1.bf16.msra.mxu1 %v5928_v7  ;;  %3539 = vmatpush1.bf16.msra.mxu0 %v5930_v57  ;;  %v8522_v7 = vsub.s32 0, %v8502_v2  ;;  %v7013_v57 = vld [vmem:[%s9101_s7 + $0x80] sm:$0xff]  }
 0x2e9   :  { %3499 = vmatprep.subr.bf16.mxu1 %v5905_v10  ;;  %3540 = vmatprep.subr.bf16.mxu0 %v5907_v11  ;;  %v7015_v10 = vld [vmem:[%s9101_s7 + $0x1f8] sm:$0xff]   ;;  %v8537_v11 = vsub.s32 1, %v8502_v2  ;;  %v2016_v16 = vrot.slane %v8519_v6, %v8540_v12 }
 0x2ea   :  { %v2004_v13 = vrot.slane %v8519_v6, %v8522_v7 }
 0x2ec   :  { %3500 = vmatpush1.bf16.msra.mxu1 %v5904_v14  ;;  %3541 = vmatpush1.bf16.msra.mxu0 %v5906_v15  ;;  %v2012_v14 = vrot.slane %v8519_v6, %v8528_v8  ;;  %v2008_v15 = vrot.slane %v8519_v6, %v8537_v11 }
 0x2ed   :  { %3501 = vmatprep.subr.bf16.mxu1 %v5881_v18  ;;  %3542 = vmatprep.subr.bf16.mxu0 %v5883_v19 }
 0x2f0   :  { %3502 = vmatpush1.bf16.msra.mxu1 %v5880_v22  ;;  %3543 = vmatpush1.bf16.msra.mxu0 %v5882_v23 }
 0x2f1   :  { %3503 = vmatprep.subr.bf16.mxu1 %v5857_v26  ;;  %3544 = vmatprep.subr.bf16.mxu0 %v5859_v27 }
 0x2f4   :  { %3504 = vmatpush1.bf16.msra.mxu1 %v5856_v31  ;;  %3545 = vmatpush1.bf16.msra.mxu0 %v5858_v32  ;;  %v7016_v32 = vld [vmem:[%s9101_s7 + $0x138] sm:$0xff]  }
 0x2f5   :  { %3505 = vmatprep.subr.bf16.mxu1 %v5833_v33  ;;  %3546 = vmatprep.subr.bf16.mxu0 %v5835_v34  ;;  %v7017_v33 = vld [vmem:[%s9101_s7 + $0x1b8] sm:$0xff]  }
 0x2f8   :  { %3506 = vmatpush1.bf16.msra.mxu1 %v5832_v35  ;;  %3547 = vmatpush1.bf16.msra.mxu0 %v5834_v36 }
 0x2f9   :  { %6391 = vmatprep.subr.bf16.mxu1 %v6982_v37  ;;  %6413 = vmatprep.subr.bf16.mxu0 %v6983_v38  ;;  %v7018_v38 = vld [vmem:[%s9101_s7 + $0x170] sm:$0xff]  }
 0x2fb   :  { %3524 = vmatmul.mubr.bf16.vlgmr.msra.gmra.mxu1 %v7941_v41  ;;  %3565 = vmatmul.mubr.bf16.vlgmr.msra.gmra.mxu0 %v7941_v41  ;;  %v6992_v41 = vld [vmem:[%s9101_s7 + $0x28] sm:$0xff]  }
 0x2fc   :  { %6392 = vmatpush3.bf16.msra.mxu1 %v6984_v40  ;;  %6414 = vmatpush3.bf16.msra.mxu0 %v6985_v42 }
 0x2fd   :  { %6393 = vmatprep.subr.bf16.mxu1 %v6986_v43  ;;  %6415 = vmatprep.subr.bf16.mxu0 %v6987_v44  ;;  %v7019_v43 = vld [vmem:[%s9101_s7 + $0x1f0] sm:$0xff]  }
 0x2fe   :  { %v7020_v44 = vld [vmem:[%s9101_s7 + $0x130] sm:$0xff]  }
 0x300   :  { %6394 = vmatpush3.bf16.msra.mxu1 %v6988_v45  ;;  %6416 = vmatpush3.bf16.msra.mxu0 %v6989_v46  ;;  %v7021_v45 = vld [vmem:[%s9101_s7 + $0x1b0] sm:$0xff]   ;;  %v7022_v46 = vld [vmem:[%s9101_s7 + $0x168] sm:$0xff]  }
 0x301   :  { %6395 = vmatprep.subr.bf16.mxu1 %v6990_v47  ;;  %6417 = vmatprep.subr.bf16.mxu0 %v6991_v48  ;;  %v7023_v47 = vld [vmem:[%s9101_s7 + $0x1e8] sm:$0xff]  }
 0x302   :  { %v7024_v48 = vld [vmem:[%s9101_s7 + $0x128] sm:$0xff]  }
 0x304   :  { %6396 = vmatpush3.bf16.msra.mxu1 %v6992_v41  ;;  %6418 = vmatpush3.bf16.msra.mxu0 %v6993_v49  ;;  %v7025_v41 = vld [vmem:[%s9101_s7 + $0x1a8] sm:$0xff]   ;;  %v7026_v49 = vld [vmem:[%s9101_s7 + $0x160] sm:$0xff]  }
 0x305   :  { %6397 = vmatprep.subr.bf16.mxu1 %v6994_v28  ;;  %6419 = vmatprep.subr.bf16.mxu0 %v6995_v39  ;;  %v7027_v28 = vld [vmem:[%s9101_s7 + $0x1e0] sm:$0xff]  }
 0x306   :  { %v7028_v39 = vld [vmem:[%s9101_s7 + $0x120] sm:$0xff]  }
 0x308   :  { %6398 = vmatpush3.bf16.msra.mxu1 %v6996_v50  ;;  %6420 = vmatpush3.bf16.msra.mxu0 %v6997_v51  ;;  %v7029_v50 = vld [vmem:[%s9101_s7 + $0x1a0] sm:$0xff]   ;;  %v7030_v51 = vld [vmem:[%s9101_s7 + $0x158] sm:$0xff]  }
 0x309   :  { %6399 = vmatprep.subr.bf16.mxu1 %v6998_v52  ;;  %6421 = vmatprep.subr.bf16.mxu0 %v6999_v53  ;;  %v7031_v52 = vld [vmem:[%s9101_s7 + $0x1d8] sm:$0xff]  }
 0x30a   :  { %v7032_v53 = vld [vmem:[%s9101_s7 + $0x118] sm:$0xff]  }
 0x30c   :  { %6400 = vmatpush3.bf16.msra.mxu1 %v7000_v54  ;;  %6422 = vmatpush3.bf16.msra.mxu0 %v7001_v55  ;;  %v7033_v54 = vld [vmem:[%s9101_s7 + $0x198] sm:$0xff]   ;;  %v7034_v55 = vld [vmem:[%s9101_s7 + $0x150] sm:$0xff]  }
 0x30d   :  { %6401 = vmatprep.subr.bf16.mxu1 %v7002_v56  ;;  %6423 = vmatprep.subr.bf16.mxu0 %v7003_v58  ;;  %v7035_v56 = vld [vmem:[%s9101_s7 + $0x1d0] sm:$0xff]  }
 0x30e   :  { %v7036_v58 = vld [vmem:[%s9101_s7 + $0x110] sm:$0xff]  }
 0x310   :  { %6402 = vmatpush3.bf16.msra.mxu1 %v7004_v59  ;;  %6424 = vmatpush3.bf16.msra.mxu0 %v7005_v60  ;;  %v8614_v59 = vsub.s32 4, %v8502_v2  ;;  %v8617_v60 = vsub.s32 6, %v8502_v2 }
 0x311   :  { %6403 = vmatprep.subr.bf16.mxu1 %v7006_v63  ;;  %6425 = vmatprep.subr.bf16.mxu0 %v7007_v0  ;;  %v8623_v63 = vsub.s32 5, %v8502_v2  ;;  %v8626_v0 = vsub.s32 7, %v8502_v2  ;;  %v7040_v2 = vld [vmem:[%s9101_s7 + $0x108] sm:$0xff]  }
 0x314   :  { %6404 = vmatpush3.bf16.msra.mxu1 %v7008_v1  ;;  %6426 = vmatpush3.bf16.msra.mxu0 %v7009_v3  ;;  %v7038_v1 = vld [vmem:[%s9101_s7 + $0x148] sm:$0xff]  }
 0x315   :  { %6405 = vmatprep.subr.bf16.mxu1 %v7010_v4  ;;  %6427 = vmatprep.subr.bf16.mxu0 %v7011_v5  ;;  %v7039_v3 = vld [vmem:[%s9101_s7 + $0x1c8] sm:$0xff]   ;;  %v2020_v4 = vrot.slane %v8519_v6, %v8614_v59  ;;  %v2028_v5 = vrot.slane %v8519_v6, %v8617_v60 }
 0x318   :  { %6406 = vmatpush3.bf16.msra.mxu1 %v7012_v61  ;;  %6428 = vmatpush3.bf16.msra.mxu0 %v7013_v57  ;;  %v7041_v61 = vld [vmem:[%s9101_s7 + $0x188] sm:$0xff]   ;;  %v2024_v57 = vrot.slane %v8519_v6, %v8623_v63 }
 0x319   :  { %6435 = vmatprep.subr.bf16.mxu1 %v7014_v9  ;;  %6457 = vmatprep.subr.bf16.mxu0 %v7015_v10  ;;  %v2032_v9 = vrot.slane %v8519_v6, %v8626_v0  ;;  %v7042_v10 = vld [vmem:[%s9101_s7 + $0x140] sm:$0xff]  }
 0x31b   :  { %v3115_v17 = vpop.f32.mrf.mxu1  ;;  %v3156_v18 = vpop.f32.mrf.mxu0 }
 0x31c   :  { %v3116_v19 = vadd.f32 %v3115_v17, %v2004_v13  ;;  %v3157_v20 = vadd.f32 %v3156_v18, %v2012_v14  ;;  %v7044_v18 = vld [vmem:[%s9101_s7 + $0x100] sm:$0xff]  }
 0x31d   :  { %v3117_v21 = vpop.f32.mrf.mxu1  ;;  %v3158_v22 = vpop.f32.mrf.mxu0 }
 0x31e   :  { %v3573_v23 = vmax.f32 %v3116_v19, 0.0  ;;  %v3575_v24 = vmax.f32 %v3157_v20, 0.0  ;;  %v3118_v25 = vadd.f32 %v3117_v21, %v2008_v15  ;;  %v3159_v26 = vadd.f32 %v3158_v22, %v2016_v16  ;;  %v7043_v15 = vld [vmem:[%s9101_s7 + $0x1c0] sm:$0xff]  }
 0x31f   :  { %v3119_v27 = vpop.f32.mrf.mxu1  ;;  %v3160_v29 = vpop.f32.mrf.mxu0  ;;  %v7045_v20 = vld [vmem:[%s9101_s7 + $0x180] sm:$0xff]  }
 0x320   :  { %v3574_v30 = vmax.f32 %v3118_v25, 0.0  ;;  %v3576_v31 = vmax.f32 %v3159_v26, 0.0  ;;  %v3597_v40 = vpack.c.bf16 %v3573_v23, %v3573_v23  ;;  %v3599_v42 = vpack.c.bf16 %v3575_v24, %v3575_v24  ;;  %v7046_v25 = vld [vmem:[%s9101_s7 + $0x278] sm:$0xff]  }
 0x321   :  { %v3120_v34 = vpop.f32.mrf.mxu1  ;;  %v3161_v35 = vpop.f32.mrf.mxu0  ;;  %v7047_v26 = vld [vmem:[%s9101_s7 + $0x2f8] sm:$0xff]  }
 0x322   :  { %v3598_v36 = vpack.c.bf16 %v3574_v30, %v3574_v30  ;;  %v3600_v37 = vpack.c.bf16 %v3576_v31, %v3576_v31 }
 0x324   :  { %4428 = vmatprep.mubr.bf16.mxu1 %v3598_v36  ;;  %4468 = vmatprep.mubr.bf16.mxu0 %v3600_v37  ;;  %v7049_v37 = vld [vmem:[%s9101_s7 + $0x2b8] sm:$0xff]  }
 0x325   :  { %4429 = vmatmul.mubr.bf16.vlgmr.msra.gmra.mxu1 %v3597_v40  ;;  %4469 = vmatmul.mubr.bf16.vlgmr.msra.gmra.mxu0 %v3599_v42  ;;  %v7050_v42 = vld [vmem:[%s9101_s7 + $0x270] sm:$0xff]  }
 0x326   :  { %6436 = vmatpush3.bf16.msra.mxu1 %v7016_v32  ;;  %6458 = vmatpush3.bf16.msra.mxu0 %v7017_v33  ;;  %v7048_v32 = vld [vmem:[%s9101_s7 + $0x238] sm:$0xff]  }
 0x327   :  { %6437 = vmatprep.subr.bf16.mxu1 %v7018_v38  ;;  %6459 = vmatprep.subr.bf16.mxu0 %v7019_v43  ;;  %v7051_v43 = vld [vmem:[%s9101_s7 + $0x2f0] sm:$0xff]  }
 0x32a   :  { %6438 = vmatpush3.bf16.msra.mxu1 %v7020_v44  ;;  %6460 = vmatpush3.bf16.msra.mxu0 %v7021_v45  ;;  %v7052_v44 = vld [vmem:[%s9101_s7 + $0x230] sm:$0xff]  }
 0x32b   :  { %6439 = vmatprep.subr.bf16.mxu1 %v7022_v46  ;;  %6461 = vmatprep.subr.bf16.mxu0 %v7023_v47  ;;  %v7053_v45 = vld [vmem:[%s9101_s7 + $0x2b0] sm:$0xff]   ;;  %v7054_v46 = vld [vmem:[%s9101_s7 + $0x268] sm:$0xff]  }
 0x32c   :  { %v7055_v47 = vld [vmem:[%s9101_s7 + $0x2e8] sm:$0xff]  }
 0x32e   :  { %6440 = vmatpush3.bf16.msra.mxu1 %v7024_v48  ;;  %6462 = vmatpush3.bf16.msra.mxu0 %v7025_v41  ;;  %v7056_v48 = vld [vmem:[%s9101_s7 + $0x228] sm:$0xff]  }
 0x32f   :  { %6441 = vmatprep.subr.bf16.mxu1 %v7026_v49  ;;  %6463 = vmatprep.subr.bf16.mxu0 %v7027_v28  ;;  %v7057_v41 = vld [vmem:[%s9101_s7 + $0x2a8] sm:$0xff]   ;;  %v7058_v49 = vld [vmem:[%s9101_s7 + $0x260] sm:$0xff]  }
 0x330   :  { %v7059_v28 = vld [vmem:[%s9101_s7 + $0x2e0] sm:$0xff]  }
 0x332   :  { %6442 = vmatpush3.bf16.msra.mxu1 %v7028_v39  ;;  %6464 = vmatpush3.bf16.msra.mxu0 %v7029_v50  ;;  %v7060_v39 = vld [vmem:[%s9101_s7 + $0x220] sm:$0xff]  }
 0x333   :  { %6443 = vmatprep.subr.bf16.mxu1 %v7030_v51  ;;  %6465 = vmatprep.subr.bf16.mxu0 %v7031_v52  ;;  %v7061_v50 = vld [vmem:[%s9101_s7 + $0x2a0] sm:$0xff]   ;;  %v7062_v51 = vld [vmem:[%s9101_s7 + $0x258] sm:$0xff]  }
 0x334   :  { %v7063_v52 = vld [vmem:[%s9101_s7 + $0x2d8] sm:$0xff]  }
 0x336   :  { %6444 = vmatpush3.bf16.msra.mxu1 %v7032_v53  ;;  %6466 = vmatpush3.bf16.msra.mxu0 %v7033_v54  ;;  %v7064_v53 = vld [vmem:[%s9101_s7 + $0x218] sm:$0xff]  }
 0x337   :  { %6445 = vmatprep.subr.bf16.mxu1 %v7034_v55  ;;  %6467 = vmatprep.subr.bf16.mxu0 %v7035_v56  ;;  %v7065_v54 = vld [vmem:[%s9101_s7 + $0x298] sm:$0xff]   ;;  %v7066_v55 = vld [vmem:[%s9101_s7 + $0x250] sm:$0xff]  }
 0x338   :  { %v7067_v56 = vld [vmem:[%s9101_s7 + $0x2d0] sm:$0xff]  }
 0x33a   :  { %6446 = vmatpush3.bf16.msra.mxu1 %v7036_v58  ;;  %6468 = vmatpush3.bf16.msra.mxu0 %v7037_v62  ;;  %v8729_v58 = vld [vmem:[%s9103_s6 + $0x8] sm:$0xff]  ;;  %v7068_v62 = vld [vmem:[%s9101_s7 + $0x210] sm:$0xff]  }
 0x33b   :  { %v3197_v13 = vpop.f32.mrf.mxu1  ;;  %v3238_v14 = vpop.f32.mrf.mxu0  ;;  %6447 = vmatprep.subr.bf16.mxu1 %v7038_v1  ;;  %6469 = vmatprep.subr.bf16.mxu0 %v7039_v3  ;;  %v7069_v1 = vld [vmem:[%s9101_s7 + $0x290] sm:$0xff]   ;;  %v7070_v3 = vld [vmem:[%s9101_s7 + $0x248] sm:$0xff]  }
 0x33c   :  { %v3198_v16 = vadd.f32 %v3197_v13, %v2020_v4  ;;  %v3239_v17 = vadd.f32 %v3238_v14, %v2028_v5  ;;  %v7071_v4 = vld [vmem:[%s9101_s7 + $0x2c8] sm:$0xff]   ;;  %v2036_v5 = vrot.slane %v8729_v58, %v8522_v7 }
 0x33d   :  { %v3199_v19 = vpop.f32.mrf.mxu1  ;;  %v3240_v6 = vpop.f32.mrf.mxu0 }
 0x33e   :  { %v3577_v21 = vmax.f32 %v3198_v16, 0.0  ;;  %v3579_v22 = vmax.f32 %v3239_v17, 0.0  ;;  %v3200_v23 = vadd.f32 %v3199_v19, %v2024_v57  ;;  %v3241_v24 = vadd.f32 %v3240_v6, %v2032_v9  ;;  %6448 = vmatpush3.bf16.msra.mxu1 %v7040_v2  ;;  %6470 = vmatpush3.bf16.msra.mxu0 %v7041_v61  ;;  %v7072_v9 = vld [vmem:[%s9101_s7 + $0x208] sm:$0xff]   ;;  %v7075_v16 = vld [vmem:[%s9101_s7 + $0x2c0] sm:$0xff]  }
 0x33f   :  { %v3201_v27 = vpop.f32.mrf.mxu1  ;;  %v3242_v29 = vpop.f32.mrf.mxu0  ;;  %6449 = vmatprep.subr.bf16.mxu1 %v7042_v10  ;;  %6471 = vmatprep.subr.bf16.mxu0 %v7043_v15  ;;  %v2044_v2 = vrot.slane %v8729_v58, %v8528_v8  ;;  %v2040_v61 = vrot.slane %v8729_v58, %v8537_v11  ;;  %v2048_v57 = vrot.slane %v8729_v58, %v8540_v12  ;;  %v7073_v10 = vld [vmem:[%s9101_s7 + $0x288] sm:$0xff]   ;;  %v7074_v15 = vld [vmem:[%s9101_s7 + $0x240] sm:$0xff]  }
 0x340   :  { %v3578_v30 = vmax.f32 %v3200_v23, 0.0  ;;  %v3580_v31 = vmax.f32 %v3241_v24, 0.0  ;;  %v3601_v38 = vpack.c.bf16 %v3577_v21, %v3577_v21  ;;  %v3603_v40 = vpack.c.bf16 %v3579_v22, %v3579_v22  ;;  %v7076_v22 = vld [vmem:[%s9101_s7 + $0x200] sm:$0xff]   ;;  %v7078_v29 = vld [vmem:[%s9102_s8 + $0x78] sm:$0xff]  }
 0x341   :  { %v3202_v33 = vpop.f32.mrf.mxu1  ;;  %v3243_v34 = vpop.f32.mrf.mxu0  ;;  %v7077_v23 = vld [vmem:[%s9101_s7 + $0x280] sm:$0xff]  }
 0x342   :  { %v3602_v35 = vpack.c.bf16 %v3578_v30, %v3578_v30  ;;  %v3604_v36 = vpack.c.bf16 %v3580_v31, %v3580_v31  ;;  %6450 = vmatpush3.bf16.msra.mxu1 %v7044_v18  ;;  %6472 = vmatpush3.bf16.msra.mxu0 %v7045_v20  ;;  %v7079_v30 = vld [vmem:[%s9102_s8 + $0xf8] sm:$0xff]  }
 0x343   :  { %6479 = vmatprep.subr.bf16.mxu1 %v7046_v25  ;;  %6501 = vmatprep.subr.bf16.mxu0 %v7047_v26 }
 0x344   :  { %4508 = vmatprep.mubr.bf16.mxu1 %v3602_v35  ;;  %4548 = vmatprep.mubr.bf16.mxu0 %v3604_v36 }
 0x345   :  { %4509 = vmatmul.mubr.bf16.vlgmr.msra.gmra.mxu1 %v3601_v38  ;;  %4549 = vmatmul.mubr.bf16.vlgmr.msra.gmra.mxu0 %v3603_v40  ;;  %v7081_v38 = vld [vmem:[%s9102_s8 + $0xb8] sm:$0xff]  }
 0x346   :  { %6480 = vmatpush3.bf16.msra.mxu1 %v7048_v32  ;;  %6502 = vmatpush3.bf16.msra.mxu0 %v7049_v37  ;;  %v7080_v37 = vld [vmem:[%s9102_s8 + $0x38] sm:$0xff]  }
 0x347   :  { %6481 = vmatprep.subr.bf16.mxu1 %v7050_v42  ;;  %6503 = vmatprep.subr.bf16.mxu0 %v7051_v43  ;;  %v7082_v43 = vld [vmem:[%s9102_s8 + $0x70] sm:$0xff]  }
 0x34a   :  { %6482 = vmatpush3.bf16.msra.mxu1 %v7052_v44  ;;  %6504 = vmatpush3.bf16.msra.mxu0 %v7053_v45  ;;  %v7083_v44 = vld [vmem:[%s9102_s8 + $0xf0] sm:$0xff]  }
 0x34b   :  { %6483 = vmatprep.subr.bf16.mxu1 %v7054_v46  ;;  %6505 = vmatprep.subr.bf16.mxu0 %v7055_v47  ;;  %v7084_v45 = vld [vmem:[%s9102_s8 + $0x30] sm:$0xff]   ;;  %v7086_v47 = vld [vmem:[%s9102_s8 + $0x68] sm:$0xff]  }
 0x34c   :  { %v7085_v46 = vld [vmem:[%s9102_s8 + $0xb0] sm:$0xff]  }
 0x34e   :  { %6484 = vmatpush3.bf16.msra.mxu1 %v7056_v48  ;;  %6506 = vmatpush3.bf16.msra.mxu0 %v7057_v41  ;;  %v7087_v48 = vld [vmem:[%s9102_s8 + $0xe8] sm:$0xff]  }
 0x34f   :  { %6485 = vmatprep.subr.bf16.mxu1 %v7058_v49  ;;  %6507 = vmatprep.subr.bf16.mxu0 %v7059_v28  ;;  %v7088_v41 = vld [vmem:[%s9102_s8 + $0x28] sm:$0xff]   ;;  %v7090_v28 = vld [vmem:[%s9102_s8 + $0x60] sm:$0xff]  }
 0x350   :  { %v7089_v49 = vld [vmem:[%s9102_s8 + $0xa8] sm:$0xff]  }
 0x352   :  { %6486 = vmatpush3.bf16.msra.mxu1 %v7060_v39  ;;  %6508 = vmatpush3.bf16.msra.mxu0 %v7061_v50  ;;  %v7091_v39 = vld [vmem:[%s9102_s8 + $0xe0] sm:$0xff]  }
 0x353   :  { %6487 = vmatprep.subr.bf16.mxu1 %v7062_v51  ;;  %6509 = vmatprep.subr.bf16.mxu0 %v7063_v52  ;;  %v7092_v50 = vld [vmem:[%s9102_s8 + $0x20] sm:$0xff]   ;;  %v7094_v52 = vld [vmem:[%s9102_s8 + $0x58] sm:$0xff]  }
 0x354   :  { %v7093_v51 = vld [vmem:[%s9102_s8 + $0xa0] sm:$0xff]  }
 0x356   :  { %6488 = vmatpush3.bf16.msra.mxu1 %v7064_v53  ;;  %6510 = vmatpush3.bf16.msra.mxu0 %v7065_v54  ;;  %v7095_v53 = vld [vmem:[%s9102_s8 + $0xd8] sm:$0xff]  }
 0x357   :  { %6489 = vmatprep.subr.bf16.mxu1 %v7066_v55  ;;  %6511 = vmatprep.subr.bf16.mxu0 %v7067_v56  ;;  %v7096_v54 = vld [vmem:[%s9102_s8 + $0x18] sm:$0xff]   ;;  %v7098_v56 = vld [vmem:[%s9102_s8 + $0x50] sm:$0xff]  }
 0x358   :  { %v7097_v55 = vld [vmem:[%s9102_s8 + $0x98] sm:$0xff]  }
 0x35a   :  { %6490 = vmatpush3.bf16.msra.mxu1 %v7068_v62  ;;  %6512 = vmatpush3.bf16.msra.mxu0 %v7069_v1  ;;  %v7099_v62 = vld [vmem:[%s9102_s8 + $0xd0] sm:$0xff]  }
 0x35b   :  { %v3279_v13 = vpop.f32.mrf.mxu1  ;;  %v3320_v14 = vpop.f32.mrf.mxu0  ;;  %6491 = vmatprep.subr.bf16.mxu1 %v7070_v3  ;;  %6513 = vmatprep.subr.bf16.mxu0 %v7071_v4  ;;  %v7100_v1 = vld [vmem:[%s9102_s8 + $0x10] sm:$0xff]   ;;  %v7102_v4 = vld [vmem:[%s9102_s8 + $0x48] sm:$0xff]  }
 0x35c   :  { %v3280_v17 = vadd.f32 %v3279_v13, %v2036_v5  ;;  %v3321_v18 = vadd.f32 %v3320_v14, %v2044_v2  ;;  %v7101_v3 = vld [vmem:[%s9102_s8 + $0x90] sm:$0xff]   ;;  %v7103_v5 = vld [vmem:[%s9102_s8 + $0xc8] sm:$0xff]   ;;  %v2052_v2 = vrot.slane %v8729_v58, %v8614_v59 }
 0x35d   :  { %v3281_v19 = vpop.f32.mrf.mxu1  ;;  %v3322_v6 = vpop.f32.mrf.mxu0  ;;  %v7105_v13 = vld [vmem:[%s9102_s8 + $0x88] sm:$0xff]  }
 0x35e   :  { %v3282_v20 = vadd.f32 %v3281_v19, %v2040_v61  ;;  %v3323_v21 = vadd.f32 %v3322_v6, %v2048_v57  ;;  %6492 = vmatpush3.bf16.msra.mxu1 %v7072_v9  ;;  %6514 = vmatpush3.bf16.msra.mxu0 %v7073_v10  ;;  %v3581_v24 = vmax.f32 %v3280_v17, 0.0  ;;  %v3583_v25 = vmax.f32 %v3321_v18, 0.0  ;;  %v7104_v10 = vld [vmem:[%s9102_s8 + $0x8] sm:$0xff]  }
 0x35f   :  { %v3283_v26 = vpop.f32.mrf.mxu1  ;;  %v3324_v27 = vpop.f32.mrf.mxu0  ;;  %6493 = vmatprep.subr.bf16.mxu1 %v7074_v15  ;;  %6515 = vmatprep.subr.bf16.mxu0 %v7075_v16  ;;  %v2060_v61 = vrot.slane %v8729_v58, %v8617_v60  ;;  %v2056_v57 = vrot.slane %v8729_v58, %v8623_v63  ;;  %v2064_v9 = vrot.slane %v8729_v58, %v8626_v0  ;;  %v7106_v16 = vld [vmem:[%s9102_s8 + $0x40] sm:$0xff]  }
 0x360   :  { %v3582_v31 = vmax.f32 %v3282_v20, 0.0  ;;  %v3584_v32 = vmax.f32 %v3323_v21, 0.0  ;;  %v3605_v40 = vpack.c.bf16 %v3581_v24, %v3581_v24  ;;  %v3607_v42 = vpack.c.bf16 %v3583_v25, %v3583_v25  ;;  %v7107_v58 = vld [vmem:[%s9102_s8 + $0xc0] sm:$0xff]  }
 0x361   :  { %v3284_v33 = vpop.f32.mrf.mxu1  ;;  %v3325_v34 = vpop.f32.mrf.mxu0 }
 0x362   :  { %v3606_v35 = vpack.c.bf16 %v3582_v31, %v3582_v31  ;;  %v3608_v36 = vpack.c.bf16 %v3584_v32, %v3584_v32  ;;  %6494 = vmatpush3.bf16.msra.mxu1 %v7076_v22  ;;  %6516 = vmatpush3.bf16.msra.mxu0 %v7077_v23  ;;  %v7108_v22 = vld [vmem:[%s9102_s8] sm:$0xff]  }
 0x363   :  { %6523 = vmatprep.subr.bf16.mxu1 %v7078_v29  ;;  %6545 = vmatprep.subr.bf16.mxu0 %v7079_v30  ;;  %v7109_v23 = vld [vmem:[%s9102_s8 + $0x80] sm:$0xff]   ;;  %v7110_v29 = vld [vmem:[%s9102_s8 + $0x178] sm:$0xff]  }
 0x364   :  { %4588 = vmatprep.mubr.bf16.mxu1 %v3606_v35  ;;  %4628 = vmatprep.mubr.bf16.mxu0 %v3608_v36  ;;  %v7111_v30 = vld [vmem:[%s9102_s8 + $0x1f8] sm:$0xff]  }
 0x365   :  { %4589 = vmatmul.mubr.bf16.vlgmr.msra.gmra.mxu1 %v3605_v40  ;;  %4629 = vmatmul.mubr.bf16.vlgmr.msra.gmra.mxu0 %v3607_v42 }
 0x366   :  { %6524 = vmatpush3.bf16.msra.mxu1 %v7080_v37  ;;  %6546 = vmatpush3.bf16.msra.mxu0 %v7081_v38  ;;  %v7112_v37 = vld [vmem:[%s9102_s8 + $0x138] sm:$0xff]  }
 0x367   :  { %6525 = vmatprep.subr.bf16.mxu1 %v7082_v43  ;;  %6547 = vmatprep.subr.bf16.mxu0 %v7083_v44  ;;  %v7113_v38 = vld [vmem:[%s9102_s8 + $0x1b8] sm:$0xff]   ;;  %v7114_v43 = vld [vmem:[%s9102_s8 + $0x170] sm:$0xff]  }
 0x368   :  { %v7115_v44 = vld [vmem:[%s9102_s8 + $0x1f0] sm:$0xff]  }
 0x36a   :  { %6526 = vmatpush3.bf16.msra.mxu1 %v7084_v45  ;;  %6548 = vmatpush3.bf16.msra.mxu0 %v7085_v46  ;;  %v7116_v45 = vld [vmem:[%s9102_s8 + $0x130] sm:$0xff]  }
 0x36b   :  { %6527 = vmatprep.subr.bf16.mxu1 %v7086_v47  ;;  %6549 = vmatprep.subr.bf16.mxu0 %v7087_v48  ;;  %v7117_v46 = vld [vmem:[%s9102_s8 + $0x1b0] sm:$0xff]   ;;  %v7118_v47 = vld [vmem:[%s9102_s8 + $0x168] sm:$0xff]  }
 0x36c   :  { %v7119_v48 = vld [vmem:[%s9102_s8 + $0x1e8] sm:$0xff]  }
 0x36e   :  { %6528 = vmatpush3.bf16.msra.mxu1 %v7088_v41  ;;  %6550 = vmatpush3.bf16.msra.mxu0 %v7089_v49  ;;  %v7120_v41 = vld [vmem:[%s9102_s8 + $0x128] sm:$0xff]  }
 0x36f   :  { %6529 = vmatprep.subr.bf16.mxu1 %v7090_v28  ;;  %6551 = vmatprep.subr.bf16.mxu0 %v7091_v39  ;;  %v7121_v49 = vld [vmem:[%s9102_s8 + $0x1a8] sm:$0xff]   ;;  %v7122_v28 = vld [vmem:[%s9102_s8 + $0x160] sm:$0xff]  }
 0x370   :  { %v7123_v39 = vld [vmem:[%s9102_s8 + $0x1e0] sm:$0xff]  }
 0x372   :  { %6530 = vmatpush3.bf16.msra.mxu1 %v7092_v50  ;;  %6552 = vmatpush3.bf16.msra.mxu0 %v7093_v51  ;;  %v7124_v50 = vld [vmem:[%s9102_s8 + $0x120] sm:$0xff]  }
 0x373   :  { %6531 = vmatprep.subr.bf16.mxu1 %v7094_v52  ;;  %6553 = vmatprep.subr.bf16.mxu0 %v7095_v53  ;;  %v7125_v51 = vld [vmem:[%s9102_s8 + $0x1a0] sm:$0xff]   ;;  %v7126_v52 = vld [vmem:[%s9102_s8 + $0x158] sm:$0xff]  }
 0x374   :  { %v7127_v53 = vld [vmem:[%s9102_s8 + $0x1d8] sm:$0xff]  }
 0x376   :  { %6532 = vmatpush3.bf16.msra.mxu1 %v7096_v54  ;;  %6554 = vmatpush3.bf16.msra.mxu0 %v7097_v55  ;;  %v7128_v54 = vld [vmem:[%s9102_s8 + $0x118] sm:$0xff]  }
 0x377   :  { %6533 = vmatprep.subr.bf16.mxu1 %v7098_v56  ;;  %6555 = vmatprep.subr.bf16.mxu0 %v7099_v62  ;;  %v7129_v55 = vld [vmem:[%s9102_s8 + $0x198] sm:$0xff]   ;;  %v7130_v56 = vld [vmem:[%s9102_s8 + $0x150] sm:$0xff]  }
 0x378   :  { %v7131_v62 = vld [vmem:[%s9102_s8 + $0x1d0] sm:$0xff]  }
 0x37a   :  { %6534 = vmatpush3.bf16.msra.mxu1 %v7100_v1  ;;  %6556 = vmatpush3.bf16.msra.mxu0 %v7101_v3  ;;  %v8942_v1 = vld [vmem:[%s9103_s6 + $0x10] sm:$0xff] }
 0x37b   :  { %v3361_v14 = vpop.f32.mrf.mxu1  ;;  %v3402_v15 = vpop.f32.mrf.mxu0  ;;  %6535 = vmatprep.subr.bf16.mxu1 %v7102_v4  ;;  %6557 = vmatprep.subr.bf16.mxu0 %v7103_v5  ;;  %v7132_v3 = vld [vmem:[%s9102_s8 + $0x110] sm:$0xff]   ;;  %v7134_v5 = vld [vmem:[%s9102_s8 + $0x148] sm:$0xff]  }
 0x37c   :  { %v3362_v17 = vadd.f32 %v3361_v14, %v2052_v2  ;;  %v3403_v18 = vadd.f32 %v3402_v15, %v2060_v61  ;;  %v7133_v4 = vld [vmem:[%s9102_s8 + $0x190] sm:$0xff]   ;;  %v7135_v2 = vld [vmem:[%s9102_s8 + $0x1c8] sm:$0xff]   ;;  %v2068_v61 = vrot.slane %v8942_v1, %v8522_v7 }
 0x37d   :  { %v3363_v19 = vpop.f32.mrf.mxu1  ;;  %v3404_v6 = vpop.f32.mrf.mxu0  ;;  %v7137_v14 = vld [vmem:[%s9102_s8 + $0x188] sm:$0xff]  }
 0x37e   :  { %v3364_v20 = vadd.f32 %v3363_v19, %v2056_v57  ;;  %v3405_v21 = vadd.f32 %v3404_v6, %v2064_v9  ;;  %6536 = vmatpush3.bf16.msra.mxu1 %v7104_v10  ;;  %6558 = vmatpush3.bf16.msra.mxu0 %v7105_v13  ;;  %v3585_v24 = vmax.f32 %v3362_v17, 0.0  ;;  %v3587_v25 = vmax.f32 %v3403_v18, 0.0  ;;  %v7136_v13 = vld [vmem:[%s9102_s8 + $0x108] sm:$0xff]   ;;  %v7140_v6 = vld [vmem:[%s9102_s8 + $0x100] sm:$0xff]  }
 0x37f   :  { %v3365_v26 = vpop.f32.mrf.mxu1  ;;  %v3406_v27 = vpop.f32.mrf.mxu0  ;;  %6537 = vmatprep.subr.bf16.mxu1 %v7106_v16  ;;  %6559 = vmatprep.subr.bf16.mxu0 %v7107_v58  ;;  %v2076_v57 = vrot.slane %v8942_v1, %v8528_v8  ;;  %v2072_v9 = vrot.slane %v8942_v1, %v8537_v11  ;;  %v2080_v10 = vrot.slane %v8942_v1, %v8540_v12  ;;  %v7138_v8 = vld [vmem:[%s9102_s8 + $0x140] sm:$0xff]  }
 0x380   :  { %v3586_v31 = vmax.f32 %v3364_v20, 0.0  ;;  %v3588_v32 = vmax.f32 %v3405_v21, 0.0  ;;  %v3609_v40 = vpack.c.bf16 %v3585_v24, %v3585_v24  ;;  %v3611_v42 = vpack.c.bf16 %v3587_v25, %v3587_v25  ;;  %v7139_v11 = vld [vmem:[%s9102_s8 + $0x1c0] sm:$0xff]   ;;  %v7142_v25 = vld [vmem:[%s9102_s8 + $0x278] sm:$0xff]  }
 0x381   :  { %v3366_v33 = vpop.f32.mrf.mxu1  ;;  %v3407_v34 = vpop.f32.mrf.mxu0  ;;  %v7141_v20 = vld [vmem:[%s9102_s8 + $0x180] sm:$0xff]   ;;  %v7143_v26 = vld [vmem:[%s9102_s8 + $0x2f8] sm:$0xff]  }
 0x382   :  { %v3610_v35 = vpack.c.bf16 %v3586_v31, %v3586_v31  ;;  %v3612_v36 = vpack.c.bf16 %v3588_v32, %v3588_v32  ;;  %6538 = vmatpush3.bf16.msra.mxu1 %v7108_v22  ;;  %6560 = vmatpush3.bf16.msra.mxu0 %v7109_v23  ;;  %v7144_v34 = vld [vmem:[%s9102_s8 + $0x238] sm:$0xff]  }
 0x383   :  { %6567 = vmatprep.subr.bf16.mxu1 %v7110_v29  ;;  %6589 = vmatprep.subr.bf16.mxu0 %v7111_v30 }
 0x384   :  { %5443 = vmatprep.mubr.bf16.mxu1 %v3610_v35  ;;  %5483 = vmatprep.mubr.bf16.mxu0 %v3612_v36  ;;  %v7145_v35 = vld [vmem:[%s9102_s8 + $0x2b8] sm:$0xff]  }
 0x385   :  { %5444 = vmatmul.mubr.bf16.vlgmr.msra.gmra.mxu1 %v3609_v40  ;;  %5484 = vmatmul.mubr.bf16.vlgmr.msra.gmra.mxu0 %v3611_v42  ;;  %v7147_v40 = vld [vmem:[%s9102_s8 + $0x2f0] sm:$0xff]  }
 0x386   :  { %6568 = vmatpush3.bf16.msra.mxu1 %v7112_v37  ;;  %6590 = vmatpush3.bf16.msra.mxu0 %v7113_v38  ;;  %v7146_v38 = vld [vmem:[%s9102_s8 + $0x270] sm:$0xff]  }
 0x387   :  { %6569 = vmatprep.subr.bf16.mxu1 %v7114_v43  ;;  %6591 = vmatprep.subr.bf16.mxu0 %v7115_v44  ;;  %v7148_v42 = vld [vmem:[%s9102_s8 + $0x230] sm:$0xff]   ;;  %v7150_v44 = vld [vmem:[%s9102_s8 + $0x268] sm:$0xff]  }
 0x388   :  { %v7149_v43 = vld [vmem:[%s9102_s8 + $0x2b0] sm:$0xff]  }
 0x38a   :  { %6570 = vmatpush3.bf16.msra.mxu1 %v7116_v45  ;;  %6592 = vmatpush3.bf16.msra.mxu0 %v7117_v46  ;;  %v7151_v45 = vld [vmem:[%s9102_s8 + $0x2e8] sm:$0xff]  }
 0x38b   :  { %6571 = vmatprep.subr.bf16.mxu1 %v7118_v47  ;;  %6593 = vmatprep.subr.bf16.mxu0 %v7119_v48  ;;  %v7152_v46 = vld [vmem:[%s9102_s8 + $0x228] sm:$0xff]   ;;  %v7154_v48 = vld [vmem:[%s9102_s8 + $0x260] sm:$0xff]  }
 0x38c   :  { %v7153_v47 = vld [vmem:[%s9102_s8 + $0x2a8] sm:$0xff]  }
 0x38e   :  { %6572 = vmatpush3.bf16.msra.mxu1 %v7120_v41  ;;  %6594 = vmatpush3.bf16.msra.mxu0 %v7121_v49  ;;  %v7155_v41 = vld [vmem:[%s9102_s8 + $0x2e0] sm:$0xff]  }
 0x38f   :  { %6573 = vmatprep.subr.bf16.mxu1 %v7122_v28  ;;  %6595 = vmatprep.subr.bf16.mxu0 %v7123_v39  ;;  %v7156_v49 = vld [vmem:[%s9102_s8 + $0x220] sm:$0xff]   ;;  %v7158_v39 = vld [vmem:[%s9102_s8 + $0x258] sm:$0xff]  }
 0x390   :  { %v7157_v28 = vld [vmem:[%s9102_s8 + $0x2a0] sm:$0xff]  }
 0x392   :  { %6574 = vmatpush3.bf16.msra.mxu1 %v7124_v50  ;;  %6596 = vmatpush3.bf16.msra.mxu0 %v7125_v51  ;;  %v7159_v50 = vld [vmem:[%s9102_s8 + $0x2d8] sm:$0xff]  }
 0x393   :  { %6575 = vmatprep.subr.bf16.mxu1 %v7126_v52  ;;  %6597 = vmatprep.subr.bf16.mxu0 %v7127_v53  ;;  %v7160_v51 = vld [vmem:[%s9102_s8 + $0x218] sm:$0xff]   ;;  %v7162_v53 = vld [vmem:[%s9102_s8 + $0x250] sm:$0xff]  }
 0x394   :  { %v7161_v52 = vld [vmem:[%s9102_s8 + $0x298] sm:$0xff]  }
 0x396   :  { %6576 = vmatpush3.bf16.msra.mxu1 %v7128_v54  ;;  %6598 = vmatpush3.bf16.msra.mxu0 %v7129_v55  ;;  %v7163_v54 = vld [vmem:[%s9102_s8 + $0x2d0] sm:$0xff]  }
 0x397   :  { %6577 = vmatprep.subr.bf16.mxu1 %v7130_v56  ;;  %6599 = vmatprep.subr.bf16.mxu0 %v7131_v62  ;;  %v7164_v55 = vld [vmem:[%s9102_s8 + $0x210] sm:$0xff]   ;;  %v7166_v62 = vld [vmem:[%s9102_s8 + $0x248] sm:$0xff]  }
 0x398   :  { %v7165_v56 = vld [vmem:[%s9102_s8 + $0x290] sm:$0xff]  }
 0x39a   :  { %6578 = vmatpush3.bf16.msra.mxu1 %v7132_v3  ;;  %6600 = vmatpush3.bf16.msra.mxu0 %v7133_v4  ;;  %v7167_v3 = vld [vmem:[%s9102_s8 + $0x2c8] sm:$0xff]   ;;  %v2084_v4 = vrot.slane %v8942_v1, %v8614_v59 }
 0x39b   :  { %v3443_v7 = vpop.f32.mrf.mxu1  ;;  %v3484_v15 = vpop.f32.mrf.mxu0  ;;  %6579 = vmatprep.subr.bf16.mxu1 %v7134_v5  ;;  %6601 = vmatprep.subr.bf16.mxu0 %v7135_v2  ;;  %v2092_v5 = vrot.slane %v8942_v1, %v8617_v60  ;;  %v2088_v2 = vrot.slane %v8942_v1, %v8623_v63  ;;  %v7170_v60 = vld [vmem:[%s9102_s8 + $0x240] sm:$0xff]  }
 0x39c   :  { %v3444_v12 = vadd.f32 %v3443_v7, %v2068_v61  ;;  %v3485_v16 = vadd.f32 %v3484_v15, %v2076_v57  ;;  %v2096_v61 = vrot.slane %v8942_v1, %v8626_v0  ;;  %v7168_v57 = vld [vmem:[%s9102_s8 + $0x208] sm:$0xff]   ;;  %v7171_v63 = vld [vmem:[%s9102_s8 + $0x2c0] sm:$0xff]  }
 0x39d   :  { %v3445_v58 = vpop.f32.mrf.mxu1  ;;  %v3486_v17 = vpop.f32.mrf.mxu0 }
 0x39e   :  { %v3446_v18 = vadd.f32 %v3445_v58, %v2072_v9  ;;  %v3487_v19 = vadd.f32 %v3486_v17, %v2080_v10  ;;  %6580 = vmatpush3.bf16.msra.mxu1 %v7136_v13  ;;  %6602 = vmatpush3.bf16.msra.mxu0 %v7137_v14  ;;  %v3589_v21 = vmax.f32 %v3444_v12, 0.0  ;;  %v3591_v22 = vmax.f32 %v3485_v16, 0.0  ;;  %v7169_v9 = vld [vmem:[%s9102_s8 + $0x288] sm:$0xff]  }
 0x39f   :  { %v3447_v23 = vpop.f32.mrf.mxu1  ;;  %v3488_v24 = vpop.f32.mrf.mxu0  ;;  %6581 = vmatprep.subr.bf16.mxu1 %v7138_v8  ;;  %6603 = vmatprep.subr.bf16.mxu0 %v7139_v11  ;;  %v7172_v8 = vld [vmem:[%s9102_s8 + $0x200] sm:$0xff]  }
 0x3a0   :  { %v3590_v27 = vmax.f32 %v3446_v18, 0.0  ;;  %v3592_v29 = vmax.f32 %v3487_v19, 0.0  ;;  %v3613_v36 = vpack.c.bf16 %v3589_v21, %v3589_v21  ;;  %v3615_v37 = vpack.c.bf16 %v3591_v22, %v3591_v22  ;;  %v7173_v11 = vld [vmem:[%s9102_s8 + $0x280] sm:$0xff]  }
 0x3a1   :  { %v3448_v30 = vpop.f32.mrf.mxu1  ;;  %v3489_v31 = vpop.f32.mrf.mxu0 }
 0x3a2   :  { %v3614_v32 = vpack.c.bf16 %v3590_v27, %v3590_v27  ;;  %v3616_v33 = vpack.c.bf16 %v3592_v29, %v3592_v29  ;;  %6582 = vmatpush3.bf16.msra.mxu1 %v7140_v6  ;;  %6604 = vmatpush3.bf16.msra.mxu0 %v7141_v20  ;;  %v6004_v27 = vld [vmem:[%s9104_s9] ss:$0 sm:$0xff] }
 0x3a3   :  { %6611 = vmatprep.subr.bf16.mxu1 %v7142_v25  ;;  %6633 = vmatprep.subr.bf16.mxu0 %v7143_v26 }
 0x3a4   :  { %5523 = vmatprep.mubr.bf16.mxu1 %v3614_v32  ;;  %5563 = vmatprep.mubr.bf16.mxu0 %v3616_v33 }
 0x3a5   :  { %5524 = vmatmul.mubr.bf16.vlgmr.msra.gmra.mxu1 %v3613_v36  ;;  %5564 = vmatmul.mubr.bf16.vlgmr.msra.gmra.mxu0 %v3615_v37 }
 0x3a6   :  { %6612 = vmatpush3.bf16.msra.mxu1 %v7144_v34  ;;  %6634 = vmatpush3.bf16.msra.mxu0 %v7145_v35 }
 0x3a7   :  { %6613 = vmatprep.subr.bf16.mxu1 %v7146_v38  ;;  %6635 = vmatprep.subr.bf16.mxu0 %v7147_v40 }
 0x3aa   :  { %6614 = vmatpush3.bf16.msra.mxu1 %v7148_v42  ;;  %6636 = vmatpush3.bf16.msra.mxu0 %v7149_v43 }
 0x3ab   :  { %6615 = vmatprep.subr.bf16.mxu1 %v7150_v44  ;;  %6637 = vmatprep.subr.bf16.mxu0 %v7151_v45 }
 0x3ae   :  { %6616 = vmatpush3.bf16.msra.mxu1 %v7152_v46  ;;  %6638 = vmatpush3.bf16.msra.mxu0 %v7153_v47 }
 0x3af   :  { %6617 = vmatprep.subr.bf16.mxu1 %v7154_v48  ;;  %6639 = vmatprep.subr.bf16.mxu0 %v7155_v41 }
 0x3b2   :  { %6618 = vmatpush3.bf16.msra.mxu1 %v7156_v49  ;;  %6640 = vmatpush3.bf16.msra.mxu0 %v7157_v28 }
 0x3b3   :  { %6619 = vmatprep.subr.bf16.mxu1 %v7158_v39  ;;  %6641 = vmatprep.subr.bf16.mxu0 %v7159_v50 }
 0x3b6   :  { %6620 = vmatpush3.bf16.msra.mxu1 %v7160_v51  ;;  %6642 = vmatpush3.bf16.msra.mxu0 %v7161_v52 }
 0x3b7   :  { %6621 = vmatprep.subr.bf16.mxu1 %v7162_v53  ;;  %6643 = vmatprep.subr.bf16.mxu0 %v7163_v54 }
 0x3ba   :  { %6622 = vmatpush3.bf16.msra.mxu1 %v7164_v55  ;;  %6644 = vmatpush3.bf16.msra.mxu0 %v7165_v56 }
 0x3bb   :  { %v3525_v59 = vpop.f32.mrf.mxu1  ;;  %v3566_v10 = vpop.f32.mrf.mxu0  ;;  %6623 = vmatprep.subr.bf16.mxu1 %v7166_v62  ;;  %6645 = vmatprep.subr.bf16.mxu0 %v7167_v3 }
 0x3bc   :  { %v3526_v0 = vadd.f32 %v3525_v59, %v2084_v4  ;;  %v3567_v1 = vadd.f32 %v3566_v10, %v2092_v5 }
 0x3bd   :  { %v3527_v13 = vpop.f32.mrf.mxu1  ;;  %v3568_v14 = vpop.f32.mrf.mxu0 }
 0x3be   :  { %v3528_v7 = vadd.f32 %v3527_v13, %v2088_v2  ;;  %v3569_v15 = vadd.f32 %v3568_v14, %v2096_v61  ;;  %6624 = vmatpush3.bf16.msra.mxu1 %v7168_v57  ;;  %6646 = vmatpush3.bf16.msra.mxu0 %v7169_v9  ;;  %v3593_v12 = vmax.f32 %v3526_v0, 0.0  ;;  %v3595_v16 = vmax.f32 %v3567_v1, 0.0 }
 0x3bf   :  { %v3529_v58 = vpop.f32.mrf.mxu1  ;;  %v3570_v17 = vpop.f32.mrf.mxu0  ;;  %6625 = vmatprep.subr.bf16.mxu1 %v7170_v60  ;;  %6647 = vmatprep.subr.bf16.mxu0 %v7171_v63 }
 0x3c0   :  { %v3594_v18 = vmax.f32 %v3528_v7, 0.0  ;;  %v3596_v19 = vmax.f32 %v3569_v15, 0.0  ;;  %v3617_v23 = vpack.c.bf16 %v3593_v12, %v3593_v12  ;;  %v3619_v24 = vpack.c.bf16 %v3595_v16, %v3595_v16  ;;  %v6101_v58 = vld [vmem:[%s9105_s10] ss:$0 sm:$0xff] }
 0x3c1   :  { %v3530_v6 = vpop.f32.mrf.mxu1  ;;  %v3571_v20 = vpop.f32.mrf.mxu0 }
 0x3c2   :  { %v3618_v21 = vpack.c.bf16 %v3594_v18, %v3594_v18  ;;  %v3620_v22 = vpack.c.bf16 %v3596_v19, %v3596_v19  ;;  %6626 = vmatpush3.bf16.msra.mxu1 %v7172_v8  ;;  %6648 = vmatpush3.bf16.msra.mxu0 %v7173_v11 }
 0x3c4   :  { %5603 = vmatprep.mubr.bf16.mxu1 %v3618_v21  ;;  %5643 = vmatprep.mubr.bf16.mxu0 %v3620_v22 }
 0x3c5   :  { %5604 = vmatmul.mubr.bf16.vlgmr.msra.gmra.mxu1 %v3617_v23  ;;  %5644 = vmatmul.mubr.bf16.vlgmr.msra.gmra.mxu0 %v3619_v24 }
 0x3e5   :  { %v6407_v25 = vpop.f32.mrf.mxu1  ;;  %v6429_v26 = vpop.f32.mrf.mxu0 }
 0x3e7   :  { %v6408_v29 = vpop.f32.mrf.mxu1  ;;  %v6430_v30 = vpop.f32.mrf.mxu0 }
 0x3e8   :  { %v6409_v31 = vadd.f32 %v6408_v29, %v6407_v25  ;;  %v6431_v32 = vadd.f32 %v6430_v30, %v6429_v26 }
 0x3e9   :  { %v6410_v33 = vpop.f32.mrf.mxu1  ;;  %v6432_v34 = vpop.f32.mrf.mxu0 }
 0x3ea   :  { %v4431_v35 = vadd.f32 %v6409_v31, %v6004_v27 }
 0x3eb   :  { %v6411_v36 = vpop.f32.mrf.mxu1  ;;  %v6433_v37 = vpop.f32.mrf.mxu0 }
 0x3ec   :  { %v4471_v38 = vadd.f32 %v6431_v32, %v4431_v35 }
 0x405   :  { %v6451_v40 = vpop.f32.mrf.mxu1  ;;  %v6473_v42 = vpop.f32.mrf.mxu0 }
 0x407   :  { %v6452_v43 = vpop.f32.mrf.mxu1  ;;  %v6474_v44 = vpop.f32.mrf.mxu0 }
 0x408   :  { %v6453_v45 = vadd.f32 %v6452_v43, %v6451_v40  ;;  %v6475_v46 = vadd.f32 %v6474_v44, %v6473_v42 }
 0x409   :  { %v6454_v47 = vpop.f32.mrf.mxu1  ;;  %v6476_v48 = vpop.f32.mrf.mxu0 }
 0x40a   :  { %v4511_v41 = vadd.f32 %v6453_v45, %v4471_v38 }
 0x40b   :  { %v6455_v49 = vpop.f32.mrf.mxu1  ;;  %v6477_v28 = vpop.f32.mrf.mxu0 }
 0x40c   :  { %v4551_v39 = vadd.f32 %v6475_v46, %v4511_v41 }
 0x425   :  { %v6495_v50 = vpop.f32.mrf.mxu1  ;;  %v6517_v51 = vpop.f32.mrf.mxu0 }
 0x427   :  { %v6496_v52 = vpop.f32.mrf.mxu1  ;;  %v6518_v53 = vpop.f32.mrf.mxu0 }
 0x428   :  { %v6497_v54 = vadd.f32 %v6496_v52, %v6495_v50  ;;  %v6519_v55 = vadd.f32 %v6518_v53, %v6517_v51 }
 0x429   :  { %v6498_v56 = vpop.f32.mrf.mxu1  ;;  %v6520_v62 = vpop.f32.mrf.mxu0 }
 0x42a   :  { %v4591_v3 = vadd.f32 %v6497_v54, %v4551_v39 }
 0x42b   :  { %v6499_v4 = vpop.f32.mrf.mxu1  ;;  %v6521_v5 = vpop.f32.mrf.mxu0 }
 0x42c   :  { %v4631_v2 = vadd.f32 %v6519_v55, %v4591_v3 }
 0x445   :  { %v6539_v61 = vpop.f32.mrf.mxu1  ;;  %v6561_v57 = vpop.f32.mrf.mxu0 }
 0x447   :  { %v6540_v9 = vpop.f32.mrf.mxu1  ;;  %v6562_v59 = vpop.f32.mrf.mxu0 }
 0x448   :  { %v6541_v16 = vadd.f32 %v6540_v9, %v6539_v61  ;;  %v6563_v18 = vadd.f32 %v6562_v59, %v6561_v57 }
 0x449   :  { %v6542_v10 = vpop.f32.mrf.mxu1  ;;  %v6564_v60 = vpop.f32.mrf.mxu0 }
 0x44a   :  { %v5446_v17 = vadd.f32 %v6541_v16, %v6101_v58 }
 0x44b   :  { %v6543_v63 = vpop.f32.mrf.mxu1  ;;  %v6565_v0 = vpop.f32.mrf.mxu0 }
 0x44c   :  { %v5486_v6 = vadd.f32 %v6563_v18, %v5446_v17 }
 0x465   :  { %v6583_v1 = vpop.f32.mrf.mxu1  ;;  %v6605_v13 = vpop.f32.mrf.mxu0 }
 0x467   :  { %v6584_v14 = vpop.f32.mrf.mxu1  ;;  %v6606_v7 = vpop.f32.mrf.mxu0 }
 0x468   :  { %v6585_v19 = vadd.f32 %v6584_v14, %v6583_v1  ;;  %v6607_v23 = vadd.f32 %v6606_v7, %v6605_v13 }
 0x469   :  { %v6586_v15 = vpop.f32.mrf.mxu1  ;;  %v6608_v8 = vpop.f32.mrf.mxu0 }
 0x46a   :  { %v5526_v20 = vadd.f32 %v6585_v19, %v5486_v6 }
 0x46b   :  { %v6587_v11 = vpop.f32.mrf.mxu1  ;;  %v6609_v12 = vpop.f32.mrf.mxu0 }
 0x46c   :  { %v5566_v26 = vadd.f32 %v6607_v23, %v5526_v20 }
 0x485   :  { %v6627_v21 = vpop.f32.mrf.mxu1  ;;  %v6649_v22 = vpop.f32.mrf.mxu0 }
 0x487   :  { %v6628_v24 = vpop.f32.mrf.mxu1  ;;  %v6650_v25 = vpop.f32.mrf.mxu0 }
 0x488   :  { %v6629_v27 = vadd.f32 %v6628_v24, %v6627_v21  ;;  %v6651_v32 = vadd.f32 %v6650_v25, %v6649_v22 }
 0x489   :  { %v6630_v29 = vpop.f32.mrf.mxu1  ;;  %v6652_v30 = vpop.f32.mrf.mxu0 }
 0x48a   :  { %v5606_v31 = vadd.f32 %v6629_v27, %v5566_v26 }
 0x48b   :  { %v6631_v33 = vpop.f32.mrf.mxu1  ;;  %v6653_v34 = vpop.f32.mrf.mxu0 }
 0x48c   :  { %v5646_v35 = vadd.f32 %v6651_v32, %v5606_v31 }
 0x48e   :  { %v5651_v36 = vmul.f32 3.0, %v5646_v35 }
 0x490   :  { %v5652_v37 = vadd.f32 %v5651_v36, %v4631_v2 }
 0x492   :  { %5653 = vst [vmem:[%s9106_s11] sm:$0x3] %v5652_v37 }

</bundles_post_ra>
